<compile_context>
chip_gen: v7x
topology: tpu7x:2x2x1
jax: 0.10.0
libtpu: 0.0.40
codegen_flags: <defaults>
</compile_context>

<pallas_src>
import functools

import jax
import jax.numpy as jnp
from jax import lax
from jax.experimental import pallas as pl
from jax.experimental.pallas import tpu as pltpu


def _mix_u32(x):
    # splitmix32 / murmur3-finalizer style mixer: pure 32-bit VPU integer ops,
    # good avalanche, portable (no TPU-only primitives).
    x = x ^ (x >> 16)
    x = x * jnp.uint32(0x7FEB352D)
    x = x ^ (x >> 15)
    x = x * jnp.uint32(0x846CA68B)
    x = x ^ (x >> 16)
    return x


def _ffn_kernel(seed_ref, x_ref, w1_ref, b1_ref, w2_ref, b2_ref, o_ref,
                *, tm: int, drop_threshold_u32: int):
    i = pl.program_id(0)

    # linear1: (tm, d_model) @ (d_model, hidden) + b1
    h = jnp.dot(x_ref[...], w1_ref[...], preferred_element_type=jnp.float32)
    h = h + b1_ref[...]                      # b1 is (1, hidden), broadcasts over rows
    h = jnp.maximum(h, 0.0)                  # ReLU

    # Dropout (training semantics of nn.Dropout).  Exact torch RNG stream cannot
    # be reproduced; we use a stateless counter-based hash keyed on (seed, global
    # element id).  keep iff hash_bits >= p * 2^32.  The 1/(1-p) rescale is
    # already folded into w2 by the wrapper.
    if drop_threshold_u32 > 0:
        rows = lax.broadcasted_iota(jnp.int32, h.shape, 0) + i * tm   # global row
        cols = lax.broadcasted_iota(jnp.int32, h.shape, 1)
        gid = rows * jnp.int32(h.shape[1]) + cols                     # element id
        u = lax.bitcast_convert_type(gid ^ seed_ref[0], jnp.uint32)
        u = _mix_u32(_mix_u32(u) ^ jnp.uint32(0x9E3779B9))
        keep = u >= jnp.uint32(drop_threshold_u32)
        h = jnp.where(keep, h, 0.0)

    # linear2: (tm, hidden) @ (hidden, d_model) + b2
    out = jnp.dot(h, w2_ref[...], preferred_element_type=jnp.float32)
    out = out + b2_ref[...]
    o_ref[...] = out.astype(o_ref.dtype)


def positionwise_feed_forward(x, w1, b1, w2, b2, *, drop_prob=0.1, seed=0, tm=256):
    """x: [B, S, d_model] float32.  w1: (d_model, hidden), w2: (hidden, d_model)."""
    B, S, d_model = x.shape
    hidden = w1.shape[1]
    assert tm % 8 == 0, "row tile must be a multiple of 8 (f32 sublanes)"

    T = B * S
    T_pad = ((T + tm - 1) // tm) * tm        # pad instead of forcing tiny tm

    x2 = x.reshape(T, d_model)
    if T_pad != T:
        x2 = jnp.pad(x2, ((0, T_pad - T), (0, 0)))

    drop_prob = float(drop_prob)
    if drop_prob > 0.0:
        # Fold dropout rescale into w2: (mask*h/(1-p)) @ w2 == (mask*h) @ (w2/(1-p)).
        w2_eff = w2 * jnp.float32(1.0 / (1.0 - drop_prob))
        thr = min(int(round(drop_prob * (1 << 32))), (1 << 32) - 1)
    else:
        w2_eff = w2
        thr = 0

    b1_2 = b1.reshape(1, hidden)
    b2_2 = b2.reshape(1, d_model)
    seed_arr = jnp.array([seed], dtype=jnp.int32)

    kernel = functools.partial(_ffn_kernel, tm=tm, drop_threshold_u32=thr)

    # Advisory cost estimate for XLA's scheduler.
    flops = 4 * T_pad * d_model * hidden                 # two matmuls, 2*M*N*K each
    bytes_accessed = 4 * (2 * T_pad * d_model            # x in + out
                          + 2 * d_model * hidden         # w1 + w2
                          + hidden + d_model)            # biases
    cost = pl.CostEstimate(flops=flops, transcendentals=0,
                           bytes_accessed=bytes_accessed)

    # VMEM budget: double-buffered x/out tiles + (double-buffered) resident weights
    # + f32 intermediate, with 2x headroom; clamped to a sane scoped-VMEM range.
    est_vmem = 4 * (2 * 2 * tm * d_model
                    + 2 * (2 * d_model * hidden + hidden + d_model)
                    + tm * hidden)
    vmem_limit = int(min(100 * 1024 * 1024, max(32 * 1024 * 1024, 2 * est_vmem)))

    out = pl.pallas_call(
        kernel,
        out_shape=jax.ShapeDtypeStruct((T_pad, d_model), x.dtype),
        grid_spec=pltpu.PrefetchScalarGridSpec(
            num_scalar_prefetch=1,
            grid=(T_pad // tm,),
            in_specs=[
                pl.BlockSpec((tm, d_model), lambda i, seed: (i, 0)),      # x row tile
                pl.BlockSpec((d_model, hidden), lambda i, seed: (0, 0)),  # w1 resident
                pl.BlockSpec((1, hidden), lambda i, seed: (0, 0)),        # b1
                pl.BlockSpec((hidden, d_model), lambda i, seed: (0, 0)),  # w2 resident
                pl.BlockSpec((1, d_model), lambda i, seed: (0, 0)),       # b2
            ],
            out_specs=pl.BlockSpec((tm, d_model), lambda i, seed: (i, 0)),
        ),
        compiler_params=pltpu.CompilerParams(
            dimension_semantics=("parallel",),
            vmem_limit_bytes=vmem_limit),
        cost_estimate=cost,
    )(seed_arr, x2, w1, b1_2, w2_eff, b2_2)

    if T_pad != T:
        out = out[:T]
    return out.reshape(B, S, d_model)


if __name__ == "__main__":
    # Small shapes consistent with the module (seq=104, d_model=128 as in the spec;
    # small batch and hidden=4*d_model kept modest).
    B, S, d_model, hidden = 4, 104, 128, 512
    drop_prob = 0.1

    key = jax.random.PRNGKey(0)
    kx, kw1, kb1, kw2, kb2 = jax.random.split(key, 5)

    x = jax.random.normal(kx, (B, S, d_model), dtype=jnp.float32)

    # Deterministic PyTorch-style init: U(-1/sqrt(fan_in), 1/sqrt(fan_in)).
    # nn.Linear stores weight as (out, in); we pre-transpose to (in, out).
    lim1 = 1.0 / (d_model ** 0.5)
    lim2 = 1.0 / (hidden ** 0.5)
    w1 = jax.random.uniform(kw1, (d_model, hidden), jnp.float32, -lim1, lim1)
    b1 = jax.random.uniform(kb1, (hidden,), jnp.float32, -lim1, lim1)
    w2 = jax.random.uniform(kw2, (hidden, d_model), jnp.float32, -lim2, lim2)
    b2 = jax.random.uniform(kb2, (d_model,), jnp.float32, -lim2, lim2)

    # Training-mode path with dropout active (B*S = 416 -> padded to 512, grid=2).
    out = positionwise_feed_forward(x, w1, b1, w2, b2,
                                    drop_prob=drop_prob, seed=1234, tm=256)
    out = jax.block_until_ready(out)
    assert out.shape == (B, S, d_model)
    assert bool(jnp.all(jnp.isfinite(out)))

    # Numerical check against a pure-JAX reference with dropout disabled
    # (dropout mask is RNG-dependent, so compare the p=0 path).
    out_nodrop = jax.block_until_ready(
        positionwise_feed_forward(x, w1, b1, w2, b2, drop_prob=0.0, tm=256))
    ref = jnp.maximum(x @ w1 + b1, 0.0) @ w2 + b2
    assert jnp.allclose(out_nodrop, ref, atol=1e-3, rtol=1e-3)

    print("KERNEL_OK")
</pallas_src>

<mosaic_0001>
module attributes {stable_mosaic.version = 11 : i64} {
  func.func @_ffn_kernel(%arg0: i32, %arg1: memref<1xi32, #tpu.memory_space<smem>>, %arg2: memref<256x128xf32, #tpu.memory_space<vmem>>, %arg3: memref<128x512xf32, #tpu.memory_space<vmem>>, %arg4: memref<1x512xf32, #tpu.memory_space<vmem>>, %arg5: memref<512x128xf32, #tpu.memory_space<vmem>>, %arg6: memref<1x128xf32, #tpu.memory_space<vmem>>, %arg7: memref<256x128xf32, #tpu.memory_space<vmem>>) attributes {dimension_semantics = [#tpu.dimension_semantics<parallel>], iteration_bounds = array<i64: 2>, scalar_prefetch = 1 : i64, scratch_operands = 0 : i64, tpu.core_type = #tpu.core_type<tc>, window_params = [{transform_indices = @transform_0, window_bounds = array<i64: 256, 128>}, {pipeline_mode = #tpu.pipeline_mode<synchronous>, transform_indices = @transform_1, window_bounds = array<i64: 128, 512>}, {pipeline_mode = #tpu.pipeline_mode<synchronous>, transform_indices = @transform_2, window_bounds = array<i64: 1, 512>}, {pipeline_mode = #tpu.pipeline_mode<synchronous>, transform_indices = @transform_3, window_bounds = array<i64: 512, 128>}, {pipeline_mode = #tpu.pipeline_mode<synchronous>, transform_indices = @transform_4, window_bounds = array<i64: 1, 128>}, {transform_indices = @transform_5, window_bounds = array<i64: 256, 128>}]} {
    %c0 = arith.constant 0 : index
    %c0_0 = arith.constant 0 : index
    %0 = vector.load %arg2[%c0, %c0_0] : memref<256x128xf32, #tpu.memory_space<vmem>>, vector<256x128xf32>
    %c0_1 = arith.constant 0 : index
    %c0_2 = arith.constant 0 : index
    %1 = vector.load %arg3[%c0_1, %c0_2] : memref<128x512xf32, #tpu.memory_space<vmem>>, vector<128x512xf32>
    %cst = arith.constant dense<0.000000e+00> : vector<256x512xf32>
    %2 = tpu.matmul %0, %1, %cst {dimension_numbers = #tpu.dot_dimension_numbers<[1], [0], [0], [1], [0, 0, 1, 1], [], []>} : vector<256x128xf32>, vector<128x512xf32>, vector<256x512xf32> -> vector<256x512xf32>
    %c0_3 = arith.constant 0 : index
    %c0_4 = arith.constant 0 : index
    %3 = vector.load %arg4[%c0_3, %c0_4] : memref<1x512xf32, #tpu.memory_space<vmem>>, vector<1x512xf32>
    %4 = vector.broadcast %3 : vector<1x512xf32> to vector<256x512xf32>
    %5 = arith.addf %2, %4 : vector<256x512xf32>
    %cst_5 = arith.constant 0.000000e+00 : f32
    %6 = vector.broadcast %cst_5 : f32 to vector<256x512xf32>
    %7 = arith.maximumf %5, %6 : vector<256x512xf32>
    %8 = tpu.iota {dimensions = array<i32: 0>} : vector<256x512xi32>
    %c256_i32 = arith.constant 256 : i32
    %9 = arith.muli %arg0, %c256_i32 : i32
    %10 = vector.broadcast %9 : i32 to vector<256x512xi32>
    %11 = arith.addi %8, %10 : vector<256x512xi32>
    %12 = tpu.iota {dimensions = array<i32: 1>} : vector<256x512xi32>
    %c512_i32 = arith.constant 512 : i32
    %13 = vector.broadcast %c512_i32 : i32 to vector<256x512xi32>
    %14 = arith.muli %11, %13 : vector<256x512xi32>
    %15 = arith.addi %14, %12 : vector<256x512xi32>
    %c0_6 = arith.constant 0 : index
    %16 = memref.load %arg1[%c0_6] : memref<1xi32, #tpu.memory_space<smem>>
    %17 = vector.broadcast %16 : i32 to vector<256x512xi32>
    %18 = arith.xori %15, %17 : vector<256x512xi32>
    %19 = tpu.bitcast %18 : vector<256x512xi32> -> vector<256x512xi32>
    %c16_i32 = arith.constant 16 : i32
    %20 = vector.broadcast %c16_i32 : i32 to vector<256x512xi32>
    %21 = arith.shrui %19, %20 : vector<256x512xi32>
    %22 = arith.xori %19, %21 : vector<256x512xi32>
    %c2146121005_i32 = arith.constant 2146121005 : i32
    %23 = vector.broadcast %c2146121005_i32 : i32 to vector<256x512xi32>
    %24 = arith.muli %22, %23 : vector<256x512xi32>
    %c15_i32 = arith.constant 15 : i32
    %25 = vector.broadcast %c15_i32 : i32 to vector<256x512xi32>
    %26 = arith.shrui %24, %25 : vector<256x512xi32>
    %27 = arith.xori %24, %26 : vector<256x512xi32>
    %c-2073254261_i32 = arith.constant -2073254261 : i32
    %28 = vector.broadcast %c-2073254261_i32 : i32 to vector<256x512xi32>
    %29 = arith.muli %27, %28 : vector<256x512xi32>
    %c16_i32_7 = arith.constant 16 : i32
    %30 = vector.broadcast %c16_i32_7 : i32 to vector<256x512xi32>
    %31 = arith.shrui %29, %30 : vector<256x512xi32>
    %32 = arith.xori %29, %31 : vector<256x512xi32>
    %c-1640531527_i32 = arith.constant -1640531527 : i32
    %33 = vector.broadcast %c-1640531527_i32 : i32 to vector<256x512xi32>
    %34 = arith.xori %32, %33 : vector<256x512xi32>
    %c16_i32_8 = arith.constant 16 : i32
    %35 = vector.broadcast %c16_i32_8 : i32 to vector<256x512xi32>
    %36 = arith.shrui %34, %35 : vector<256x512xi32>
    %37 = arith.xori %34, %36 : vector<256x512xi32>
    %c2146121005_i32_9 = arith.constant 2146121005 : i32
    %38 = vector.broadcast %c2146121005_i32_9 : i32 to vector<256x512xi32>
    %39 = arith.muli %37, %38 : vector<256x512xi32>
    %c15_i32_10 = arith.constant 15 : i32
    %40 = vector.broadcast %c15_i32_10 : i32 to vector<256x512xi32>
    %41 = arith.shrui %39, %40 : vector<256x512xi32>
    %42 = arith.xori %39, %41 : vector<256x512xi32>
    %c-2073254261_i32_11 = arith.constant -2073254261 : i32
    %43 = vector.broadcast %c-2073254261_i32_11 : i32 to vector<256x512xi32>
    %44 = arith.muli %42, %43 : vector<256x512xi32>
    %c16_i32_12 = arith.constant 16 : i32
    %45 = vector.broadcast %c16_i32_12 : i32 to vector<256x512xi32>
    %46 = arith.shrui %44, %45 : vector<256x512xi32>
    %47 = arith.xori %44, %46 : vector<256x512xi32>
    %c429496730_i32 = arith.constant 429496730 : i32
    %48 = vector.broadcast %c429496730_i32 : i32 to vector<256x512xi32>
    %49 = arith.cmpi uge, %47, %48 : vector<256x512xi32>
    %cst_13 = arith.constant 0.000000e+00 : f32
    %50 = vector.broadcast %cst_13 : f32 to vector<256x512xf32>
    %51 = arith.select %49, %7, %50 : vector<256x512xi1>, vector<256x512xf32>
    %c0_14 = arith.constant 0 : index
    %c0_15 = arith.constant 0 : index
    %52 = vector.load %arg5[%c0_14, %c0_15] : memref<512x128xf32, #tpu.memory_space<vmem>>, vector<512x128xf32>
    %cst_16 = arith.constant dense<0.000000e+00> : vector<256x128xf32>
    %53 = tpu.matmul %51, %52, %cst_16 {dimension_numbers = #tpu.dot_dimension_numbers<[1], [0], [0], [1], [0, 0, 1, 1], [], []>} : vector<256x512xf32>, vector<512x128xf32>, vector<256x128xf32> -> vector<256x128xf32>
    %c0_17 = arith.constant 0 : index
    %c0_18 = arith.constant 0 : index
    %54 = vector.load %arg6[%c0_17, %c0_18] : memref<1x128xf32, #tpu.memory_space<vmem>>, vector<1x128xf32>
    %55 = vector.broadcast %54 : vector<1x128xf32> to vector<256x128xf32>
    %56 = arith.addf %53, %55 : vector<256x128xf32>
    %c0_19 = arith.constant 0 : index
    %c0_20 = arith.constant 0 : index
    %57 = vector.load %arg7[%c0_19, %c0_20] : memref<256x128xf32, #tpu.memory_space<vmem>>, vector<256x128xf32>
    tpu.vector_store %arg7[%c0_19, %c0_20], %56 {strides = array<i32>} : memref<256x128xf32, #tpu.memory_space<vmem>>, vector<256x128xf32>,
    return
  }
  func.func @transform_0(%arg0: i32, %arg1: memref<1xi32, #tpu.memory_space<smem>>) -> (i32, i32) {
    %c0_i32 = arith.constant 0 : i32
    %c0_i32_0 = arith.constant 0 : i32
    return %arg0, %c0_i32 : i32, i32
  }
  func.func @transform_1(%arg0: i32, %arg1: memref<1xi32, #tpu.memory_space<smem>>) -> (i32, i32) {
    %c0_i32 = arith.constant 0 : i32
    %c0_i32_0 = arith.constant 0 : i32
    %c0_i32_1 = arith.constant 0 : i32
    return %c0_i32, %c0_i32_0 : i32, i32
  }
  func.func @transform_2(%arg0: i32, %arg1: memref<1xi32, #tpu.memory_space<smem>>) -> (i32, i32) {
    %c0_i32 = arith.constant 0 : i32
    %c0_i32_0 = arith.constant 0 : i32
    %c0_i32_1 = arith.constant 0 : i32
    return %c0_i32, %c0_i32_0 : i32, i32
  }
  func.func @transform_3(%arg0: i32, %arg1: memref<1xi32, #tpu.memory_space<smem>>) -> (i32, i32) {
    %c0_i32 = arith.constant 0 : i32
    %c0_i32_0 = arith.constant 0 : i32
    %c0_i32_1 = arith.constant 0 : i32
    return %c0_i32, %c0_i32_0 : i32, i32
  }
  func.func @transform_4(%arg0: i32, %arg1: memref<1xi32, #tpu.memory_space<smem>>) -> (i32, i32) {
    %c0_i32 = arith.constant 0 : i32
    %c0_i32_0 = arith.constant 0 : i32
    %c0_i32_1 = arith.constant 0 : i32
    return %c0_i32, %c0_i32_0 : i32, i32
  }
  func.func @transform_5(%arg0: i32, %arg1: memref<1xi32, #tpu.memory_space<smem>>) -> (i32, i32) {
    %c0_i32 = arith.constant 0 : i32
    %c0_i32_0 = arith.constant 0 : i32
    return %arg0, %c0_i32 : i32, i32
  }
}

</mosaic_0001>

<bundles_post_ra>
// kernel: tpu_custom_call.1
= control target key start
LH: loop header
LB: loop body
LE: loop exit
PB: predicated region body
PF: predicated region fallthrough
CT: control target
= control target key end

     0   :  { %s7309_s0 = inlined_call_operand.<no memory space> [shape: s32[1], index: 0, kind: input, shape index: {}]   ;;  %s7310_s1 = inlined_call_operand.hbm [shape: f32[512,128], index: 1, kind: input, shape index: {}]   ;;  %s7311_s2 = inlined_call_operand.hbm [shape: f32[128,512], index: 2, kind: input, shape index: {}]   ;;  %s7312_s3 = inlined_call_operand.vmem [shape: f32[1,512], index: 3, kind: input, shape index: {}]   ;;  %s7313_s4 = inlined_call_operand.hbm [shape: f32[512,128], index: 4, kind: input, shape index: {}]   ;;  %s7314_s5 = inlined_call_operand.vmem [shape: f32[1,128], index: 5, kind: input, shape index: {}]   ;;  %s7315_s6 = inlined_call_operand.hbm [shape: f32[512,128], index: 6, kind: output, shape index: {}]  }
   0x1   :  { %11 = sst [smem:[#allocation3]] %s7309_s0 }
   0x2   :  { %12 = vsyncpa [#allocation5], 0 }
   0x3   :  { %14 = vsyncpa [#allocation5 + $0x1], 0 }
   0x4   :  { %15 = vsyncpa [#allocation8], 0 }
   0x5   :  { %16 = vsyncpa [#allocation6], 0 }
   0x6   :  { %18 = vsyncpa [#allocation6 + $0x1], 0  ;;  %s5146_s23 = smov 0   ;;  %s5148_s24 = smov 0  }
   0x7   :  { %s5150_s25 = smov 0   ;;  %s5152_s26 = smov 0  }
   0x8 LB: > { %s5167_s0 = sadd.s32 4294967295, %s5094_s26   ;;  %s4489_s27 = sadd.s32 4294967294, %s5094_s26   ;;  %s5094_s26 = sphi %s5152_s26, %s7622_s26   ;;  %s5090_s25 = sphi %s5150_s25, %s7621_s25   ;;  %s5086_s24 = sphi %s5148_s24, %s7620_s24   ;;  %s5082_s23 = sphi %s5146_s23, %s7619_s23  }
   0x9   : > { %p44_p0 = scmp.ne.s32.totalorder %s5086_s24, %s5082_s23  ;;  %p7316_p1 = scmp.eq.s32.totalorder %s5167_s0, 0 }
   0xa   : > { %p158_p3 = scmp.eq.s32.totalorder %s4489_s27, 1  ;;  %p4490_p5 = scmp.ge.s32.totalorder %s5094_s26, 1 }
   0xb   : > { %p5176_p4 = por %p7316_p1, %p44_p0  ;;  %p165_p7 = scmp.lt.s32.totalorder %s5094_s26, 3 }
   0xc   : > { %p5181_p6 = por %p158_p3, %p44_p0  ;;  %s5096_s7 = smov [#allocation7]  }
   0xd   : > { %s7343_s28 = scalar_select %p5176_p4, 1, 0 }
   0xe   : > { %s7344_s29 = scalar_select %p5181_p6, 1, 0 }
   0xf   : > { %p5186_p8 = pnand %p4490_p5, %p165_p7  ;;  %s177_s8 = sshll.u32 %s5096_s7, 4  ;;  %s5190_s8 = int_to_ptr.vmem [resolvable:$true] %s177_s8 }
  0x10   : > { %s5097_s10 = smov [#allocation9]   ;;  %s4938_s14 = scalar_lea.hbm %s7311_s2, 8192 }
  0x11   : > { %p4875_p9 = pneg %p5186_p8  ;;  %s193_s11 = sshll.u32 %s5097_s10, 4  ;;  %s5201_s11 = int_to_ptr.vmem [resolvable:$true] %s193_s11 }
  0x12   : > { %p4939_p12 = scmp.ne.s32.totalorder %s7311_s2, %s4938_s14  ;;  %p4945_p5 = scmp.lt.u32.totalorder %s4938_s14, %s7311_s2 }
  0x13   : > { %p5197_p11 = pnand %p4875_p9, %p7316_p1 }
  0x15   : > { %p4940_p13 = pneg %p5197_p11 }
  0x17   : > { %p4941_p0 = pnand %p4940_p13, %p4939_p12 }
  0x19   : > { %p4942_p3 = pneg %p4941_p0 }
  0x1b   : > { %p4947_p7 = pnand %p4945_p5, %p4942_p3 }
  0x1d   : > { %4950 = shalt.err (!%p4947_p7)
}
  0x1e   : > { %s4951_s19 = scalar_lea.vmem %s5190_s8, 8192  ;;  %p4959_p2 = scmp.lt.s32.totalorder %s5190_s8, %s5190_s8 }
  0x1f   : > { %p4952_p9 = scmp.ne.s32.totalorder %s5190_s8, %s4951_s19  ;;  %p4960_p12 = scmp.lt.s32.totalorder %s4951_s19, %s4951_s19 }
  0x21   : > { %p4954_p10 = pnand %p4952_p9, %p4940_p13  ;;  %p4961_p0 = por %p4960_p12, %p4959_p2 }
  0x23   : > { %p4955_p1 = pneg %p4954_p10 }
  0x25   : > { %p4962_p6 = pnand %p4961_p0, %p4955_p1 }
  0x27   : > { %4965 = shalt.err (!%p4962_p6)
}
  0x28   : > { %s5098_s20 = smov 512   ;;  %s5099_s21 = smov 32  }
  0x29   : > { %4878 = dma.hbm_to_vmem [thread:$0]  (!%p5197_p11), %s7311_s2, 8192, %s5190_s8, [#allocation8], %s5098_s20, %s5098_s20, %s5099_s21  }
  0x2a   : > { %s4966_s12 = scalar_lea.hbm %s7313_s4, 8192 }
  0x2b   : > { %p4967_p2 = scmp.ne.s32.totalorder %s7313_s4, %s4966_s12  ;;  %p4973_p10 = scmp.lt.u32.totalorder %s4966_s12, %s7313_s4 }
  0x2d   : > { %p4969_p1 = pnand %p4967_p2, %p4940_p13 }
  0x2f   : > { %p4970_p6 = pneg %p4969_p1 }
  0x31   : > { %p4975_p3 = pnand %p4973_p10, %p4970_p6 }
  0x33   : > { %4978 = shalt.err (!%p4975_p3)
}
  0x34   : > { %s4979_s8 = scalar_lea.vmem %s5201_s11, 8192  ;;  %p4987_p12 = scmp.lt.s32.totalorder %s5201_s11, %s5201_s11 }
  0x35   : > { %p4980_p5 = scmp.ne.s32.totalorder %s5201_s11, %s4979_s8  ;;  %p4988_p0 = scmp.lt.s32.totalorder %s4979_s8, %s4979_s8 }
  0x37   : > { %p4982_p7 = pnand %p4980_p5, %p4940_p13  ;;  %p4989_p2 = por %p4988_p0, %p4987_p12 }
  0x39   : > { %p4983_p9 = pneg %p4982_p7 }
  0x3b   : > { %p4990_p1 = pnand %p4989_p2, %p4983_p9 }
  0x3d   : > { %4993 = shalt.err (!%p4990_p1)
}
  0x3e   : > { %s5100_s17 = smov 128   ;;  %s5101_s18 = smov 8  }
  0x3f   : > { %4881 = dma.hbm_to_vmem [thread:$0]  (!%p5197_p11), %s7313_s4, 8192, %s5201_s11, [#allocation8], %s5100_s17, %s5100_s17, %s5101_s18  }
  0x40   : > { %s5259_s21 = sadd.s32 1, %s5094_s26   ;;  %s31_s27 = sadd.s32 1, %s5090_s25 }
  0x41   : > { %s28_s22 = ssub.s32 %s5094_s26, %s5259_s21  ;;  %p38_p6 = scmp.ne.s32.totalorder %s5090_s25, %s5086_s24 }
  0x42   : > { %p29_p13 = scmp.eq.s32.totalorder %s28_s22, 0  ;;  %p39_p10 = scmp.eq.s32.totalorder %s5094_s26, 0 }
  0x43   : > { %p7347_p5 = scmp.eq.s32.totalorder %s5167_s0, 1  ;;  %p4892_p9 = scmp.lt.s32.totalorder %s5094_s26, 2 }
  0x44   : > { %s5268_s7 = scalar_select %p29_p13, %s5090_s25, %s31_s27  }
  0x45   : > { %p40_p3 = por %p39_p10, %p38_p6  ;;  %p5272_p7 = por %p7347_p5, %p38_p6 }
  0x46   : > { %s210_s10 = sand.u32 1, %s5090_s25   ;;  %s4637_s11 = sshll.u32 %s5094_s26, 12 }
  0x47   : > { %s7348_s9 = scalar_select %p5272_p7, 1, 0 }
  0x48   : > { %s4494_s12 = sshll.u32 %s210_s10, 8  ;;  %s5282_s15 = scalar_lea.hbm %s7310_s1, %s4637_s11 }
  0x49   : > { %s214_s16 = scalar_lea.vmem [#allocation4], %s4494_s12  ;;  %p5286_p11 = pnand %p4892_p9, %p40_p3 }
  0x4a   : > { %s221_s8 = sshll.u32 %s214_s16, 4  ;;  %s5290_s20 = scalar_lea.sflag [#allocation5], %s210_s10  ;;  %s5284_s8 = int_to_ptr.vmem [resolvable:$true] %s221_s8 }
  0x4b   : > { %s4994_s22 = scalar_lea.hbm %s5282_s15, 4096  ;;  %p4996_p0 = pneg %p5286_p11 }
  0x4c   : > { %p4995_p12 = scmp.ne.s32.totalorder %s5282_s15, %s4994_s22  ;;  %s4999_s11 = scalar_lea.hbm %s7310_s1, 8192 }
  0x4d   : > { %p5000_p13 = scmp.lt.u32.totalorder %s5282_s15, %s7310_s1  ;;  %p5001_p6 = scmp.lt.u32.totalorder %s4999_s11, %s4994_s22 }
  0x4e   : > { %p4997_p2 = pnand %p4996_p0, %p4995_p12  ;;  %p5003_p3 = scmp.lt.u32.totalorder %s4994_s22, %s5282_s15 }
  0x4f   : > { %p5002_p10 = por %p5001_p6, %p5000_p13 }
  0x50   : > { %p4998_p1 = pneg %p4997_p2 }
  0x51   : > { %p5004_p5 = por %p5003_p3, %p5002_p10 }
  0x53   : > { %p5005_p9 = pnand %p5004_p5, %p4998_p1 }
  0x55   : > { %5008 = shalt.err (!%p5005_p9)
}
  0x56   : > { %s5009_s10 = scalar_lea.vmem %s5284_s8, 4096  ;;  %s5102_s16 = smov [#allocation4]  }
  0x57   : > { %p5010_p12 = scmp.ne.s32.totalorder %s5284_s8, %s5009_s10  ;;  %s5014_s27 = sshll.u32 %s5102_s16, 4  ;;  %s5015_s27 = int_to_ptr.vmem [resolvable:$false] %s5014_s27 }
  0x58   : > { %s5016_s12 = scalar_lea.vmem %s5015_s27, 8192  ;;  %p5017_p4 = scmp.lt.s32.totalorder %s5284_s8, %s5015_s27 }
  0x59   : > { %p5012_p2 = pnand %p5010_p12, %p4996_p0  ;;  %p5018_p13 = scmp.lt.s32.totalorder %s5016_s12, %s5009_s10 }
  0x5b   : > { %p5013_p7 = pneg %p5012_p2  ;;  %p5019_p6 = por %p5018_p13, %p5017_p4 }
  0x5d   : > { %p5020_p10 = pnand %p5019_p6, %p5013_p7 }
  0x5f   : > { %5023 = shalt.err (!%p5020_p10)
}
  0x60   : > { %4885 = dma.hbm_to_vmem [thread:$0]  (!%p5286_p11), %s5282_s15, 4096, %s5284_s8, %s5290_s20, %s5100_s17, %s5100_s17, %s5101_s18  }
  0x61   : > { %233 = sbr.rel (%p5186_p8) target bundleno = 1190 (0x4a6), region = 40 }
  0x68   : > { %s5324_s22 = sand.u32 1, %s5086_s24   ;;  %p7350_p4 = scmp.ne.s32.totalorder %s7343_s28, 0 }
  0x69   : > { %s4498_s11 = sshll.u32 %s5324_s22, 8  ;;  %s236_s13 = scalar_lea.sflag [#allocation5], %s5324_s22 }
  0x6a   : > { %s5330_s19 = scalar_lea.vmem [#allocation4], %s4498_s11 }
  0x6b   : > { %5069 = dma.done.wait (%p7350_p4), %s236_s13, 4096  }
  0x6c   : > { %5071 = vsyncadd (%p7350_p4), %s236_s13, 4294963200  ;;  %p7351_p7 = scmp.eq.s32.totalorder %s5167_s0, 0 }
  0x6e   : > { %5073 = dma.done.wait (%p7351_p7), [#allocation8], 16384   ;;  %p7352_p8 = pmov %p7351_p7 }
  0x6f   : > { %v5103_v0 = vmov 0.0   ;;  %v309_v1 = vld [vmem:[#allocation7 + $0x8] sm:$0xff]  ;;  %v311_v3 = vld [vmem:[#allocation7 + $0x18] sm:$0xff]  ;;  %v308_v6 = vld [vmem:[#allocation7] sm:$0xff]  ;;  %s4502_s28 = sshll.u32 %s5167_s0, 8  ;;  %s5408_s30 = sld [smem:[#allocation3]] }
  0x70   : > { %5075 = vsyncadd (%p7352_p8), [#allocation8], 4294950912  ;;  %458 = vmatprep.mubr.f32.mxu0 %v5103_v0  ;;  %715 = vmatprep.mubr.f32.mxu1 %v5103_v0  ;;  %v313_v2 = vld [vmem:[#allocation7 + $0x28] sm:$0xff]  ;;  %v315_v5 = vld [vmem:[#allocation7 + $0x38] sm:$0xff]  ;;  %s7107_s20 = scalar_lea.vmem [#allocation10], %s4498_s11  ;;  %s4638_s14 = sshll.u32 %s5167_s0, 12 }
  0x71   : > { %v4639_v4 = vpack.c.bf16 %v313_v2, %v309_v1  ;;  %v312_v7 = vld [vmem:[#allocation7 + $0x20] sm:$0xff]  ;;  %v4671_v8 = vpack.c.bf16 %v315_v5, %v311_v3  ;;  %v310_v10 = vld [vmem:[#allocation7 + $0x10] sm:$0xff]  ;;  %v317_v12 = vld [vmem:[#allocation7 + $0x48] sm:$0xff]  ;;  %s4397_s10 = sshll.u32 %s7107_s20, 4  ;;  %s7262_s12 = scalar_lea.hbm %s7315_s6, %s4638_s14  ;;  %s7264_s10 = int_to_ptr.vmem [resolvable:$true] %s4397_s10 }
  0x72   : > { %v4641_v9 = vpack.c.bf16 %v312_v7, %v308_v6  ;;  %v314_v11 = vld [vmem:[#allocation7 + $0x30] sm:$0xff]  ;;  %v321_v14 = vld [vmem:[#allocation7 + $0x68] sm:$0xff]  ;;  %v319_v15 = vld [vmem:[#allocation7 + $0x58] sm:$0xff]  ;;  %s4384_s0 = scalar_lea.sflag [#allocation6], %s5324_s22  ;;  %s5024_s11 = scalar_lea.vmem %s7264_s10, 4096 }
  0x73   : > { %4640 = vmatprep.subr.bf16.mxu0 %v4639_v4  ;;  %v4673_v13 = vpack.c.bf16 %v314_v11, %v310_v10  ;;  %v323_v16 = vld [vmem:[#allocation7 + $0x78] sm:$0xff]  ;;  %4672 = vmatprep.subr.bf16.mxu1 %v4671_v8  ;;  %v4643_v17 = vpack.c.bf16 %v321_v14, %v317_v12  ;;  %v316_v19 = vld [vmem:[#allocation7 + $0x40] sm:$0xff]  ;;  %v318_v21 = vld [vmem:[#allocation7 + $0x50] sm:$0xff]  ;;  %p5025_p11 = scmp.ne.s32.totalorder %s7264_s10, %s5024_s11  ;;  %p7616_p0 = scmp.ne.s32.totalorder %s7348_s9, 0 }
  0x74   : > { %4642 = vmatpush1.bf16.msra.mxu0 %v4641_v9  ;;  %v4675_v18 = vpack.c.bf16 %v323_v16, %v319_v15  ;;  %v320_v20 = vld [vmem:[#allocation7 + $0x60] sm:$0xff]  ;;  %v322_v23 = vld [vmem:[#allocation7 + $0x70] sm:$0xff]  ;;  %v325_v24 = vld [vmem:[#allocation7 + $0x88] sm:$0xff]  ;;  %s5105_s13 = smov [#allocation10]  }
  0x75   : > { %4674 = vmatpush1.bf16.msra.mxu1 %v4673_v13  ;;  %v4645_v22 = vpack.c.bf16 %v320_v20, %v316_v19  ;;  %v329_v25 = vld [vmem:[#allocation7 + $0xa8] sm:$0xff]  ;;  %4644 = vmatprep.subr.bf16.mxu0 %v4643_v17  ;;  %v4677_v26 = vpack.c.bf16 %v322_v23, %v318_v21  ;;  %v327_v28 = vld [vmem:[#allocation7 + $0x98] sm:$0xff]  ;;  %v324_v30 = vld [vmem:[#allocation7 + $0x80] sm:$0xff]  ;;  %p5026_p1 = pnand %p5025_p11, %p7616_p0 }
  0x76   : > { %4676 = vmatprep.subr.bf16.mxu1 %v4675_v18  ;;  %v4647_v27 = vpack.c.bf16 %v329_v25, %v325_v24  ;;  %v331_v29 = vld [vmem:[#allocation7 + $0xb8] sm:$0xff]  ;;  %v328_v32 = vld [vmem:[#allocation7 + $0xa0] sm:$0xff]  ;;  %v326_v33 = vld [vmem:[#allocation7 + $0x90] sm:$0xff] }
  0x77   : > { %v4679_v31 = vpack.c.bf16 %v331_v29, %v327_v28  ;;  %v330_v34 = vld [vmem:[#allocation7 + $0xb0] sm:$0xff]  ;;  %v4649_v35 = vpack.c.bf16 %v328_v32, %v324_v30  ;;  %v333_v36 = vld [vmem:[#allocation7 + $0xc8] sm:$0xff]  ;;  %v335_v38 = vld [vmem:[#allocation7 + $0xd8] sm:$0xff]  ;;  %p5027_p3 = pneg %p5026_p1 }
  0x78   : > { %4646 = vmatpush1.bf16.msra.mxu0 %v4645_v22  ;;  %v337_v37 = vld [vmem:[#allocation7 + $0xe8] sm:$0xff]  ;;  %v4681_v39 = vpack.c.bf16 %v330_v34, %v326_v33  ;;  %v339_v41 = vld [vmem:[#allocation7 + $0xf8] sm:$0xff]  ;;  %v332_v42 = vld [vmem:[#allocation7 + $0xc0] sm:$0xff] }
  0x79   : > { %4678 = vmatpush1.bf16.msra.mxu1 %v4677_v26  ;;  %4648 = vmatprep.subr.bf16.mxu0 %v4647_v27  ;;  %v4651_v40 = vpack.c.bf16 %v337_v37, %v333_v36  ;;  %v336_v43 = vld [vmem:[#allocation7 + $0xe0] sm:$0xff]  ;;  %v4683_v44 = vpack.c.bf16 %v339_v41, %v335_v38  ;;  %v334_v45 = vld [vmem:[#allocation7 + $0xd0] sm:$0xff]  ;;  %v341_v47 = vld [vmem:[#allocation7 + $0x108] sm:$0xff] }
  0x7a   : > { %4680 = vmatprep.subr.bf16.mxu1 %v4679_v31  ;;  %v338_v46 = vld [vmem:[#allocation7 + $0xf0] sm:$0xff]  ;;  %v345_v48 = vld [vmem:[#allocation7 + $0x128] sm:$0xff]  ;;  %v343_v49 = vld [vmem:[#allocation7 + $0x118] sm:$0xff]  ;;  %v4653_v51 = vpack.c.bf16 %v336_v43, %v332_v42 }
  0x7b   : > { %v347_v50 = vld [vmem:[#allocation7 + $0x138] sm:$0xff]  ;;  %v4685_v52 = vpack.c.bf16 %v338_v46, %v334_v45  ;;  %v4655_v53 = vpack.c.bf16 %v345_v48, %v341_v47  ;;  %v340_v54 = vld [vmem:[#allocation7 + $0x100] sm:$0xff]  ;;  %v342_v56 = vld [vmem:[#allocation7 + $0x110] sm:$0xff] }
  0x7c   : > { %4650 = vmatpush1.bf16.msra.mxu0 %v4649_v35  ;;  %v344_v55 = vld [vmem:[#allocation7 + $0x120] sm:$0xff]  ;;  %v4687_v57 = vpack.c.bf16 %v347_v50, %v343_v49  ;;  %v346_v58 = vld [vmem:[#allocation7 + $0x130] sm:$0xff]  ;;  %v349_v59 = vld [vmem:[#allocation7 + $0x148] sm:$0xff] }
  0x7d   : > { %4682 = vmatpush1.bf16.msra.mxu1 %v4681_v39  ;;  %4652 = vmatprep.subr.bf16.mxu0 %v4651_v40  ;;  %v353_v60 = vld [vmem:[#allocation7 + $0x168] sm:$0xff]  ;;  %v351_v61 = vld [vmem:[#allocation7 + $0x158] sm:$0xff]  ;;  %v4657_v63 = vpack.c.bf16 %v344_v55, %v340_v54  ;;  %v4689_v1 = vpack.c.bf16 %v346_v58, %v342_v56  ;;  %v348_v3 = vld [vmem:[#allocation7 + $0x140] sm:$0xff]  ;;  %v5104_v40 = vmov 0.0|0.0  }
  0x7e   : > { %4684 = vmatprep.subr.bf16.mxu1 %v4683_v44  ;;  %v355_v62 = vld [vmem:[#allocation7 + $0x178] sm:$0xff]  ;;  %v4659_v2 = vpack.c.bf16 %v353_v60, %v349_v59  ;;  %v352_v4 = vld [vmem:[#allocation7 + $0x160] sm:$0xff]  ;;  %v350_v5 = vld [vmem:[#allocation7 + $0x150] sm:$0xff] }
  0x7f   : > { %v4691_v6 = vpack.c.bf16 %v355_v62, %v351_v61  ;;  %v354_v7 = vld [vmem:[#allocation7 + $0x170] sm:$0xff]  ;;  %v357_v8 = vld [vmem:[#allocation7 + $0x188] sm:$0xff]  ;;  %v359_v10 = vld [vmem:[#allocation7 + $0x198] sm:$0xff]  ;;  %v4661_v12 = vpack.c.bf16 %v352_v4, %v348_v3 }
  0x80   : > { %4654 = vmatpush1.bf16.msra.mxu0 %v4653_v51  ;;  %v361_v9 = vld [vmem:[#allocation7 + $0x1a8] sm:$0xff]  ;;  %v363_v11 = vld [vmem:[#allocation7 + $0x1b8] sm:$0xff]  ;;  %v4693_v13 = vpack.c.bf16 %v354_v7, %v350_v5  ;;  %v356_v15 = vld [vmem:[#allocation7 + $0x180] sm:$0xff] }
  0x81   : > { %4686 = vmatpush1.bf16.msra.mxu1 %v4685_v52  ;;  %4656 = vmatprep.subr.bf16.mxu0 %v4655_v53  ;;  %v4663_v14 = vpack.c.bf16 %v361_v9, %v357_v8  ;;  %v360_v16 = vld [vmem:[#allocation7 + $0x1a0] sm:$0xff]  ;;  %v358_v17 = vld [vmem:[#allocation7 + $0x190] sm:$0xff]  ;;  %v4695_v18 = vpack.c.bf16 %v363_v11, %v359_v10  ;;  %v365_v20 = vld [vmem:[#allocation7 + $0x1c8] sm:$0xff] }
  0x82   : > { %4688 = vmatprep.subr.bf16.mxu1 %v4687_v57  ;;  %v362_v19 = vld [vmem:[#allocation7 + $0x1b0] sm:$0xff]  ;;  %v369_v21 = vld [vmem:[#allocation7 + $0x1e8] sm:$0xff]  ;;  %v367_v22 = vld [vmem:[#allocation7 + $0x1d8] sm:$0xff]  ;;  %v4665_v24 = vpack.c.bf16 %v360_v16, %v356_v15 }
  0x83   : > { %v371_v23 = vld [vmem:[#allocation7 + $0x1f8] sm:$0xff]  ;;  %v4697_v25 = vpack.c.bf16 %v362_v19, %v358_v17  ;;  %v4667_v26 = vpack.c.bf16 %v369_v21, %v365_v20  ;;  %v364_v27 = vld [vmem:[#allocation7 + $0x1c0] sm:$0xff]  ;;  %v366_v30 = vld [vmem:[#allocation7 + $0x1d0] sm:$0xff] }
  0x84   : > { %4658 = vmatpush1.bf16.msra.mxu0 %v4657_v63  ;;  %v368_v28 = vld [vmem:[#allocation7 + $0x1e0] sm:$0xff]  ;;  %v4699_v29 = vpack.c.bf16 %v371_v23, %v367_v22  ;;  %v370_v31 = vld [vmem:[#allocation7 + $0x1f0] sm:$0xff]  ;;  %v3831_v35 = vld [vmem:[#allocation9 + $0x8] sm:$0xff] }
  0x85   : > { %4690 = vmatpush1.bf16.msra.mxu1 %v4689_v1  ;;  %4660 = vmatprep.subr.bf16.mxu0 %v4659_v2  ;;  %v4669_v32 = vpack.c.bf16 %v368_v28, %v364_v27  ;;  %v4701_v33 = vpack.c.bf16 %v370_v31, %v366_v30  ;;  %v3830_v34 = vld [vmem:[#allocation9] sm:$0xff]  ;;  %v3863_v37 = vld [vmem:[#allocation9 + $0x108] sm:$0xff]  ;;  %v3832_v42 = vld [vmem:[#allocation9 + $0x10] sm:$0xff] }
  0x86   : > { %4692 = vmatprep.subr.bf16.mxu1 %v4691_v6  ;;  %v3862_v36 = vld [vmem:[#allocation9 + $0x100] sm:$0xff]  ;;  %v4704_v39 = vpack.c.bf16 %v3831_v35, %v3830_v34  ;;  %v3833_v43 = vld [vmem:[#allocation9 + $0x18] sm:$0xff]  ;;  %v3864_v44 = vld [vmem:[#allocation9 + $0x110] sm:$0xff] }
  0x87   : > { %v276_v38 = vld [vmem:[%s5330_s19] sm:$0xff]  ;;  %v4752_v41 = vpack.c.bf16 %v3863_v37, %v3862_v36  ;;  %v3865_v45 = vld [vmem:[#allocation9 + $0x118] sm:$0xff]  ;;  %v277_v46 = vld [vmem:[%s5330_s19 + $0x8] sm:$0xff]  ;;  %v4707_v47 = vpack.c.bf16 %v3833_v43, %v3832_v42 }
  0x88   : > { %4662 = vmatpush1.bf16.msra.mxu0 %v4661_v12  ;;  %v4755_v48 = vpack.c.bf16 %v3865_v45, %v3864_v44  ;;  %v3834_v49 = vld [vmem:[#allocation9 + $0x20] sm:$0xff]  ;;  %v3835_v50 = vld [vmem:[#allocation9 + $0x28] sm:$0xff]  ;;  %v278_v53 = vld [vmem:[%s5330_s19 + $0x10] sm:$0xff] }
  0x89   : > { %4694 = vmatpush1.bf16.msra.mxu1 %v4693_v13  ;;  %4664 = vmatprep.subr.bf16.mxu0 %v4663_v14  ;;  %v3866_v51 = vld [vmem:[#allocation9 + $0x120] sm:$0xff]  ;;  %v3867_v52 = vld [vmem:[#allocation9 + $0x128] sm:$0xff]  ;;  %v4710_v54 = vpack.c.bf16 %v3835_v50, %v3834_v49  ;;  %v3836_v56 = vld [vmem:[#allocation9 + $0x30] sm:$0xff] }
  0x8a   : > { %4696 = vmatprep.subr.bf16.mxu1 %v4695_v18  ;;  %v4758_v55 = vpack.c.bf16 %v3867_v52, %v3866_v51  ;;  %v3837_v57 = vld [vmem:[#allocation9 + $0x38] sm:$0xff]  ;;  %v3868_v58 = vld [vmem:[#allocation9 + $0x130] sm:$0xff]  ;;  %v3838_v63 = vld [vmem:[#allocation9 + $0x40] sm:$0xff]  ;;  %v374_v52 = vlaneseq }
  0x8b   : > { %v3869_v59 = vld [vmem:[#allocation9 + $0x138] sm:$0xff]  ;;  %v4713_v61 = vpack.c.bf16 %v3837_v57, %v3836_v56  ;;  %v3839_v1 = vld [vmem:[#allocation9 + $0x48] sm:$0xff]  ;;  %v3870_v2 = vld [vmem:[#allocation9 + $0x140] sm:$0xff] }
  0x8c   : > { %4666 = vmatpush1.bf16.msra.mxu0 %v4665_v24  ;;  %v279_v60 = vld [vmem:[%s5330_s19 + $0x18] sm:$0xff]  ;;  %v4761_v62 = vpack.c.bf16 %v3869_v59, %v3868_v58  ;;  %v3871_v3 = vld [vmem:[#allocation9 + $0x148] sm:$0xff]  ;;  %v280_v4 = vld [vmem:[%s5330_s19 + $0x20] sm:$0xff]  ;;  %v4716_v5 = vpack.c.bf16 %v3839_v1, %v3838_v63 }
  0x8d   : > { %4698 = vmatpush1.bf16.msra.mxu1 %v4697_v25  ;;  %4668 = vmatprep.subr.bf16.mxu0 %v4667_v26  ;;  %v4764_v6 = vpack.c.bf16 %v3871_v3, %v3870_v2  ;;  %v3840_v7 = vld [vmem:[#allocation9 + $0x50] sm:$0xff]  ;;  %v3841_v8 = vld [vmem:[#allocation9 + $0x58] sm:$0xff]  ;;  %v281_v11 = vld [vmem:[%s5330_s19 + $0x28] sm:$0xff]  ;;  %v5406_v3 = vstv %s4502_s28 }
  0x8e   : > { %4700 = vmatprep.subr.bf16.mxu1 %v4699_v29  ;;  %v3872_v9 = vld [vmem:[#allocation9 + $0x150] sm:$0xff]  ;;  %v3873_v10 = vld [vmem:[#allocation9 + $0x158] sm:$0xff]  ;;  %v4719_v12 = vpack.c.bf16 %v3841_v8, %v3840_v7  ;;  %v3842_v14 = vld [vmem:[#allocation9 + $0x60] sm:$0xff] }
  0x8f   : > { %v4767_v13 = vpack.c.bf16 %v3873_v10, %v3872_v9  ;;  %v3843_v15 = vld [vmem:[#allocation9 + $0x68] sm:$0xff]  ;;  %v3874_v16 = vld [vmem:[#allocation9 + $0x160] sm:$0xff]  ;;  %v282_v18 = vld [vmem:[%s5330_s19 + $0x30] sm:$0xff]  ;;  %v5413_v9 = vand.u32 127, %v374_v52 }
  0x90   : > { %4670 = vmatpush1.bf16.msra.mxu0 %v4669_v32  ;;  %v3875_v17 = vld [vmem:[#allocation9 + $0x168] sm:$0xff]  ;;  %v4722_v19 = vpack.c.bf16 %v3843_v15, %v3842_v14  ;;  %v3844_v21 = vld [vmem:[#allocation9 + $0x70] sm:$0xff]  ;;  %v3845_v22 = vld [vmem:[#allocation9 + $0x78] sm:$0xff] }
  0x91   : > { %4702 = vmatpush1.bf16.msra.mxu1 %v4701_v33  ;;  %4751 = vmatprep.subr.bf16.mxu0 %v5104_v40  ;;  %v4770_v20 = vpack.c.bf16 %v3875_v17, %v3874_v16  ;;  %v3876_v23 = vld [vmem:[#allocation9 + $0x170] sm:$0xff]  ;;  %v3877_v24 = vld [vmem:[#allocation9 + $0x178] sm:$0xff]  ;;  %v4725_v26 = vpack.c.bf16 %v3845_v22, %v3844_v21  ;;  %v3846_v28 = vld [vmem:[#allocation9 + $0x80] sm:$0xff]  ;;  %7353 = vst [vmem:[#allocation14_spill] sm:$0xff] %v5413_v9  ;;  %v5422_v15 = vadd.s32 384, %v5413_v9  ;;  %v5427_v21 = vadd.s32 256, %v5413_v9 }
  0x92   : > { %4703 = vmatprep.subr.bf16.mxu1 %v5104_v40  ;;  %v283_v25 = vld [vmem:[%s5330_s19 + $0x38] sm:$0xff]  ;;  %v4773_v27 = vpack.c.bf16 %v3877_v24, %v3876_v23  ;;  %v3847_v29 = vld [vmem:[#allocation9 + $0x88] sm:$0xff]  ;;  %v3878_v30 = vld [vmem:[#allocation9 + $0x180] sm:$0xff] }
  0x93   : > { %459 = vmatmul.mubr.f32.vlgmr.msra.gmra.mrb[0].mxu0 %v276_v38  ;;  %v3879_v31 = vld [vmem:[#allocation9 + $0x188] sm:$0xff]  ;;  %v284_v32 = vld [vmem:[%s5330_s19 + $0x40] sm:$0xff]  ;;  %v4728_v33 = vpack.c.bf16 %v3847_v29, %v3846_v28  ;;  %v3848_v35 = vld [vmem:[#allocation9 + $0x90] sm:$0xff]  ;;  %7355 = vst [vmem:[#allocation16_spill] sm:$0xff] %v5422_v15  ;;  %v5439_v28 = vstv %s5408_s30 }
  0x94   : > { %716 = vmatmul.mubr.f32.vlgmr.msra.gmra.mrb[0].mxu1 %v276_v38  ;;  %464 = vmatprep.mubr.f32.mxu0 %v5103_v0  ;;  %v4776_v34 = vpack.c.bf16 %v3879_v31, %v3878_v30  ;;  %v3849_v36 = vld [vmem:[#allocation9 + $0x98] sm:$0xff]  ;;  %v3880_v37 = vld [vmem:[#allocation9 + $0x190] sm:$0xff]  ;;  %v3850_v43 = vld [vmem:[#allocation9 + $0xa0] sm:$0xff]  ;;  %7356 = vst [vmem:[#allocation17_spill] sm:$0xff] %v5427_v21 }
  0x95   : > { %721 = vmatprep.mubr.f32.mxu1 %v5103_v0  ;;  %4705 = vmatpush1.bf16.msra.mxu1 %v4704_v39  ;;  %v3881_v38 = vld [vmem:[#allocation9 + $0x198] sm:$0xff]  ;;  %v285_v39 = vld [vmem:[%s5330_s19 + $0x48] sm:$0xff]  ;;  %v3882_v45 = vld [vmem:[#allocation9 + $0x1a0] sm:$0xff]  ;;  %7357 = vst [vmem:[#allocation18_spill] sm:$0xff] %v5439_v28 }
  0x96   : > { %4753 = vmatpush1.bf16.msra.mxu0 %v4752_v41  ;;  %4706 = vmatprep.subr.bf16.mxu1 %v5104_v40  ;;  %v4731_v41 = vpack.c.bf16 %v3849_v36, %v3848_v35  ;;  %v4779_v42 = vpack.c.bf16 %v3881_v38, %v3880_v37  ;;  %v3851_v44 = vld [vmem:[#allocation9 + $0xa8] sm:$0xff]  ;;  %v3852_v50 = vld [vmem:[#allocation9 + $0xb0] sm:$0xff]  ;;  %v3853_v51 = vld [vmem:[#allocation9 + $0xb8] sm:$0xff] }
  0x97   : > { %465 = vmatmul.mubr.f32.gmra.mrb[2].mxu0 %v277_v46  ;;  %4754 = vmatprep.subr.bf16.mxu0 %v5104_v40  ;;  %v4737_v56 = vpack.c.bf16 %v3853_v51, %v3852_v50  ;;  %v3854_v58 = vld [vmem:[#allocation9 + $0xc0] sm:$0xff]  ;;  %v3855_v59 = vld [vmem:[#allocation9 + $0xc8] sm:$0xff]  ;;  %v3856_v2 = vld [vmem:[#allocation9 + $0xd0] sm:$0xff] }
  0x98   : > { %722 = vmatmul.mubr.f32.gmra.mrb[2].mxu1 %v277_v46  ;;  %470 = vmatprep.mubr.f32.mxu0 %v5103_v0  ;;  %v3883_v46 = vld [vmem:[#allocation9 + $0x1a8] sm:$0xff]  ;;  %v288_v63 = vld [vmem:[%s5330_s19 + $0x60] sm:$0xff]  ;;  %v4740_v1 = vpack.c.bf16 %v3855_v59, %v3854_v58  ;;  %v3889_v7 = vld [vmem:[#allocation9 + $0x1d8] sm:$0xff] }
  0x99   : > { %727 = vmatprep.mubr.f32.mxu1 %v5103_v0  ;;  %4708 = vmatpush1.bf16.msra.mxu1 %v4707_v47  ;;  %v286_v47 = vld [vmem:[%s5330_s19 + $0x50] sm:$0xff]  ;;  %v4782_v49 = vpack.c.bf16 %v3883_v46, %v3882_v45  ;;  %v289_v10 = vld [vmem:[%s5330_s19 + $0x68] sm:$0xff]  ;;  %v5432_v23 = vld [vmem:[#allocation9 + $0xf8] sm:$0xff] }
  0x9a   : > { %4756 = vmatpush1.bf16.msra.mxu0 %v4755_v48  ;;  %4709 = vmatprep.subr.bf16.mxu1 %v5104_v40  ;;  %v4734_v48 = vpack.c.bf16 %v3851_v44, %v3850_v43  ;;  %v5430_v22 = vld [vmem:[#allocation9 + $0xf0] sm:$0xff] }
  0x9b   : > { %471 = vmatmul.mubr.f32.gmra.mrb[4].mxu0 %v278_v53  ;;  %4757 = vmatprep.subr.bf16.mxu0 %v5104_v40  ;;  %v290_v31 = vld [vmem:[%s5330_s19 + $0x70] sm:$0xff]  ;;  %v4749_v36 = vpack.c.bf16 %v5432_v23, %v5430_v22  ;;  %v293_v22 = vld [vmem:[%s5330_s19 + $0x88] sm:$0xff] }
  0x9c   : > { %728 = vmatmul.mubr.f32.gmra.mrb[4].mxu1 %v278_v53  ;;  %476 = vmatprep.mubr.f32.mxu0 %v5103_v0  ;;  %v3884_v53 = vld [vmem:[#allocation9 + $0x1b0] sm:$0xff] }
  0x9d   : > { %733 = vmatprep.mubr.f32.mxu1 %v5103_v0  ;;  %4711 = vmatpush1.bf16.msra.mxu1 %v4710_v54  ;;  %v3885_v54 = vld [vmem:[#allocation9 + $0x1b8] sm:$0xff] }
  0x9e   : > { %4759 = vmatpush1.bf16.msra.mxu0 %v4758_v55  ;;  %4712 = vmatprep.subr.bf16.mxu1 %v5104_v40  ;;  %v287_v55 = vld [vmem:[%s5330_s19 + $0x58] sm:$0xff]  ;;  %v4785_v57 = vpack.c.bf16 %v3885_v54, %v3884_v53 }
  0x9f   : > { %477 = vmatmul.mubr.f32.gmra.mrb[6].mxu0 %v279_v60  ;;  %4760 = vmatprep.subr.bf16.mxu0 %v5104_v40 }
  0xa0   : > { %734 = vmatmul.mubr.f32.gmra.mrb[6].mxu1 %v279_v60  ;;  %482 = vmatprep.mubr.f32.mxu0 %v5103_v0  ;;  %v5399_v60 = vshrl.u32 %v374_v52, 7 }
  0xa1   : > { %739 = vmatprep.mubr.f32.mxu1 %v5103_v0  ;;  %4714 = vmatpush1.bf16.msra.mxu1 %v4713_v61  ;;  %v3886_v61 = vld [vmem:[#allocation9 + $0x1c0] sm:$0xff] }
  0xa2   : > { %4762 = vmatpush1.bf16.msra.mxu0 %v4761_v62  ;;  %4715 = vmatprep.subr.bf16.mxu1 %v5104_v40  ;;  %v3887_v62 = vld [vmem:[#allocation9 + $0x1c8] sm:$0xff]  ;;  %v1071_v8 = vadd.s32 %v5406_v3, %v5399_v60  ;;  %v1038_v16 = vadd.s32 8, %v5399_v60 }
  0xa3   : > { %483 = vmatmul.mubr.f32.gmra.mrb[8].mxu0 %v280_v4  ;;  %4763 = vmatprep.subr.bf16.mxu0 %v5104_v40 }
  0xa4   : > { %740 = vmatmul.mubr.f32.gmra.mrb[8].mxu1 %v280_v4  ;;  %488 = vmatprep.mubr.f32.mxu0 %v5103_v0  ;;  %v4788_v4 = vpack.c.bf16 %v3887_v62, %v3886_v61  ;;  %v1108_v14 = vmul.u32 512, %v1071_v8 }
  0xa5   : > { %745 = vmatprep.mubr.f32.mxu1 %v5103_v0  ;;  %4717 = vmatpush1.bf16.msra.mxu1 %v4716_v5  ;;  %v3857_v5 = vld [vmem:[#allocation9 + $0xd8] sm:$0xff] }
  0xa6   : > { %4765 = vmatpush1.bf16.msra.mxu0 %v4764_v6  ;;  %4718 = vmatprep.subr.bf16.mxu1 %v5104_v40  ;;  %v3888_v6 = vld [vmem:[#allocation9 + $0x1d0] sm:$0xff]  ;;  %v4743_v17 = vpack.c.bf16 %v3857_v5, %v3856_v2  ;;  %v1140_v29 = vadd.s32 %v1108_v14, %v5413_v9  ;;  %v1142_v30 = vadd.s32 %v1108_v14, %v5427_v21 }
  0xa7   : > { %489 = vmatmul.mubr.f32.gmra.mrb[10].mxu0 %v281_v11  ;;  %4766 = vmatprep.subr.bf16.mxu0 %v5104_v40 }
  0xa8   : > { %746 = vmatmul.mubr.f32.gmra.mrb[10].mxu1 %v281_v11  ;;  %494 = vmatprep.mubr.f32.mxu0 %v5103_v0  ;;  %v3858_v11 = vld [vmem:[#allocation9 + $0xe0] sm:$0xff]  ;;  %v1270_v37 = vxor.u32 %v5439_v28, %v1140_v29  ;;  %v1272_v38 = vxor.u32 %v5439_v28, %v1142_v30 }
  0xa9   : > { %751 = vmatprep.mubr.f32.mxu1 %v5103_v0  ;;  %4720 = vmatpush1.bf16.msra.mxu1 %v4719_v12  ;;  %v3859_v12 = vld [vmem:[#allocation9 + $0xe8] sm:$0xff] }
  0xaa   : > { %4768 = vmatpush1.bf16.msra.mxu0 %v4767_v13  ;;  %4721 = vmatprep.subr.bf16.mxu1 %v5104_v40  ;;  %v5419_v13 = vadd.s32 128, %v5413_v9  ;;  %v1398_v44 = vshrl.u32 %v1270_v37, 16  ;;  %v1400_v45 = vshrl.u32 %v1272_v38, 16 }
  0xab   : > { %495 = vmatmul.mubr.f32.gmra.mrb[12].mxu0 %v282_v18  ;;  %4769 = vmatprep.subr.bf16.mxu0 %v5104_v40 }
  0xac   : > { %752 = vmatmul.mubr.f32.gmra.mrb[12].mxu1 %v282_v18  ;;  %500 = vmatprep.mubr.f32.mxu0 %v5103_v0  ;;  %7354 = vst [vmem:[#allocation15_spill] sm:$0xff] %v5419_v13  ;;  %v4791_v18 = vpack.c.bf16 %v3889_v7, %v3888_v6  ;;  %v1141_v24 = vadd.s32 %v1108_v14, %v5419_v13 }
  0xad   : > { %757 = vmatprep.mubr.f32.mxu1 %v5103_v0  ;;  %4723 = vmatpush1.bf16.msra.mxu1 %v4722_v19  ;;  %v3890_v19 = vld [vmem:[#allocation9 + $0x1e0] sm:$0xff]  ;;  %v1526_v52 = vxor.u32 %v1398_v44, %v1270_v37  ;;  %v1528_v53 = vxor.u32 %v1400_v45, %v1272_v38  ;;  %v294_v38 = vld [vmem:[%s5330_s19 + $0x90] sm:$0xff] }
  0xae   : > { %4771 = vmatpush1.bf16.msra.mxu0 %v4770_v20  ;;  %4724 = vmatprep.subr.bf16.mxu1 %v5104_v40  ;;  %v3891_v20 = vld [vmem:[#allocation9 + $0x1e8] sm:$0xff] }
  0xaf   : > { %501 = vmatmul.mubr.f32.gmra.mrb[14].mxu0 %v283_v25  ;;  %4772 = vmatprep.subr.bf16.mxu0 %v5104_v40  ;;  %v1654_v59 = vmul.u32 2146121005, %v1526_v52  ;;  %v1656_v61 = vmul.u32 2146121005, %v1528_v53 }
  0xb0   : > { %758 = vmatmul.mubr.f32.gmra.mrb[14].mxu1 %v283_v25  ;;  %506 = vmatprep.mubr.f32.mxu0 %v5103_v0  ;;  %v1143_v25 = vadd.s32 %v1108_v14, %v5422_v15 }
  0xb1   : > { %763 = vmatprep.mubr.f32.mxu1 %v5103_v0  ;;  %4726 = vmatpush1.bf16.msra.mxu1 %v4725_v26  ;;  %v1072_v26 = vadd.s32 %v5406_v3, %v1038_v16  ;;  %v1782_v7 = vshrl.u32 %v1654_v59, 15  ;;  %v1784_v8 = vshrl.u32 %v1656_v61, 15 }
  0xb2   : > { %4774 = vmatpush1.bf16.msra.mxu0 %v4773_v27  ;;  %4727 = vmatprep.subr.bf16.mxu1 %v5104_v40  ;;  %v4746_v27 = vpack.c.bf16 %v3859_v12, %v3858_v11 }
  0xb3   : > { %507 = vmatmul.mubr.f32.gmra.mrb[16].mxu0 %v284_v32  ;;  %4775 = vmatprep.subr.bf16.mxu0 %v5104_v40  ;;  %v1109_v35 = vmul.u32 512, %v1072_v26 }
  0xb4   : > { %764 = vmatmul.mubr.f32.gmra.mrb[16].mxu1 %v284_v32  ;;  %512 = vmatprep.mubr.f32.mxu0 %v5103_v0  ;;  %v4794_v32 = vpack.c.bf16 %v3891_v20, %v3890_v19 }
  0xb5   : > { %769 = vmatprep.mubr.f32.mxu1 %v5103_v0  ;;  %4729 = vmatpush1.bf16.msra.mxu1 %v4728_v33  ;;  %v1271_v33 = vxor.u32 %v5439_v28, %v1141_v24  ;;  %v1147_v43 = vadd.s32 %v1109_v35, %v5422_v15  ;;  %v1144_v46 = vadd.s32 %v1109_v35, %v5413_v9 }
  0xb6   : > { %4777 = vmatpush1.bf16.msra.mxu0 %v4776_v34  ;;  %4730 = vmatprep.subr.bf16.mxu1 %v5104_v40  ;;  %v1273_v34 = vxor.u32 %v5439_v28, %v1143_v25 }
  0xb7   : > { %513 = vmatmul.mubr.f32.gmra.mrb[18].mxu0 %v285_v39  ;;  %4778 = vmatprep.subr.bf16.mxu0 %v5104_v40  ;;  %v1277_v54 = vxor.u32 %v5439_v28, %v1147_v43  ;;  %v1274_v58 = vxor.u32 %v5439_v28, %v1144_v46 }
  0xb8   : > { %770 = vmatmul.mubr.f32.gmra.mrb[18].mxu1 %v285_v39  ;;  %518 = vmatprep.mubr.f32.mxu0 %v5103_v0  ;;  %v1399_v39 = vshrl.u32 %v1271_v33, 16 }
  0xb9   : > { %775 = vmatprep.mubr.f32.mxu1 %v5103_v0  ;;  %4732 = vmatpush1.bf16.msra.mxu1 %v4731_v41  ;;  %v1401_v41 = vshrl.u32 %v1273_v34, 16  ;;  %v1405_v62 = vshrl.u32 %v1277_v54, 16  ;;  %v1402_v6 = vshrl.u32 %v1274_v58, 16 }
  0xba   : > { %4780 = vmatpush1.bf16.msra.mxu0 %v4779_v42  ;;  %4733 = vmatprep.subr.bf16.mxu1 %v5104_v40  ;;  %v1145_v42 = vadd.s32 %v1109_v35, %v5419_v13 }
  0xbb   : > { %519 = vmatmul.mubr.f32.gmra.mrb[20].mxu0 %v286_v47  ;;  %4781 = vmatprep.subr.bf16.mxu0 %v5104_v40  ;;  %v1529_v50 = vxor.u32 %v1401_v41, %v1273_v34  ;;  %v1530_v16 = vxor.u32 %v1402_v6, %v1274_v58 }
  0xbc   : > { %776 = vmatmul.mubr.f32.gmra.mrb[20].mxu1 %v286_v47  ;;  %524 = vmatprep.mubr.f32.mxu0 %v5103_v0  ;;  %v1146_v47 = vadd.s32 %v1109_v35, %v5427_v21  ;;  %v1275_v51 = vxor.u32 %v5439_v28, %v1145_v42 }
  0xbd   : > { %781 = vmatprep.mubr.f32.mxu1 %v5103_v0  ;;  %4735 = vmatpush1.bf16.msra.mxu1 %v4734_v48  ;;  %v291_v48 = vld [vmem:[%s5330_s19 + $0x78] sm:$0xff] }
  0xbe   : > { %4783 = vmatpush1.bf16.msra.mxu0 %v4782_v49  ;;  %4736 = vmatprep.subr.bf16.mxu1 %v5104_v40  ;;  %v1527_v49 = vxor.u32 %v1399_v39, %v1271_v33  ;;  %v1658_v33 = vmul.u32 2146121005, %v1530_v16 }
  0xbf   : > { %525 = vmatmul.mubr.f32.gmra.mrb[22].mxu0 %v287_v55  ;;  %4784 = vmatprep.subr.bf16.mxu0 %v5104_v40 }
  0xc0   : > { %782 = vmatmul.mubr.f32.gmra.mrb[22].mxu1 %v287_v55  ;;  %530 = vmatprep.mubr.f32.mxu0 %v5103_v0  ;;  %v1655_v55 = vmul.u32 2146121005, %v1527_v49  ;;  %v1786_v43 = vshrl.u32 %v1658_v33, 15 }
  0xc1   : > { %787 = vmatprep.mubr.f32.mxu1 %v5103_v0  ;;  %4738 = vmatpush1.bf16.msra.mxu1 %v4737_v56  ;;  %v1657_v56 = vmul.u32 2146121005, %v1529_v50 }
  0xc2   : > { %4786 = vmatpush1.bf16.msra.mxu0 %v4785_v57  ;;  %4739 = vmatprep.subr.bf16.mxu1 %v5104_v40  ;;  %v1403_v57 = vshrl.u32 %v1275_v51, 16  ;;  %v1783_v2 = vshrl.u32 %v1655_v55, 15 }
  0xc3   : > { %531 = vmatmul.mubr.f32.gmra.mrb[24].mxu0 %v288_v63  ;;  %4787 = vmatprep.subr.bf16.mxu0 %v5104_v40 }
  0xc4   : > { %788 = vmatmul.mubr.f32.gmra.mrb[24].mxu1 %v288_v63  ;;  %536 = vmatprep.mubr.f32.mxu0 %v5103_v0  ;;  %v1276_v63 = vxor.u32 %v5439_v28, %v1146_v47  ;;  %v1531_v5 = vxor.u32 %v1403_v57, %v1275_v51  ;;  %v1911_v11 = vxor.u32 %v1783_v2, %v1655_v55  ;;  %v296_v2 = vld [vmem:[%s5330_s19 + $0xa0] sm:$0xff] }
  0xc5   : > { %793 = vmatprep.mubr.f32.mxu1 %v5103_v0  ;;  %4741 = vmatpush1.bf16.msra.mxu1 %v4740_v1  ;;  %v292_v1 = vld [vmem:[%s5330_s19 + $0x80] sm:$0xff]  ;;  %v1914_v51 = vxor.u32 %v1786_v43, %v1658_v33 }
  0xc6   : > { %4789 = vmatpush1.bf16.msra.mxu0 %v4788_v4  ;;  %4742 = vmatprep.subr.bf16.mxu1 %v5104_v40  ;;  %v1785_v4 = vshrl.u32 %v1657_v56, 15  ;;  %v1659_v14 = vmul.u32 2146121005, %v1531_v5  ;;  %v2039_v23 = vmul.u32 2221713035, %v1911_v11  ;;  %v297_v11 = vld [vmem:[%s5330_s19 + $0xa8] sm:$0xff] }
  0xc7   : > { %537 = vmatmul.mubr.f32.gmra.mrb[26].mxu0 %v289_v10  ;;  %4790 = vmatprep.subr.bf16.mxu0 %v5104_v40 }
  0xc8   : > { %794 = vmatmul.mubr.f32.gmra.mrb[26].mxu1 %v289_v10  ;;  %542 = vmatprep.mubr.f32.mxu0 %v5103_v0  ;;  %v1404_v10 = vshrl.u32 %v1276_v63, 16  ;;  %v1913_v12 = vxor.u32 %v1785_v4, %v1657_v56  ;;  %v1787_v25 = vshrl.u32 %v1659_v14, 15  ;;  %v2167_v30 = vshrl.u32 %v2039_v23, 16 }
  0xc9   : > { %799 = vmatprep.mubr.f32.mxu1 %v5103_v0  ;;  %4744 = vmatpush1.bf16.msra.mxu1 %v4743_v17  ;;  %v1910_v17 = vxor.u32 %v1782_v7, %v1654_v59 }
  0xca   : > { %4792 = vmatpush1.bf16.msra.mxu0 %v4791_v18  ;;  %4745 = vmatprep.subr.bf16.mxu1 %v5104_v40  ;;  %v1912_v18 = vxor.u32 %v1784_v8, %v1656_v61  ;;  %v1532_v20 = vxor.u32 %v1404_v10, %v1276_v63  ;;  %v2041_v24 = vmul.u32 2221713035, %v1913_v12  ;;  %v2295_v39 = vxor.u32 %v2167_v30, %v2039_v23  ;;  %v3892_v30 = vld [vmem:[#allocation9 + $0x1f0] sm:$0xff] }
  0xcb   : > { %543 = vmatmul.mubr.f32.gmra.mrb[28].mxu0 %v290_v31  ;;  %4793 = vmatprep.subr.bf16.mxu0 %v5104_v40  ;;  %v2038_v26 = vmul.u32 2221713035, %v1910_v17  ;;  %v2042_v61 = vmul.u32 2221713035, %v1914_v51  ;;  %v388_v51 = vsub.s32 3, %v5399_v60 }
  0xcc   : > { %800 = vmatmul.mubr.f32.gmra.mrb[28].mxu1 %v290_v31  ;;  %548 = vmatprep.mubr.f32.mxu0 %v5103_v0  ;;  %v2169_v31 = vshrl.u32 %v2041_v24, 16  ;;  %v1660_v37 = vmul.u32 2146121005, %v1532_v20 }
  0xcd   : > { %805 = vmatprep.mubr.f32.mxu1 %v5103_v0  ;;  %4747 = vmatpush1.bf16.msra.mxu1 %v4746_v27  ;;  %v2040_v27 = vmul.u32 2221713035, %v1912_v18  ;;  %v2166_v34 = vshrl.u32 %v2038_v26, 16  ;;  %v2170_v8 = vshrl.u32 %v2042_v61, 16  ;;  %v1039_v18 = vadd.s32 16, %v5399_v60 }
  0xce   : > { %4795 = vmatpush1.bf16.msra.mxu0 %v4794_v32  ;;  %4748 = vmatprep.subr.bf16.mxu1 %v5104_v40  ;;  %v1915_v32 = vxor.u32 %v1787_v25, %v1659_v14  ;;  %v2297_v41 = vxor.u32 %v2169_v31, %v2041_v24  ;;  %v1788_v47 = vshrl.u32 %v1660_v37, 15  ;;  %v298_v24 = vld [vmem:[%s5330_s19 + $0xb0] sm:$0xff]  ;;  %v376_v25 = vsub.s32 0, %v5399_v60  ;;  %v3893_v31 = vld [vmem:[#allocation9 + $0x1f8] sm:$0xff] }
  0xcf   : > { %549 = vmatmul.mubr.f32.gmra.mrb[30].mxu0 %v291_v48  ;;  %4796 = vmatprep.subr.bf16.mxu0 %v5104_v40  ;;  %v1533_v40 = vxor.u32 %v1405_v62, %v1277_v54  ;;  %v2168_v35 = vshrl.u32 %v2040_v27, 16  ;;  %v2294_v44 = vxor.u32 %v2166_v34, %v2038_v26  ;;  %v295_v54 = vld [vmem:[%s5330_s19 + $0x98] sm:$0xff]  ;;  %v2298_v20 = vxor.u32 %v2170_v8, %v2042_v61 }
  0xd0   : > { %806 = vmatmul.mubr.f32.gmra.mrb[30].mxu1 %v291_v48  ;;  %554 = vmatprep.mubr.f32.mxu0 %v5103_v0  ;;  %v2043_v42 = vmul.u32 2221713035, %v1915_v32  ;;  %v2423_v48 = vxor.u32 2654435769, %v2295_v39  ;;  %v2425_v49 = vxor.u32 2654435769, %v2297_v41  ;;  %v1916_v58 = vxor.u32 %v1788_v47, %v1660_v37 }
  0xd1   : > { %811 = vmatprep.mubr.f32.mxu1 %v5103_v0  ;;  %4750 = vmatpush1.bf16.msra.mxu1 %v4749_v36  ;;  %v1661_v19 = vmul.u32 2146121005, %v1533_v40  ;;  %v2296_v45 = vxor.u32 %v2168_v35, %v2040_v27  ;;  %v2422_v52 = vxor.u32 2654435769, %v2294_v44  ;;  %v1040_v27 = vadd.s32 24, %v5399_v60 }
  0xd2   : > { %v2171_v50 = vshrl.u32 %v2043_v42, 16  ;;  %v2551_v55 = vshrl.u32 %v2423_v48, 16  ;;  %v2553_v56 = vshrl.u32 %v2425_v49, 16  ;;  %v2044_v6 = vmul.u32 2221713035, %v1916_v58 }
  0xd3   : > { %555 = vmatmul.mubr.f32.gmra.mrb[32].mxu0 %v292_v1  ;;  %v1789_v29 = vshrl.u32 %v1661_v19, 15  ;;  %v2424_v53 = vxor.u32 2654435769, %v2296_v45  ;;  %v2550_v62 = vshrl.u32 %v2422_v52, 16  ;;  %v1073_v35 = vadd.s32 %v5406_v3, %v1039_v18  ;;  %v299_v45 = vld [vmem:[%s5330_s19 + $0xb8] sm:$0xff] }
  0xd4   : > { %812 = vmatmul.mubr.f32.gmra.mrb[32].mxu1 %v292_v1  ;;  %560 = vmatprep.mubr.f32.mxu0 %v5103_v0  ;;  %v2299_v59 = vxor.u32 %v2171_v50, %v2043_v42  ;;  %v2679_v1 = vxor.u32 %v2551_v55, %v2423_v48  ;;  %v2681_v4 = vxor.u32 %v2553_v56, %v2425_v49  ;;  %v2172_v17 = vshrl.u32 %v2044_v6, 16 }
  0xd5   : > { %817 = vmatprep.mubr.f32.mxu1 %v5103_v0  ;;  %v1917_v36 = vxor.u32 %v1789_v29, %v1661_v19  ;;  %v2552_v63 = vshrl.u32 %v2424_v53, 16  ;;  %v2678_v40 = vxor.u32 %v2550_v62, %v2422_v52  ;;  %v5493_v29 = vld [vmem:[%s7312_s3] sm:$0xf]  ;;  %v1074_v44 = vadd.s32 %v5406_v3, %v1040_v27 }
  0xd6   : > { %v2427_v7 = vxor.u32 2654435769, %v2299_v59  ;;  %v2807_v12 = vmul.u32 2146121005, %v2679_v1  ;;  %v2809_v14 = vmul.u32 2146121005, %v2681_v4  ;;  %v2300_v34 = vxor.u32 %v2172_v17, %v2044_v6 }
  0xd7   : > { %561 = vmatmul.mubr.f32.gmra.mrb[34].mxu0 %v293_v22  ;;  %v2045_v46 = vmul.u32 2221713035, %v1917_v36  ;;  %v2680_v10 = vxor.u32 %v2552_v63, %v2424_v53  ;;  %v4797_v36 = vpack.c.bf16 %v3893_v31, %v3892_v30  ;;  %v5500_v42 = vrot.slane %v5493_v29, %v376_v25  ;;  %v300_v63 = vld [vmem:[%s5330_s19 + $0xc0] sm:$0xff] }
  0xd8   : > { %818 = vmatmul.mubr.f32.gmra.mrb[34].mxu1 %v293_v22  ;;  %566 = vmatprep.mubr.f32.mxu0 %v5103_v0  ;;  %v2555_v19 = vshrl.u32 %v2427_v7, 16  ;;  %v2806_v22 = vmul.u32 2146121005, %v2678_v40  ;;  %v2935_v26 = vshrl.u32 %v2807_v12, 15  ;;  %v2937_v32 = vshrl.u32 %v2809_v14, 15 }
  0xd9   : > { %823 = vmatprep.mubr.f32.mxu1 %v5103_v0  ;;  %v2173_v57 = vshrl.u32 %v2045_v46, 16  ;;  %v2808_v23 = vmul.u32 2146121005, %v2680_v10  ;;  %7358 = vst [vmem:[#allocation19_spill] sm:$0xff] %v5500_v42  ;;  %v2428_v48 = vxor.u32 2654435769, %v2300_v34  ;;  %4798 = vmatpush1.bf16.msra.mxu0 %v4797_v36 }
  0xda   : > { %v5497_v37 = vxor.u32 %v2555_v19, %v2427_v7  ;;  %v2934_v39 = vshrl.u32 %v2806_v22, 15  ;;  %v5502_v43 = vxor.u32 %v2935_v26, %v2807_v12  ;;  %v1110_v49 = vmul.u32 512, %v1073_v35 }
  0xdb   : > { %567 = vmatmul.mubr.f32.gmra.mrb[36].mxu0 %v294_v38  ;;  %v2301_v5 = vxor.u32 %v2173_v57, %v2045_v46  ;;  %v2936_v41 = vshrl.u32 %v2808_v23, 15  ;;  %v5507_v46 = vxor.u32 %v2937_v32, %v2809_v14  ;;  %v380_v50 = vsub.s32 1, %v5399_v60 }
  0xdc   : > { %824 = vmatmul.mubr.f32.gmra.mrb[36].mxu1 %v294_v38  ;;  %572 = vmatprep.mubr.f32.mxu0 %v5103_v0  ;;  %v2426_v38 = vxor.u32 2654435769, %v2298_v20  ;;  %v2811_v52 = vmul.u32 2146121005, %v5497_v37  ;;  %v1149_v56 = vadd.s32 %v1110_v49, %v5419_v13  ;;  %v1151_v57 = vadd.s32 %v1110_v49, %v5422_v15  ;;  %v301_v20 = vld [vmem:[%s5330_s19 + $0xc8] sm:$0xff] }
  0xdd   : > { %829 = vmatprep.mubr.f32.mxu1 %v5103_v0  ;;  %v2429_v16 = vxor.u32 2654435769, %v2301_v5  ;;  %v5517_v55 = vxor.u32 %v2936_v41, %v2808_v23  ;;  %v384_v58 = vsub.s32 2, %v5399_v60  ;;  %v3191_v59 = vmul.u32 2221713035, %v5502_v43  ;;  %v302_v41 = vld [vmem:[%s5330_s19 + $0xd0] sm:$0xff] }
  0xde   : > { %v2554_v53 = vshrl.u32 %v2426_v38, 16  ;;  %v1148_v61 = vadd.s32 %v1110_v49, %v5413_v9  ;;  %v1150_v62 = vadd.s32 %v1110_v49, %v5427_v21  ;;  %v3193_v1 = vmul.u32 2221713035, %v5507_v46 }
  0xdf   : > { %573 = vmatmul.mubr.f32.gmra.mrb[38].mxu0 %v295_v54  ;;  %v2557_v33 = vshrl.u32 %v2429_v16, 16  ;;  %v1279_v4 = vxor.u32 %v5439_v28, %v1149_v56  ;;  %v1281_v5 = vxor.u32 %v5439_v28, %v1151_v57  ;;  %v5532_v6 = vrot.slane %v5493_v29, %v380_v50 }
  0xe0   : > { %830 = vmatmul.mubr.f32.gmra.mrb[38].mxu1 %v295_v54  ;;  %578 = vmatprep.mubr.f32.mxu0 %v5103_v0  ;;  %v5515_v54 = vxor.u32 %v2934_v39, %v2806_v22  ;;  %v5536_v7 = vshrl.u32 %v2811_v52, 15  ;;  %v1278_v8 = vxor.u32 %v5439_v28, %v1148_v61  ;;  %v1280_v40 = vxor.u32 %v5439_v28, %v1150_v62 }
  0xe1   : > { %835 = vmatprep.mubr.f32.mxu1 %v5103_v0  ;;  %v5509_v47 = vxor.u32 %v2557_v33, %v2429_v16  ;;  %v5540_v10 = vxor.u32 %v2554_v53, %v2426_v38  ;;  %v1409_v12 = vshrl.u32 %v1281_v5, 16  ;;  %v5542_v14 = vmul.u32 512, %v1074_v44 }
  0xe2   : > { %v5545_v16 = vrot.slane %v5493_v29, %v388_v51  ;;  %v3190_v17 = vmul.u32 2221713035, %v5515_v54  ;;  %v1406_v18 = vshrl.u32 %v1278_v8, 16  ;;  %v1408_v19 = vshrl.u32 %v1280_v40, 16 }
  0xe3   : > { %579 = vmatmul.mubr.f32.gmra.mrb[40].mxu0 %v296_v2  ;;  %v3192_v22 = vmul.u32 2221713035, %v5517_v55  ;;  %v1537_v25 = vxor.u32 %v1409_v12, %v1281_v5  ;;  %v5555_v26 = vrot.slane %v5493_v29, %v384_v58  ;;  %v2813_v27 = vmul.u32 2146121005, %v5509_v47 }
  0xe4   : > { %836 = vmatmul.mubr.f32.gmra.mrb[40].mxu1 %v296_v2  ;;  %584 = vmatprep.mubr.f32.mxu0 %v5103_v0  ;;  %v2556_v2 = vshrl.u32 %v2428_v48, 16  ;;  %v1534_v30 = vxor.u32 %v1406_v18, %v1278_v8  ;;  %v1536_v31 = vxor.u32 %v1408_v19, %v1280_v40  ;;  %v2810_v32 = vmul.u32 2146121005, %v5540_v10  ;;  %v303_v8 = vld [vmem:[%s5330_s19 + $0xd8] sm:$0xff] }
  0xe5   : > { %841 = vmatprep.mubr.f32.mxu1 %v5103_v0  ;;  %v1153_v34 = vadd.s32 %v5542_v14, %v5419_v13  ;;  %v1155_v35 = vadd.s32 %v5542_v14, %v5422_v15  ;;  %v5565_v36 = vshrl.u32 %v3191_v59, 16  ;;  %v1665_v29 = vmul.u32 2146121005, %v1537_v25 }
  0xe6   : > { %v5551_v23 = vxor.u32 %v2556_v2, %v2428_v48  ;;  %v1662_v38 = vmul.u32 2146121005, %v1534_v30  ;;  %v1152_v39 = vadd.s32 %v5542_v14, %v5413_v9  ;;  %v1664_v48 = vmul.u32 2146121005, %v1536_v31 }
  0xe7   : > { %585 = vmatmul.mubr.f32.gmra.mrb[42].mxu0 %v297_v11  ;;  %v1283_v49 = vxor.u32 %v5439_v28, %v1153_v34  ;;  %v5576_v50 = vshrl.u32 %v2813_v27, 15  ;;  %v1793_v51 = vshrl.u32 %v1665_v29, 15  ;;  %v1285_v56 = vxor.u32 %v5439_v28, %v1155_v35 }
  0xe8   : > { %842 = vmatmul.mubr.f32.gmra.mrb[42].mxu1 %v297_v11  ;;  %590 = vmatprep.mubr.f32.mxu0 %v5103_v0  ;;  %v1407_v11 = vshrl.u32 %v1279_v4, 16  ;;  %v2812_v44 = vmul.u32 2146121005, %v5551_v23  ;;  %v1790_v53 = vshrl.u32 %v1662_v38, 15  ;;  %v5581_v57 = vshrl.u32 %v2810_v32, 15 }
  0xe9   : > { %847 = vmatprep.mubr.f32.mxu1 %v5103_v0  ;;  %v1792_v61 = vshrl.u32 %v1664_v48, 15  ;;  %v1411_v62 = vshrl.u32 %v1283_v49, 16  ;;  %v1282_v5 = vxor.u32 %v5439_v28, %v1152_v39  ;;  %v1154_v34 = vadd.s32 %v5542_v14, %v5427_v21 }
  0xea   : > { %v1918_v2 = vxor.u32 %v1790_v53, %v1662_v38  ;;  %v5588_v40 = vshrl.u32 %v2812_v44, 15  ;;  %v3321_v23 = vshrl.u32 %v3193_v1, 16 }
  0xeb   : > { %591 = vmatmul.mubr.f32.gmra.mrb[44].mxu0 %v298_v24  ;;  %v1920_v12 = vxor.u32 %v1792_v61, %v1664_v48  ;;  %v1539_v18 = vxor.u32 %v1411_v62, %v1283_v49  ;;  %v1410_v25 = vshrl.u32 %v1282_v5, 16 }
  0xec   : > { %848 = vmatmul.mubr.f32.gmra.mrb[44].mxu1 %v298_v24  ;;  %596 = vmatprep.mubr.f32.mxu0 %v5103_v0  ;;  %v1535_v24 = vxor.u32 %v1407_v11, %v1279_v4  ;;  %v1413_v4 = vshrl.u32 %v1285_v56, 16 }
  0xed   : > { %853 = vmatprep.mubr.f32.mxu1 %v5103_v0  ;;  %v2048_v31 = vmul.u32 2221713035, %v1920_v12  ;;  %v1538_v39 = vxor.u32 %v1410_v25, %v1282_v5  ;;  %v305_v12 = vld [vmem:[%s5330_s19 + $0xe8] sm:$0xff] }
  0xee   : > { %v1663_v33 = vmul.u32 2146121005, %v1535_v24  ;;  %v1541_v24 = vxor.u32 %v1413_v4, %v1285_v56 }
  0xef   : > { %597 = vmatmul.mubr.f32.gmra.mrb[46].mxu0 %v299_v45  ;;  %v2176_v48 = vshrl.u32 %v2048_v31, 16 }
  0xf0   : > { %854 = vmatmul.mubr.f32.gmra.mrb[46].mxu1 %v299_v45  ;;  %602 = vmatprep.mubr.f32.mxu0 %v5103_v0  ;;  %v1791_v45 = vshrl.u32 %v1663_v33, 15  ;;  %v1669_v38 = vmul.u32 2146121005, %v1541_v24 }
  0xf1   : > { %859 = vmatprep.mubr.f32.mxu1 %v5103_v0  ;;  %v2304_v62 = vxor.u32 %v2176_v48, %v2048_v31 }
  0xf2   : > { %v1919_v58 = vxor.u32 %v1791_v45, %v1663_v33  ;;  %v1667_v33 = vmul.u32 2146121005, %v1539_v18  ;;  %v1797_v14 = vshrl.u32 %v1669_v38, 15 }
  0xf3   : > { %603 = vmatmul.mubr.f32.gmra.mrb[48].mxu0 %v300_v63  ;;  %v2432_v24 = vxor.u32 2654435769, %v2304_v62 }
  0xf4   : > { %860 = vmatmul.mubr.f32.gmra.mrb[48].mxu1 %v300_v63  ;;  %608 = vmatprep.mubr.f32.mxu0 %v5103_v0  ;;  %v1921_v63 = vxor.u32 %v1793_v51, %v1665_v29  ;;  %v2047_v11 = vmul.u32 2221713035, %v1919_v58  ;;  %v1795_v49 = vshrl.u32 %v1667_v33, 15  ;;  %v1284_v51 = vxor.u32 %v5439_v28, %v1154_v34 }
  0xf5   : > { %865 = vmatprep.mubr.f32.mxu1 %v5103_v0  ;;  %v1666_v58 = vmul.u32 2146121005, %v1538_v39 }
  0xf6   : > { %v2049_v19 = vmul.u32 2221713035, %v1921_v63  ;;  %v2175_v30 = vshrl.u32 %v2047_v11, 16  ;;  %v1923_v63 = vxor.u32 %v1795_v49, %v1667_v33  ;;  %v306_v49 = vld [vmem:[%s5330_s19 + $0xf0] sm:$0xff] }
  0xf7   : > { %609 = vmatmul.mubr.f32.gmra.mrb[50].mxu0 %v301_v20 }
  0xf8   : > { %866 = vmatmul.mubr.f32.gmra.mrb[50].mxu1 %v301_v20  ;;  %614 = vmatprep.mubr.f32.mxu0 %v5103_v0  ;;  %v2046_v20 = vmul.u32 2221713035, %v1918_v2  ;;  %v2177_v35 = vshrl.u32 %v2049_v19, 16  ;;  %v2303_v45 = vxor.u32 %v2175_v30, %v2047_v11  ;;  %v1412_v2 = vshrl.u32 %v1284_v51, 16 }
  0xf9   : > { %871 = vmatprep.mubr.f32.mxu1 %v5103_v0  ;;  %v1794_v11 = vshrl.u32 %v1666_v58, 15  ;;  %v2051_v25 = vmul.u32 2221713035, %v1923_v63 }
  0xfa   : > { %v2174_v29 = vshrl.u32 %v2046_v20, 16  ;;  %v2305_v53 = vxor.u32 %v2177_v35, %v2049_v19  ;;  %v2431_v61 = vxor.u32 2654435769, %v2303_v45  ;;  %v1540_v19 = vxor.u32 %v1412_v2, %v1284_v51 }
  0xfb   : > { %615 = vmatmul.mubr.f32.gmra.mrb[52].mxu0 %v302_v41  ;;  %v1922_v33 = vxor.u32 %v1794_v11, %v1666_v58  ;;  %v2560_v35 = vshrl.u32 %v2432_v24, 16  ;;  %v3067_v2 = vxor.u32 %v5536_v7, %v2811_v52  ;;  %v307_v11 = vld [vmem:[%s5330_s19 + $0xf8] sm:$0xff] }
  0xfc   : > { %872 = vmatmul.mubr.f32.gmra.mrb[52].mxu1 %v302_v41  ;;  %620 = vmatprep.mubr.f32.mxu0 %v5103_v0  ;;  %v304_v41 = vld [vmem:[%s5330_s19 + $0xe0] sm:$0xff]  ;;  %v2302_v56 = vxor.u32 %v2174_v29, %v2046_v20  ;;  %v2433_v4 = vxor.u32 2654435769, %v2305_v53  ;;  %v2559_v18 = vshrl.u32 %v2431_v61, 16  ;;  %v2179_v29 = vshrl.u32 %v2051_v25, 16  ;;  %s5028_s19 = sshll.u32 %s5105_s13, 4  ;;  %s5029_s19 = int_to_ptr.vmem [resolvable:$false] %s5028_s19 }
  0xfd   : > { %877 = vmatprep.mubr.f32.mxu1 %v5103_v0  ;;  %v2050_v48 = vmul.u32 2221713035, %v1922_v33  ;;  %v2688_v53 = vxor.u32 %v2560_v35, %v2432_v24  ;;  %s5030_s28 = scalar_lea.vmem %s5029_s19, 8192  ;;  %p5031_p5 = scmp.lt.s32.totalorder %s7264_s10, %s5029_s19 }
  0xfe   : > { %v2430_v5 = vxor.u32 2654435769, %v2302_v56  ;;  %v2561_v20 = vshrl.u32 %v2433_v4, 16  ;;  %v2687_v34 = vxor.u32 %v2559_v18, %v2431_v61  ;;  %v2307_v56 = vxor.u32 %v2179_v29, %v2051_v25  ;;  %p5032_p9 = scmp.lt.s32.totalorder %s5030_s28, %s5024_s11 }
  0xff   : > { %621 = vmatmul.mubr.f32.gmra.mrb[54].mxu0 %v303_v8  ;;  %v2178_v63 = vshrl.u32 %v2050_v48, 16  ;;  %v3068_v18 = vxor.u32 %v5588_v40, %v2812_v44  ;;  %v2816_v52 = vmul.u32 2146121005, %v2688_v53  ;;  %v3195_v44 = vmul.u32 2221713035, %v3067_v2 }
 0x100   : > { %878 = vmatmul.mubr.f32.gmra.mrb[54].mxu1 %v303_v8  ;;  %626 = vmatprep.mubr.f32.mxu0 %v5103_v0  ;;  %v1925_v8 = vxor.u32 %v1797_v14, %v1669_v38  ;;  %v2558_v30 = vshrl.u32 %v2430_v5, 16  ;;  %v1668_v38 = vmul.u32 2146121005, %v1540_v19  ;;  %v2689_v39 = vxor.u32 %v2561_v20, %v2433_v4  ;;  %p5033_p12 = por %p5032_p9, %p5031_p5 }
 0x101   : > { %883 = vmatprep.mubr.f32.mxu1 %v5103_v0  ;;  %v2815_v51 = vmul.u32 2146121005, %v2687_v34  ;;  %v3069_v4 = vxor.u32 %v5576_v50, %v2813_v27  ;;  %v2306_v37 = vxor.u32 %v2178_v63, %v2050_v48  ;;  %v3320_v40 = vshrl.u32 %v3192_v22, 16 }
 0x102   : > { %v2053_v31 = vmul.u32 2221713035, %v1925_v8  ;;  %v1796_v14 = vshrl.u32 %v1668_v38, 15  ;;  %v2817_v58 = vmul.u32 2146121005, %v2689_v39  ;;  %v2944_v39 = vshrl.u32 %v2816_v52, 15  ;;  %p5034_p2 = pnand %p5033_p12, %p5027_p3 }
 0x103   : > { %627 = vmatmul.mubr.f32.gmra.mrb[56].mxu0 %v304_v41  ;;  %v2943_v47 = vshrl.u32 %v2815_v51, 15  ;;  %v2434_v19 = vxor.u32 2654435769, %v2306_v37  ;;  %v3197_v20 = vmul.u32 2221713035, %v3069_v4  ;;  %v3323_v48 = vshrl.u32 %v3195_v44, 16 }
 0x104   : > { %884 = vmatmul.mubr.f32.gmra.mrb[56].mxu1 %v304_v41  ;;  %632 = vmatprep.mubr.f32.mxu0 %v5103_v0  ;;  %v2686_v41 = vxor.u32 %v2558_v30, %v2430_v5  ;;  %v2181_v45 = vshrl.u32 %v2053_v31, 16  ;;  %v2435_v5 = vxor.u32 2654435769, %v2307_v56  ;;  %v1924_v8 = vxor.u32 %v1796_v14, %v1668_v38 }
 0x105   : > { %889 = vmatprep.mubr.f32.mxu1 %v5103_v0  ;;  %v2945_v50 = vshrl.u32 %v2817_v58, 15  ;;  %v3196_v33 = vmul.u32 2221713035, %v3068_v18  ;;  %v3071_v34 = vxor.u32 %v2943_v47, %v2815_v51  ;;  %v1041_v53 = vadd.s32 32, %v5399_v60 }
 0x106   : > { %v2814_v61 = vmul.u32 2146121005, %v2686_v41  ;;  %v2309_v62 = vxor.u32 %v2181_v45, %v2053_v31  ;;  %v2563_v7 = vshrl.u32 %v2435_v5, 16  ;;  %v2052_v27 = vmul.u32 2221713035, %v1924_v8 }
 0x107   : > { %633 = vmatmul.mubr.f32.gmra.mrb[58].mxu0 %v305_v12  ;;  %v5624_v29 = vxor.u32 %v2945_v50, %v2817_v58  ;;  %v2562_v41 = vshrl.u32 %v2434_v19, 16  ;;  %v5631_v45 = vxor.u32 %v5565_v36, %v3191_v59  ;;  %v5636_v56 = vxor.u32 %v3321_v23, %v3193_v1 }
 0x108   : > { %890 = vmatmul.mubr.f32.gmra.mrb[58].mxu1 %v305_v12  ;;  %638 = vmatprep.mubr.f32.mxu0 %v5103_v0  ;;  %v3066_v12 = vxor.u32 %v5581_v57, %v2810_v32  ;;  %v2437_v24 = vxor.u32 2654435769, %v2309_v62  ;;  %v2942_v25 = vshrl.u32 %v2814_v61, 15  ;;  %v3318_v32 = vshrl.u32 %v3190_v17, 16 }
 0x109   : > { %895 = vmatprep.mubr.f32.mxu1 %v5103_v0  ;;  %v2180_v57 = vshrl.u32 %v2052_v27, 16  ;;  %v2691_v30 = vxor.u32 %v2563_v7, %v2435_v5  ;;  %v3325_v51 = vshrl.u32 %v3197_v20, 16  ;;  %v3324_v43 = vshrl.u32 %v3196_v33, 16 }
 0x10a   : > { %v2565_v10 = vshrl.u32 %v2437_v24, 16  ;;  %v5626_v38 = vxor.u32 %v2942_v25, %v2814_v61  ;;  %v5640_v61 = vxor.u32 %v3318_v32, %v3190_v17  ;;  %v3199_v63 = vmul.u32 2221713035, %v3071_v34 }
 0x10b   : > { %639 = vmatmul.mubr.f32.gmra.mrb[60].mxu0 %v306_v49  ;;  %v2308_v35 = vxor.u32 %v2180_v57, %v2052_v27  ;;  %v2819_v14 = vmul.u32 2146121005, %v2691_v30  ;;  %v3201_v59 = vmul.u32 2221713035, %v5624_v29  ;;  %v5644_v2 = vxor.u32 %v2944_v39, %v2816_v52 }
 0x10c   : > { %896 = vmatmul.mubr.f32.gmra.mrb[60].mxu1 %v306_v49  ;;  %644 = vmatprep.mubr.f32.mxu0 %v5103_v0  ;;  %v2693_v31 = vxor.u32 %v2565_v10, %v2437_v24  ;;  %v3198_v36 = vmul.u32 2221713035, %v5626_v38  ;;  %v5646_v4 = vxor.u32 %v2562_v41, %v2434_v19  ;;  %v5650_v46 = vxor.u32 %v3320_v40, %v3192_v22 }
 0x10d   : > { %901 = vmatprep.mubr.f32.mxu1 %v5103_v0  ;;  %v3194_v0 = vmul.u32 2221713035, %v3066_v12  ;;  %v2436_v49 = vxor.u32 2654435769, %v2308_v35  ;;  %v5652_v1 = vxor.u32 %v3323_v48, %v3195_v44  ;;  %v1075_v17 = vadd.s32 %v5406_v3, %v1041_v53 }
 0x10e   : > { %v2821_v58 = vmul.u32 2146121005, %v2693_v31  ;;  %v5655_v5 = vxor.u32 %v3325_v51, %v3197_v20  ;;  %v2947_v8 = vshrl.u32 %v2819_v14, 15  ;;  %v1042_v12 = vadd.s32 40, %v5399_v60 }
 0x10f   : > { %645 = vmatmul.mubr.f32.gmra.mrb[62].mxu0 %v307_v11  ;;  %v3322_v62 = vshrl.u32 %v3194_v0, 16  ;;  %v2564_v54 = vshrl.u32 %v2436_v49, 16  ;;  %v5660_v24 = vxor.u32 %v3324_v43, %v3196_v33  ;;  %v3327_v37 = vshrl.u32 %v3199_v63, 16 }
 0x110   : > { %902 = vmatmul.mubr.f32.gmra.mrb[62].mxu1 %v307_v11  ;;  %v2949_v11 = vshrl.u32 %v2821_v58, 15  ;;  %v1112_v47 = vmul.u32 512, %v1075_v17  ;;  %v3329_v55 = vshrl.u32 %v3201_v59, 16  ;;  %v5666_v22 = vshrl.u32 %v3198_v36, 16 }
 0x111   : > { %v5658_v18 = vxor.u32 %v3322_v62, %v3194_v0  ;;  %v7319_v52 = vmul.u32 2221713035, %v5644_v2  ;;  %v2818_v7 = vmul.u32 2146121005, %v5646_v4  ;;  %v2692_v27 = vxor.u32 %v2564_v54, %v2436_v49 }
 0x112   : > { %v1157_v50 = vadd.s32 %v1112_v47, %v5419_v13  ;;  %v1159_v25 = vadd.s32 %v1112_v47, %v5422_v15  ;;  %v1076_v10 = vadd.s32 %v5406_v3, %v1042_v12  ;;  %v5673_v19 = vxor.u32 %v2947_v8, %v2819_v14 }
 0x113   : > { %v5675_v23 = vxor.u32 %v2949_v11, %v2821_v58  ;;  %v1156_v32 = vadd.s32 %v1112_v47, %v5413_v9  ;;  %v1158_v44 = vadd.s32 %v1112_v47, %v5427_v21  ;;  %v5679_v57 = vxor.u32 %v3327_v37, %v3199_v63 }
 0x114   : > { %v1287_v40 = vxor.u32 %v5439_v28, %v1157_v50  ;;  %v1289_v20 = vxor.u32 %v5439_v28, %v1159_v25  ;;  %v1043_v30 = vadd.s32 48, %v5399_v60  ;;  %v5686_v31 = vshrl.u32 %v7319_v52, 16 }
 0x115   : > { %v2946_v0 = vshrl.u32 %v2818_v7, 15  ;;  %v1286_v33 = vxor.u32 %v5439_v28, %v1156_v32  ;;  %v1288_v34 = vxor.u32 %v5439_v28, %v1158_v44  ;;  %v2820_v35 = vmul.u32 2146121005, %v2692_v27 }
 0x116   : > { %v1415_v39 = vshrl.u32 %v1287_v40, 16  ;;  %v1417_v41 = vshrl.u32 %v1289_v20, 16  ;;  %v1113_v48 = vmul.u32 512, %v1076_v10  ;;  %v1077_v63 = vadd.s32 %v5406_v3, %v1043_v30 }
 0x117   : > { %v1414_v51 = vshrl.u32 %v1286_v33, 16  ;;  %v1416_v14 = vshrl.u32 %v1288_v34, 16  ;;  %v2948_v11 = vshrl.u32 %v2820_v35, 15  ;;  %v5707_v52 = vxor.u32 %v2946_v0, %v2818_v7 }
 0x118   : > { %v1543_v58 = vxor.u32 %v1415_v39, %v1287_v40  ;;  %v1545_v62 = vxor.u32 %v1417_v41, %v1289_v20  ;;  %v1161_v43 = vadd.s32 %v1113_v48, %v5419_v13  ;;  %v1163_v17 = vadd.s32 %v1113_v48, %v5422_v15 }
 0x119   : > { %v1542_v4 = vxor.u32 %v1414_v51, %v1286_v33  ;;  %v1544_v54 = vxor.u32 %v1416_v14, %v1288_v34  ;;  %v1160_v8 = vadd.s32 %v1113_v48, %v5413_v9  ;;  %v5699_v20 = vmul.u32 512, %v1077_v63 }
 0x11a   : > { %v1671_v12 = vmul.u32 2146121005, %v1543_v58  ;;  %v1673_v37 = vmul.u32 2146121005, %v1545_v62  ;;  %v1291_v47 = vxor.u32 %v5439_v28, %v1161_v43  ;;  %v1293_v25 = vxor.u32 %v5439_v28, %v1163_v17 }
 0x11b   : > { %v1670_v27 = vmul.u32 2146121005, %v1542_v4  ;;  %v1672_v50 = vmul.u32 2146121005, %v1544_v54  ;;  %v1290_v10 = vxor.u32 %v5439_v28, %v1160_v8  ;;  %v1162_v58 = vadd.s32 %v1113_v48, %v5427_v21 }
 0x11c   : > { %v1799_v32 = vshrl.u32 %v1671_v12, 15  ;;  %v1801_v44 = vshrl.u32 %v1673_v37, 15  ;;  %v1419_v40 = vshrl.u32 %v1291_v47, 16  ;;  %v1421_v34 = vshrl.u32 %v1293_v25, 16 }
 0x11d   : > { %v1798_v30 = vshrl.u32 %v1670_v27, 15  ;;  %v1800_v33 = vshrl.u32 %v1672_v50, 15  ;;  %v1418_v39 = vshrl.u32 %v1290_v10, 16  ;;  %v5704_v17 = vxor.u32 %v3329_v55, %v3201_v59 }
 0x11e   : > { %v1927_v41 = vxor.u32 %v1799_v32, %v1671_v12  ;;  %v1929_v51 = vxor.u32 %v1801_v44, %v1673_v37  ;;  %v1547_v14 = vxor.u32 %v1419_v40, %v1291_v47  ;;  %v1549_v4 = vxor.u32 %v1421_v34, %v1293_v25 }
 0x11f   : > { %v1926_v62 = vxor.u32 %v1798_v30, %v1670_v27  ;;  %v1928_v43 = vxor.u32 %v1800_v33, %v1672_v50  ;;  %v1546_v54 = vxor.u32 %v1418_v39, %v1290_v10  ;;  %v1292_v53 = vxor.u32 %v5439_v28, %v1162_v58 }
 0x120   : > { %v2055_v8 = vmul.u32 2221713035, %v1927_v41  ;;  %v2057_v63 = vmul.u32 2221713035, %v1929_v51  ;;  %v5709_v49 = vxor.u32 %v2948_v11, %v2820_v35  ;;  %vm3575_vm0 = vcmp.ge.u32.totalorder %v5631_v45, 429496730 }
 0x121   : > { %v2054_v12 = vmul.u32 2221713035, %v1926_v62  ;;  %v2056_v37 = vmul.u32 2221713035, %v1928_v43  ;;  %v1420_v29 = vshrl.u32 %v1292_v53, 16 }
 0x122   : > { %v2183_v47 = vshrl.u32 %v2055_v8, 16  ;;  %v2185_v48 = vshrl.u32 %v2057_v63, 16  ;;  %v1675_v27 = vmul.u32 2146121005, %v1547_v14  ;;  %v1677_v50 = vmul.u32 2146121005, %v1549_v4 }
 0x123   : > { %v2182_v25 = vshrl.u32 %v2054_v12, 16  ;;  %v2184_v10 = vshrl.u32 %v2056_v37, 16  ;;  %v1674_v32 = vmul.u32 2146121005, %v1546_v54  ;;  %v1548_v0 = vxor.u32 %v1420_v29, %v1292_v53 }
 0x124   : > { %v2311_v59 = vxor.u32 %v2183_v47, %v2055_v8  ;;  %v2313_v55 = vxor.u32 %v2185_v48, %v2057_v63  ;;  %v1803_v44 = vshrl.u32 %v1675_v27, 15  ;;  %v1805_v40 = vshrl.u32 %v1677_v50, 15 }
 0x125   : > { %v2310_v30 = vxor.u32 %v2182_v25, %v2054_v12  ;;  %v2312_v33 = vxor.u32 %v2184_v10, %v2056_v37  ;;  %v1802_v7 = vshrl.u32 %v1674_v32, 15  ;;  %v1676_v58 = vmul.u32 2146121005, %v1548_v0 }
 0x126   : > { %v2439_v35 = vxor.u32 2654435769, %v2311_v59  ;;  %v2441_v11 = vxor.u32 2654435769, %v2313_v55  ;;  %v1931_v34 = vxor.u32 %v1803_v44, %v1675_v27  ;;  %v1933_v39 = vxor.u32 %v1805_v40, %v1677_v50 }
 0x127   : > { %v2438_v41 = vxor.u32 2654435769, %v2310_v30  ;;  %v2440_v51 = vxor.u32 2654435769, %v2312_v33  ;;  %v1930_v14 = vxor.u32 %v1802_v7, %v1674_v32  ;;  %v1804_v48 = vshrl.u32 %v1676_v58, 15 }
 0x128   : > { %v2567_v62 = vshrl.u32 %v2439_v35, 16  ;;  %v2569_v43 = vshrl.u32 %v2441_v11, 16  ;;  %v2059_v4 = vmul.u32 2221713035, %v1931_v34  ;;  %v2061_v54 = vmul.u32 2221713035, %v1933_v39 }
 0x129   : > { %v2566_v8 = vshrl.u32 %v2438_v41, 16  ;;  %v2568_v63 = vshrl.u32 %v2440_v51, 16  ;;  %v2058_v47 = vmul.u32 2221713035, %v1930_v14  ;;  %v1932_v50 = vxor.u32 %v1804_v48, %v1676_v58 }
 0x12a   : > { %v2695_v12 = vxor.u32 %v2567_v62, %v2439_v35  ;;  %v2697_v37 = vxor.u32 %v2569_v43, %v2441_v11  ;;  %v2187_v25 = vshrl.u32 %v2059_v4, 16  ;;  %v2189_v53 = vshrl.u32 %v2061_v54, 16 }
 0x12b   : > { %v2694_v10 = vxor.u32 %v2566_v8, %v2438_v41  ;;  %v2696_v29 = vxor.u32 %v2568_v63, %v2440_v51  ;;  %v2186_v27 = vshrl.u32 %v2058_v47, 16  ;;  %v5714_v40 = vxor.u32 %v5666_v22, %v3198_v36 }
 0x12c   : > { %v2823_v59 = vmul.u32 2146121005, %v2695_v12  ;;  %v2825_v55 = vmul.u32 2146121005, %v2697_v37  ;;  %v2315_v32 = vxor.u32 %v2187_v25, %v2059_v4  ;;  %v2317_v44 = vxor.u32 %v2189_v53, %v2061_v54 }
 0x12d   : > { %v2822_v30 = vmul.u32 2146121005, %v2694_v10  ;;  %v2824_v33 = vmul.u32 2146121005, %v2696_v29  ;;  %v2314_v7 = vxor.u32 %v2186_v27, %v2058_v47  ;;  %v1165_v63 = vadd.s32 %v5699_v20, %v5419_v13 }
 0x12e   : > { %v7359_v0 = vmul.u32 2221713035, %v5673_v19  ;;  %v2951_v11 = vshrl.u32 %v2823_v59, 15  ;;  %v2443_v34 = vxor.u32 2654435769, %v2315_v32  ;;  %v2953_v22 = vshrl.u32 %v2825_v55, 15 }
 0x12f   : > { %v2445_v39 = vxor.u32 2654435769, %v2317_v44  ;;  %v7360_v41 = vmul.u32 2221713035, %v5644_v2  ;;  %v3202_v14 = vmul.u32 2221713035, %v5707_v52 }
 0x130   : > { %v3331_v35 = vshrl.u32 %v7359_v0, 16  ;;  %v2442_v38 = vxor.u32 2654435769, %v2314_v7  ;;  %v2060_v58 = vmul.u32 2221713035, %v1932_v50  ;;  %v2571_v62 = vshrl.u32 %v2443_v34, 16 }
 0x131   : > { %v5721_v51 = vxor.u32 %v5686_v31, %v7360_v41  ;;  %v3204_v36 = vmul.u32 2221713035, %v5709_v49  ;;  %v2573_v43 = vshrl.u32 %v2445_v39, 16  ;;  %v2950_v4 = vshrl.u32 %v2822_v30, 15 }
 0x132   : > { %v2570_v54 = vshrl.u32 %v2442_v38, 16  ;;  %v2188_v8 = vshrl.u32 %v2060_v58, 16  ;;  %v3079_v47 = vxor.u32 %v2951_v11, %v2823_v59  ;;  %v2952_v2 = vshrl.u32 %v2824_v33, 15 }
 0x133   : > { %v2699_v48 = vxor.u32 %v2571_v62, %v2443_v34  ;;  %v2701_v31 = vxor.u32 %v2573_v43, %v2445_v39  ;;  %v7361_v12 = vmul.u32 2221713035, %v5675_v23  ;;  %v1044_v49 = vadd.s32 56, %v5399_v60 }
 0x134   : > { %v2698_v37 = vxor.u32 %v2570_v54, %v2442_v38  ;;  %v2316_v25 = vxor.u32 %v2188_v8, %v2060_v58  ;;  %v3330_v53 = vshrl.u32 %v3202_v14, 16  ;;  %v3081_v10 = vxor.u32 %v2953_v22, %v2825_v55 }
 0x135   : > { %v3333_v52 = vshrl.u32 %v7361_v12, 16  ;;  %v2827_v29 = vmul.u32 2146121005, %v2699_v48  ;;  %v2829_v27 = vmul.u32 2146121005, %v2701_v31  ;;  %v3332_v50 = vshrl.u32 %v3204_v36, 16 }
 0x136   : > { %v3078_v32 = vxor.u32 %v2950_v4, %v2822_v30  ;;  %v2826_v44 = vmul.u32 2146121005, %v2698_v37  ;;  %v2444_v7 = vxor.u32 2654435769, %v2316_v25  ;;  %v3207_v0 = vmul.u32 2221713035, %v3079_v47 }
 0x137   : > { %v3080_v59 = vxor.u32 %v2952_v2, %v2824_v33  ;;  %v1295_v11 = vxor.u32 %v5439_v28, %v1165_v63  ;;  %v1167_v34 = vadd.s32 %v5699_v20, %v5422_v15  ;;  %v7362_v39 = vmul.u32 2221713035, %v5673_v19 }
 0x138   : > { %v2955_v38 = vshrl.u32 %v2827_v29, 15  ;;  %v2572_v58 = vshrl.u32 %v2444_v7, 16  ;;  %v1164_v55 = vadd.s32 %v5699_v20, %v5413_v9  ;;  %v7363_v30 = vmov %v7361_v12 }
 0x139   : > { %v5735_v41 = vxor.u32 %v3331_v35, %v7362_v39  ;;  %v5741_v22 = vxor.u32 %v3333_v52, %v7363_v30  ;;  %v5743_v62 = vxor.u32 %v3330_v53, %v3202_v14  ;;  %v3209_v33 = vmul.u32 2221713035, %v3081_v10 }
 0x13a   : > { %v2957_v43 = vshrl.u32 %v2829_v27, 15  ;;  %v5745_v4 = vxor.u32 %v3332_v50, %v3204_v36  ;;  %v3206_v54 = vmul.u32 2221713035, %v3078_v32  ;;  %v2954_v8 = vshrl.u32 %v2826_v44, 15 }
 0x13b   : > { %v2700_v19 = vxor.u32 %v2572_v58, %v2444_v7  ;;  %v3335_v35 = vshrl.u32 %v3207_v0, 16  ;;  %v3208_v63 = vmul.u32 2221713035, %v3080_v59  ;;  %v1423_v47 = vshrl.u32 %v1295_v11, 16 }
 0x13c   : > { %v1297_v2 = vxor.u32 %v5439_v28, %v1167_v34  ;;  %v5748_v48 = vxor.u32 %v2955_v38, %v2827_v29  ;;  %v1294_v23 = vxor.u32 %v5439_v28, %v1164_v55  ;;  %v1166_v14 = vadd.s32 %v5699_v20, %v5427_v21 }
 0x13d   : > { %v2828_v31 = vmul.u32 2146121005, %v2700_v19  ;;  %v3337_v12 = vshrl.u32 %v3209_v33, 16  ;;  %v5753_v52 = vxor.u32 %v2957_v43, %v2829_v27  ;;  %v1551_v36 = vxor.u32 %v1423_v47, %v1295_v11 }
 0x13e   : > { %v1425_v37 = vshrl.u32 %v1297_v2, 16  ;;  %v3334_v25 = vshrl.u32 %v3206_v54, 16  ;;  %v5755_v53 = vxor.u32 %v2954_v8, %v2826_v44  ;;  %v1422_v10 = vshrl.u32 %v1294_v23, 16 }
 0x13f   : > { %v1296_v50 = vxor.u32 %v5439_v28, %v1166_v14  ;;  %v5758_v32 = vxor.u32 %v3335_v35, %v3207_v0  ;;  %v3336_v29 = vshrl.u32 %v3208_v63, 16  ;;  %v1679_v7 = vmul.u32 2146121005, %v1551_v36 }
 0x140   : > { %v1553_v59 = vxor.u32 %v1425_v37, %v1297_v2  ;;  %v7321_v34 = vmul.u32 2221713035, %v5748_v48  ;;  %v2956_v39 = vshrl.u32 %v2828_v31, 15  ;;  %v1550_v20 = vxor.u32 %v1422_v10, %v1294_v23 }
 0x141   : > { %v1424_v38 = vshrl.u32 %v1296_v50, 16  ;;  %v5761_v27 = vxor.u32 %v3337_v12, %v3209_v33  ;;  %v7320_v11 = vmul.u32 2221713035, %v5753_v52  ;;  %v1807_v58 = vshrl.u32 %v1679_v7, 15 }
 0x142   : > { %v1078_v44 = vadd.s32 %v5406_v3, %v1044_v49  ;;  %v5765_v55 = vxor.u32 %v3334_v25, %v3206_v54  ;;  %v1681_v30 = vmul.u32 2146121005, %v1553_v59  ;;  %v5768_v8 = vxor.u32 %v3336_v29, %v3208_v63 }
 0x143   : > { %v1552_v43 = vxor.u32 %v1424_v38, %v1296_v50  ;;  %v1935_v19 = vxor.u32 %v1807_v58, %v1679_v7  ;;  %v1678_v35 = vmul.u32 2146121005, %v1550_v20  ;;  %v5772_v33 = vshrl.u32 %v7321_v34, 16 }
 0x144   : > { %7364 = vst [vmem:[#allocation20_spill] sm:$0xff] %v5768_v8  ;;  %v1115_v47 = vmul.u32 512, %v1078_v44  ;;  %v5774_v2 = vxor.u32 %v2956_v39, %v2828_v31  ;;  %v1809_v23 = vshrl.u32 %v1681_v30, 15  ;;  %v5780_v63 = vshrl.u32 %v7320_v11, 16 }
 0x145   : > { %v1680_v14 = vmul.u32 2146121005, %v1552_v43  ;;  %v2063_v49 = vmul.u32 2221713035, %v1935_v19  ;;  %v1806_v54 = vshrl.u32 %v1678_v35, 15 }
 0x146   : > { %v1169_v12 = vadd.s32 %v1115_v47, %v5419_v13  ;;  %v1171_v36 = vadd.s32 %v1115_v47, %v5422_v15  ;;  %v1937_v37 = vxor.u32 %v1809_v23, %v1681_v30  ;;  %v1168_v10 = vadd.s32 %v1115_v47, %v5413_v9 }
 0x147   : > { %v1808_v25 = vshrl.u32 %v1680_v14, 15  ;;  %v2191_v50 = vshrl.u32 %v2063_v49, 16  ;;  %v1934_v29 = vxor.u32 %v1806_v54, %v1678_v35  ;;  %v1170_v34 = vadd.s32 %v1115_v47, %v5427_v21 }
 0x148   : > { %v1299_v31 = vxor.u32 %v5439_v28, %v1169_v12  ;;  %v1301_v7 = vxor.u32 %v5439_v28, %v1171_v36  ;;  %v2065_v39 = vmul.u32 2221713035, %v1937_v37  ;;  %v1298_v38 = vxor.u32 %v5439_v28, %v1168_v10 }
 0x149   : > { %v1936_v20 = vxor.u32 %v1808_v25, %v1680_v14  ;;  %v2319_v58 = vxor.u32 %v2191_v50, %v2063_v49  ;;  %v2062_v44 = vmul.u32 2221713035, %v1934_v29  ;;  %v1300_v14 = vxor.u32 %v5439_v28, %v1170_v34 }
 0x14a   : > { %v1427_v43 = vshrl.u32 %v1299_v31, 16  ;;  %v1429_v19 = vshrl.u32 %v1301_v7, 16  ;;  %v2193_v30 = vshrl.u32 %v2065_v39, 16  ;;  %v1426_v11 = vshrl.u32 %v1298_v38, 16 }
 0x14b   : > { %v2064_v23 = vmul.u32 2221713035, %v1936_v20  ;;  %v2447_v35 = vxor.u32 2654435769, %v2319_v58  ;;  %v2190_v54 = vshrl.u32 %v2062_v44, 16  ;;  %v1428_v20 = vshrl.u32 %v1300_v14, 16 }
 0x14c   : > { %v1555_v12 = vxor.u32 %v1427_v43, %v1299_v31  ;;  %v1557_v0 = vxor.u32 %v1429_v19, %v1301_v7  ;;  %v2321_v36 = vxor.u32 %v2193_v30, %v2065_v39  ;;  %v1554_v59 = vxor.u32 %v1426_v11, %v1298_v38 }
 0x14d   : > { %v2192_v9 = vshrl.u32 %v2064_v23, 16  ;;  %v2575_v37 = vshrl.u32 %v2447_v35, 16  ;;  %v2318_v25 = vxor.u32 %v2190_v54, %v2062_v44  ;;  %v1556_v39 = vxor.u32 %v1428_v20, %v1300_v14 }
 0x14e   : > { %v1683_v49 = vmul.u32 2146121005, %v1555_v12  ;;  %v1685_v10 = vmul.u32 2146121005, %v1557_v0  ;;  %v2449_v50 = vxor.u32 2654435769, %v2321_v36 }
 0x14f   : > { %v2320_v29 = vxor.u32 %v2192_v9, %v2064_v23  ;;  %v1682_v15 = vmul.u32 2146121005, %v1554_v59  ;;  %v2703_v13 = vxor.u32 %v2575_v37, %v2447_v35  ;;  %v2446_v8 = vxor.u32 2654435769, %v2318_v25 }
 0x150   : > { %v1811_v47 = vshrl.u32 %v1683_v49, 15  ;;  %v1813_v58 = vshrl.u32 %v1685_v10, 15  ;;  %v2577_v21 = vshrl.u32 %v2449_v50, 16  ;;  %v1684_v0 = vmul.u32 2146121005, %v1556_v39 }
 0x151   : > { %v2448_v31 = vxor.u32 2654435769, %v2320_v29  ;;  %v1810_v7 = vshrl.u32 %v1682_v15, 15  ;;  %v2831_v43 = vmul.u32 2146121005, %v2703_v13  ;;  %v2574_v11 = vshrl.u32 %v2446_v8, 16 }
 0x152   : > { %v1939_v38 = vxor.u32 %v1811_v47, %v1683_v49  ;;  %v1941_v34 = vxor.u32 %v1813_v58, %v1685_v10  ;;  %v2705_v19 = vxor.u32 %v2577_v21, %v2449_v50  ;;  %v1812_v37 = vshrl.u32 %v1684_v0, 15 }
 0x153   : > { %v2576_v44 = vshrl.u32 %v2448_v31, 16  ;;  %v1938_v30 = vxor.u32 %v1810_v7, %v1682_v15  ;;  %v2959_v54 = vshrl.u32 %v2831_v43, 15  ;;  %v2702_v9 = vxor.u32 %v2574_v11, %v2446_v8 }
 0x154   : > { %v2067_v59 = vmul.u32 2221713035, %v1939_v38  ;;  %v2069_v23 = vmul.u32 2221713035, %v1941_v34  ;;  %v1940_v10 = vxor.u32 %v1812_v37, %v1684_v0  ;;  %vm3577_vm1 = vcmp.ge.u32.totalorder %v5636_v56, 429496730 }
 0x155   : > { %v2833_v35 = vmul.u32 2146121005, %v2705_v19  ;;  %v2704_v12 = vxor.u32 %v2576_v44, %v2448_v31  ;;  %v2066_v36 = vmul.u32 2221713035, %v1938_v30  ;;  %v3087_v25 = vxor.u32 %v2959_v54, %v2831_v43 }
 0x156   : > { %v2830_v29 = vmul.u32 2146121005, %v2702_v9  ;;  %v2195_v28 = vshrl.u32 %v2067_v59, 16  ;;  %v2197_v14 = vshrl.u32 %v2069_v23, 16  ;;  %v2068_v39 = vmul.u32 2221713035, %v1940_v10 }
 0x157   : > { %v2961_v13 = vshrl.u32 %v2833_v35, 15  ;;  %v2832_v20 = vmul.u32 2146121005, %v2704_v12  ;;  %v2194_v49 = vshrl.u32 %v2066_v36, 16  ;;  %v3215_v21 = vmul.u32 2221713035, %v3087_v25 }
 0x158   : > { %v2958_v50 = vshrl.u32 %v2830_v29, 15  ;;  %v2323_v15 = vxor.u32 %v2195_v28, %v2067_v59  ;;  %v2325_v47 = vxor.u32 %v2197_v14, %v2069_v23  ;;  %v7365_v31 = vmul.u32 2221713035, %v5755_v53 }
 0x159   : > { %v3089_v58 = vxor.u32 %v2961_v13, %v2833_v35  ;;  %v2960_v8 = vshrl.u32 %v2832_v20, 15  ;;  %v2322_v7 = vxor.u32 %v2194_v49, %v2066_v36  ;;  %v2196_v0 = vshrl.u32 %v2068_v39, 16 }
 0x15a   : > { %v3338_v11 = vshrl.u32 %v7365_v31, 16  ;;  %v5791_v38 = vxor.u32 %v2958_v50, %v2830_v29  ;;  %v2451_v43 = vxor.u32 2654435769, %v2323_v15  ;;  %v2453_v34 = vxor.u32 2654435769, %v2325_v47 }
 0x15b   : > { %v3217_v19 = vmul.u32 2221713035, %v3089_v58  ;;  %v5794_v44 = vxor.u32 %v2960_v8, %v2832_v20  ;;  %v2450_v30 = vxor.u32 2654435769, %v2322_v7  ;;  %vm3574_vm2 = vcmp.ge.u32.totalorder %v5640_v61, 429496730 }
 0x15c   : > { %v7366_v28 = vmul.u32 2221713035, %v5748_v48  ;;  %v7367_v9 = vmul.u32 2221713035, %v5774_v2  ;;  %v2579_v23 = vshrl.u32 %v2451_v43, 16  ;;  %v2581_v35 = vshrl.u32 %v2453_v34, 16 }
 0x15d   : > { %vm3576_vm3 = vcmp.ge.u32.totalorder %v5650_v46, 429496730  ;;  %v7368_v12 = vmul.u32 2221713035, %v5753_v52  ;;  %v3343_v37 = vshrl.u32 %v3215_v21, 16  ;;  %v2578_v25 = vshrl.u32 %v2450_v30, 16 }
 0x15e   : > { %v5801_v54 = vxor.u32 %v5772_v33, %v7366_v28  ;;  %v3340_v59 = vshrl.u32 %v7367_v9, 16  ;;  %v2324_v29 = vxor.u32 %v2196_v0, %v2068_v39  ;;  %v7369_v48 = vmov %v7365_v31 }
 0x15f   : > { %v5809_v36 = vxor.u32 %v5780_v63, %v7368_v12  ;;  %v5813_v14 = vxor.u32 %v3338_v11, %v7369_v48  ;;  %v3214_v33 = vmul.u32 2221713035, %v5791_v38  ;;  %v2707_v13 = vxor.u32 %v2579_v23, %v2451_v43 }
 0x160   : > { %v2709_v20 = vxor.u32 %v2581_v35, %v2453_v34  ;;  %vm3579_vm4 = vcmp.ge.u32.totalorder %v5652_v1, 429496730  ;;  %v3345_v49 = vshrl.u32 %v3217_v19, 16  ;;  %v3216_v10 = vmul.u32 2221713035, %v5794_v44 }
 0x161   : > { %v2706_v52 = vxor.u32 %v2578_v25, %v2450_v30  ;;  %v5819_v63 = vadd.s32 64, %v5399_v60  ;;  %vm3581_vm5 = vcmp.ge.u32.totalorder %v5655_v5, 429496730  ;;  %vm3578_vm6 = vcmp.ge.u32.totalorder %v5658_v18, 429496730 }
 0x162   : > { %v7370_v53 = vmov %v7367_v9  ;;  %v2835_v47 = vmul.u32 2146121005, %v2707_v13  ;;  %v2837_v58 = vmul.u32 2146121005, %v2709_v20  ;;  %v5828_v8 = vadd.s32 72, %v5399_v60 }
 0x163   : > { %v5825_v15 = vxor.u32 %v3340_v59, %v7370_v53  ;;  %vm3580_vm7 = vcmp.ge.u32.totalorder %v5660_v24, 429496730  ;;  %v5832_v11 = vxor.u32 %v3343_v37, %v3215_v21  ;;  %v2834_v43 = vmul.u32 2146121005, %v2706_v52 }
 0x164   : > { %v2452_v34 = vxor.u32 2654435769, %v2324_v29  ;;  %v3342_v28 = vshrl.u32 %v3214_v33, 16  ;;  %v2963_v9 = vshrl.u32 %v2835_v47, 15  ;;  %vm3583_vm8 = vcmp.ge.u32.totalorder %v5679_v57, 429496730 }
 0x165   : > { %v5840_v35 = vxor.u32 %v3345_v49, %v3217_v19  ;;  %v2965_v21 = vshrl.u32 %v2837_v58, 15  ;;  %vm3585_vm9 = vcmp.ge.u32.totalorder %v5704_v17, 429496730  ;;  %vm3582_vm10 = vcmp.ge.u32.totalorder %v5714_v40, 429496730  ;;  %v7372_v17 = vld [vmem:[#allocation15_spill] sm:$0xff] }
 0x166   : > { %v460_v50 = vpop.f32.mrb[0].mxu0  ;;  %v3091_v29 = vxor.u32 %v2963_v9, %v2835_v47  ;;  %v2962_v48 = vshrl.u32 %v2834_v43, 15  ;;  %vm3584_vm11 = vcmp.ge.u32.totalorder %v5721_v51, 429496730  ;;  %v2580_v19 = vshrl.u32 %v2452_v34, 16 }
 0x167   : > { %v461_v7 = vadd.f32 %v460_v50, %v5500_v42  ;;  %v717_v39 = vpop.f32.mrb[0].mxu1  ;;  %v462_v31 = vpop.f32.mrb[1].mxu0  ;;  %v5846_v53 = vxor.u32 %v2965_v21, %v2837_v58  ;;  %vm3587_vm12 = vcmp.ge.u32.totalorder %v5735_v41, 429496730  ;;  %v3344_v58 = vshrl.u32 %v3216_v10, 16 }
 0x168   : > { %v718_v30 = vadd.f32 %v717_v39, %v5555_v26  ;;  %v463_v2 = vadd.f32 %v462_v31, %v5532_v6  ;;  %v719_v0 = vpop.f32.mrb[1].mxu1  ;;  %v3219_v47 = vmul.u32 2221713035, %v3091_v29  ;;  %v5852_v31 = vxor.u32 %v2962_v48, %v2834_v43 }
 0x169   : > { %v908_v59 = vmax.f32 %v461_v7, 0.0  ;;  %v720_v23 = vadd.f32 %v719_v0, %v5545_v16  ;;  %v2708_v45 = vxor.u32 %v2580_v19, %v2452_v34  ;;  %vm3589_vm13 = vcmp.ge.u32.totalorder %v5741_v22, 429496730 }
 0x16a   : > { %v910_v12 = vmax.f32 %v718_v30, 0.0  ;;  %v909_v37 = vmax.f32 %v463_v2, 0.0  ;;  %v466_v25 = vpop.f32.mrb[2].mxu0  ;;  %v3221_v2 = vmul.u32 2221713035, %v5846_v53  ;;  %v3347_v56 = vshrl.u32 %v3219_v47, 16 }
 0x16b   : > { %v911_v13 = vmax.f32 %v720_v23, 0.0  ;;  %v467_v20 = vadd.f32 %v466_v25, %v5500_v42  ;;  %v723_v52 = vpop.f32.mrb[2].mxu1  ;;  %v468_v50 = vpop.f32.mrb[3].mxu0  ;;  %vm3586_vm14 = vcmp.ge.u32.totalorder %v5743_v62, 429496730  ;;  %v5892_v5 = vxor.u32 %v3344_v58, %v3216_v10 }
 0x16c   : > { %v724_v49 = vadd.f32 %v723_v52, %v5555_v26  ;;  %v469_v7 = vadd.f32 %v468_v50, %v5532_v6  ;;  %v725_v39 = vpop.f32.mrb[3].mxu1  ;;  %4504 = vmatprep.mubr.msk.f32.mxu1 %vm3575_vm0, %v909_v37  ;;  %v3218_v61 = vmul.u32 2221713035, %v5852_v31  ;;  %vm3588_vm15 = vcmp.ge.u32.totalorder %v5745_v4, 429496730 }
 0x16d   : > { %v726_v30 = vadd.f32 %v725_v39, %v5545_v16  ;;  %4568 = vmatprep.mubr.msk.f32.mxu0 %vm3577_vm1, %v911_v13  ;;  %4505 = vmatmul.mubr.msk.f32.vlgmr.msra.gmra.mrb[64].mxu1 %vm3574_vm2, %v908_v59  ;;  %v912_v59 = vmax.f32 %v467_v20, 0.0  ;;  %v2836_v34 = vmul.u32 2146121005, %v2708_v45  ;;  %v3349_v48 = vshrl.u32 %v3221_v2, 16  ;;  %v7371_v39 = vld [vmem:[#allocation20_spill] sm:$0xff] }
 0x16e   : > { %v914_v0 = vmax.f32 %v724_v49, 0.0  ;;  %v913_v9 = vmax.f32 %v469_v7, 0.0  ;;  %4569 = vmatmul.mubr.msk.f32.vlgmr.msra.gmra.mrb[64].mxu0 %vm3576_vm3, %v910_v12  ;;  %v472_v43 = vpop.f32.mrb[4].mxu0  ;;  %v1079_v13 = vadd.s32 %v5406_v3, %v5819_v63  ;;  %vm3591_vm0 = vcmp.ge.u32.totalorder %v5758_v32, 429496730 }
 0x16f   : > { %v915_v23 = vmax.f32 %v726_v30, 0.0  ;;  %v473_v21 = vadd.f32 %v472_v43, %v5500_v42  ;;  %v729_v37 = vpop.f32.mrb[4].mxu1  ;;  %v474_v25 = vpop.f32.mrb[5].mxu0  ;;  %v5884_v52 = vxor.u32 %v3342_v28, %v3214_v33  ;;  %v3346_v1 = vshrl.u32 %v3218_v61, 16 }
 0x170   : > { %v730_v46 = vadd.f32 %v729_v37, %v5555_v26  ;;  %v475_v12 = vadd.f32 %v474_v25, %v5532_v6  ;;  %v731_v29 = vpop.f32.mrb[5].mxu1  ;;  %4506 = vmatprep.mubr.msk.f32.mxu1 %vm3579_vm4, %v913_v9  ;;  %v2964_v50 = vshrl.u32 %v2836_v34, 15  ;;  %vm3593_vm1 = vcmp.ge.u32.totalorder %v5761_v27, 429496730 }
 0x171   : > { %v732_v20 = vadd.f32 %v731_v29, %v5545_v16  ;;  %4570 = vmatprep.mubr.msk.f32.mxu0 %vm3581_vm5, %v915_v23  ;;  %4507 = vmatmul.mubr.msk.f32.gmra.mrb[66].mxu1 %vm3578_vm6, %v912_v59  ;;  %vm3590_vm2 = vcmp.ge.u32.totalorder %v5765_v55, 429496730  ;;  %v5894_v18 = vxor.u32 %v3347_v56, %v3219_v47  ;;  %v916_v38 = vmax.f32 %v473_v21, 0.0  ;;  %v7373_v59 = vld [vmem:[#allocation16_spill] sm:$0xff] }
 0x172   : > { %v918_v53 = vmax.f32 %v730_v46, 0.0  ;;  %v917_v19 = vmax.f32 %v475_v12, 0.0  ;;  %4571 = vmatmul.mubr.msk.f32.gmra.mrb[66].mxu0 %vm3580_vm7, %v914_v0  ;;  %v478_v63 = vpop.f32.mrb[6].mxu0  ;;  %vm3592_vm3 = vcmp.ge.u32.totalorder %v7371_v39, 429496730  ;;  %v3092_v24 = vxor.u32 %v2964_v50, %v2836_v34  ;;  %v7374_v34 = vld [vmem:[#allocation14_spill] sm:$0xff] }
 0x173   : > { %v919_v33 = vmax.f32 %v732_v20, 0.0  ;;  %v479_v28 = vadd.f32 %v478_v63, %v5500_v42  ;;  %v735_v49 = vpop.f32.mrb[6].mxu1  ;;  %v480_v7 = vpop.f32.mrb[7].mxu0  ;;  %v5902_v44 = vxor.u32 %v3349_v48, %v3221_v2  ;;  %v1116_v10 = vmul.u32 512, %v1079_v13  ;;  %v7375_v48 = vld [vmem:[#allocation18_spill] sm:$0xff] }
 0x174   : > { %v736_v31 = vadd.f32 %v735_v49, %v5555_v26  ;;  %v481_v30 = vadd.f32 %v480_v7, %v5532_v6  ;;  %v737_v45 = vpop.f32.mrb[7].mxu1  ;;  %4508 = vmatprep.mubr.msk.f32.mxu1 %vm3583_vm8, %v917_v19  ;;  %vm3595_vm4 = vcmp.ge.u32.totalorder %v5801_v54, 429496730  ;;  %v5910_v0 = vxor.u32 %v3346_v1, %v3218_v61 }
 0x175   : > { %v920_v47 = vmax.f32 %v479_v28, 0.0  ;;  %v738_v58 = vadd.f32 %v737_v45, %v5545_v16  ;;  %4572 = vmatprep.mubr.msk.f32.mxu0 %vm3585_vm9, %v919_v33  ;;  %4509 = vmatmul.mubr.msk.f32.gmra.mrb[68].mxu1 %vm3582_vm10, %v916_v38  ;;  %v3220_v9 = vmul.u32 2221713035, %v3092_v24  ;;  %vm3597_vm5 = vcmp.ge.u32.totalorder %v5809_v36, 429496730 }
 0x176   : > { %v922_v43 = vmax.f32 %v736_v31, 0.0  ;;  %v921_v57 = vmax.f32 %v481_v30, 0.0  ;;  %4573 = vmatmul.mubr.msk.f32.gmra.mrb[68].mxu0 %vm3584_vm11, %v918_v53  ;;  %v484_v2 = vpop.f32.mrb[8].mxu0  ;;  %vm3594_vm6 = vcmp.ge.u32.totalorder %v5813_v14, 429496730  ;;  %v1173_v56 = vadd.s32 %v1116_v10, %v7372_v17 }
 0x177   : > { %v1175_v40 = vadd.s32 %v1116_v10, %v7373_v59  ;;  %v923_v23 = vmax.f32 %v738_v58, 0.0  ;;  %v485_v21 = vadd.f32 %v484_v2, %v5500_v42  ;;  %v741_v61 = vpop.f32.mrb[8].mxu1  ;;  %v486_v37 = vpop.f32.mrb[9].mxu0  ;;  %vm3596_vm7 = vcmp.ge.u32.totalorder %v5825_v15, 429496730 }
 0x178   : > { %v3348_v25 = vshrl.u32 %v3220_v9, 16  ;;  %v1172_v51 = vadd.s32 %v1116_v10, %v7374_v34  ;;  %v742_v46 = vadd.f32 %v741_v61, %v5555_v26  ;;  %v487_v12 = vadd.f32 %v486_v37, %v5532_v6  ;;  %v743_v29 = vpop.f32.mrb[9].mxu1  ;;  %4510 = vmatprep.mubr.msk.f32.mxu1 %vm3587_vm12, %v921_v57 }
 0x179   : > { %v1303_v13 = vxor.u32 %v7375_v48, %v1173_v56  ;;  %v1305_v20 = vxor.u32 %v7375_v48, %v1175_v40  ;;  %v924_v1 = vmax.f32 %v485_v21, 0.0  ;;  %v744_v50 = vadd.f32 %v743_v29, %v5545_v16  ;;  %4574 = vmatprep.mubr.msk.f32.mxu0 %vm3589_vm13, %v923_v23  ;;  %4511 = vmatmul.mubr.msk.f32.gmra.mrb[70].mxu1 %vm3586_vm14, %v920_v47 }
 0x17a   : > { %vm3599_vm8 = vcmp.ge.u32.totalorder %v5832_v11, 429496730  ;;  %v1302_v53 = vxor.u32 %v7375_v48, %v1172_v51  ;;  %v5936_v41 = vadd.s32 %v5406_v3, %v5828_v8  ;;  %v926_v19 = vmax.f32 %v742_v46, 0.0  ;;  %4575 = vmatmul.mubr.msk.f32.gmra.mrb[70].mxu0 %vm3588_vm15, %v922_v43  ;;  %v490_v38 = vpop.f32.mrb[10].mxu0  ;;  %v7376_v43 = vld [vmem:[#allocation17_spill] sm:$0xff] }
 0x17b   : > { %v925_v63 = vmax.f32 %v487_v12, 0.0  ;;  %vm3601_vm9 = vcmp.ge.u32.totalorder %v5840_v35, 429496730  ;;  %vm3598_vm10 = vcmp.ge.u32.totalorder %v5884_v52, 429496730  ;;  %v1431_v22 = vshrl.u32 %v1303_v13, 16 }
 0x17c   : > { %v1433_v62 = vshrl.u32 %v1305_v20, 16  ;;  %v927_v33 = vmax.f32 %v744_v50, 0.0  ;;  %v491_v28 = vadd.f32 %v490_v38, %v5500_v42  ;;  %v747_v49 = vpop.f32.mrb[10].mxu1  ;;  %v492_v7 = vpop.f32.mrb[11].mxu0  ;;  %vm3600_vm11 = vcmp.ge.u32.totalorder %v5892_v5, 429496730 }
 0x17d   : > { %v5944_v8 = vxor.u32 %v3348_v25, %v3220_v9  ;;  %v1430_v24 = vshrl.u32 %v1302_v53, 16  ;;  %v748_v4 = vadd.f32 %v747_v49, %v5555_v26  ;;  %v493_v31 = vadd.f32 %v492_v7, %v5532_v6  ;;  %v749_v30 = vpop.f32.mrb[11].mxu1  ;;  %4512 = vmatprep.mubr.msk.f32.mxu1 %vm3591_vm0, %v925_v63 }
 0x17e   : > { %v1559_v45 = vxor.u32 %v1431_v22, %v1303_v13  ;;  %v1561_v47 = vxor.u32 %v1433_v62, %v1305_v20  ;;  %v750_v58 = vadd.f32 %v749_v30, %v5545_v16  ;;  %4576 = vmatprep.mubr.msk.f32.mxu0 %vm3593_vm1, %v927_v33  ;;  %4513 = vmatmul.mubr.msk.f32.gmra.mrb[72].mxu1 %vm3590_vm2, %v924_v1  ;;  %vm3603_vm12 = vcmp.ge.u32.totalorder %v5894_v18, 429496730  ;;  %v496_v32 = vpop.f32.mrb[12].mxu0 }
 0x17f   : > { %v1558_v9 = vxor.u32 %v1430_v24, %v1302_v53  ;;  %v1174_v57 = vadd.s32 %v1116_v10, %v7376_v43  ;;  %v928_v2 = vmax.f32 %v491_v28, 0.0  ;;  %v930_v56 = vmax.f32 %v748_v4, 0.0  ;;  %4577 = vmatmul.mubr.msk.f32.gmra.mrb[72].mxu0 %vm3592_vm3, %v926_v19  ;;  %v753_v21 = vpop.f32.mrb[12].mxu1  ;;  %v498_v61 = vpop.f32.mrb[13].mxu0 }
 0x180   : > { %v929_v40 = vmax.f32 %v493_v31, 0.0  ;;  %vm3605_vm13 = vcmp.ge.u32.totalorder %v5902_v44, 429496730  ;;  %vm3602_vm14 = vcmp.ge.u32.totalorder %v5910_v0, 429496730  ;;  %v931_v23 = vmax.f32 %v750_v58, 0.0 }
 0x181   : > { %v1687_v27 = vmul.u32 2146121005, %v1559_v45  ;;  %v497_v55 = vadd.f32 %v496_v32, %v5500_v42  ;;  %vm3604_vm15 = vcmp.ge.u32.totalorder %v5944_v8, 429496730  ;;  %v1689_v10 = vmul.u32 2146121005, %v1561_v47 }
 0x182   : > { %v1304_v37 = vxor.u32 %v7375_v48, %v1174_v57  ;;  %v754_v25 = vadd.f32 %v753_v21, %v5555_v26  ;;  %v499_v39 = vadd.f32 %v498_v61, %v5532_v6  ;;  %v755_v51 = vpop.f32.mrb[13].mxu1  ;;  %4514 = vmatprep.mubr.msk.f32.mxu1 %vm3595_vm4, %v929_v40  ;;  %v1686_v12 = vmul.u32 2146121005, %v1558_v9  ;;  %4578 = vmatprep.mubr.msk.f32.mxu0 %vm3597_vm5, %v931_v23  ;;  %v502_v54 = vpop.f32.mrb[14].mxu0 }
 0x183   : > { %v1815_v46 = vshrl.u32 %v1687_v27, 15  ;;  %v932_v29 = vmax.f32 %v497_v55, 0.0  ;;  %v756_v13 = vadd.f32 %v755_v51, %v5545_v16  ;;  %4515 = vmatmul.mubr.msk.f32.gmra.mrb[74].mxu1 %vm3594_vm6, %v928_v2  ;;  %v1817_v20 = vshrl.u32 %v1689_v10, 15  ;;  %4579 = vmatmul.mubr.msk.f32.gmra.mrb[74].mxu0 %vm3596_vm7, %v930_v56  ;;  %v759_v62 = vpop.f32.mrb[14].mxu1  ;;  %v504_v33 = vpop.f32.mrb[15].mxu0 }
 0x184   : > { %v1432_v1 = vshrl.u32 %v1304_v37, 16  ;;  %v934_v50 = vmax.f32 %v754_v25, 0.0  ;;  %v933_v53 = vmax.f32 %v499_v39, 0.0  ;;  %v1814_v63 = vshrl.u32 %v1686_v12, 15  ;;  %v761_v7 = vpop.f32.mrb[15].mxu1 }
 0x185   : > { %v1943_v19 = vxor.u32 %v1815_v46, %v1687_v27  ;;  %v935_v38 = vmax.f32 %v756_v13, 0.0  ;;  %v503_v22 = vadd.f32 %v502_v54, %v5500_v42  ;;  %v1945_v36 = vxor.u32 %v1817_v20, %v1689_v10 }
 0x186   : > { %v1560_v28 = vxor.u32 %v1432_v1, %v1304_v37  ;;  %v760_v14 = vadd.f32 %v759_v62, %v5555_v26  ;;  %v505_v49 = vadd.f32 %v504_v33, %v5532_v6  ;;  %4516 = vmatprep.mubr.msk.f32.mxu1 %vm3599_vm8, %v933_v53  ;;  %v1942_v24 = vxor.u32 %v1814_v63, %v1686_v12  ;;  %v508_v11 = vpop.f32.mrb[16].mxu0 }
 0x187   : > { %v2071_v15 = vmul.u32 2221713035, %v1943_v19  ;;  %v936_v4 = vmax.f32 %v503_v22, 0.0  ;;  %v762_v31 = vadd.f32 %v761_v7, %v5545_v16  ;;  %4580 = vmatprep.mubr.msk.f32.mxu0 %vm3601_vm9, %v935_v38  ;;  %4517 = vmatmul.mubr.msk.f32.gmra.mrb[76].mxu1 %vm3598_vm10, %v932_v29  ;;  %v2073_v30 = vmul.u32 2221713035, %v1945_v36  ;;  %v765_v40 = vpop.f32.mrb[16].mxu1 }
 0x188   : > { %v1688_v45 = vmul.u32 2146121005, %v1560_v28  ;;  %v938_v47 = vmax.f32 %v760_v14, 0.0  ;;  %v937_v58 = vmax.f32 %v505_v49, 0.0  ;;  %4581 = vmatmul.mubr.msk.f32.gmra.mrb[76].mxu0 %vm3600_vm11, %v934_v50  ;;  %v2070_v57 = vmul.u32 2221713035, %v1942_v24 }
 0x189   : > { %v2199_v9 = vshrl.u32 %v2071_v15, 16  ;;  %v939_v2 = vmax.f32 %v762_v31, 0.0  ;;  %v5988_v56 = vadd.f32 %v508_v11, %v5500_v42  ;;  %v510_v35 = vpop.f32.mrb[17].mxu0  ;;  %v2201_v32 = vshrl.u32 %v2073_v30, 16  ;;  %v767_v55 = vpop.f32.mrb[17].mxu1 }
 0x18a   : > { %v1816_v27 = vshrl.u32 %v1688_v45, 15  ;;  %v5991_v52 = vadd.f32 %v765_v40, %v5555_v26  ;;  %v5994_v23 = vadd.f32 %v510_v35, %v5532_v6  ;;  %4518 = vmatprep.mubr.msk.f32.mxu1 %vm3603_vm12, %v937_v58  ;;  %v2198_v21 = vshrl.u32 %v2070_v57, 16  ;;  %v514_v51 = vpop.f32.mrb[18].mxu0 }
 0x18b   : > { %v2327_v5 = vxor.u32 %v2199_v9, %v2071_v15  ;;  %v5999_v61 = vadd.f32 %v767_v55, %v5545_v16  ;;  %4582 = vmatprep.mubr.msk.f32.mxu0 %vm3605_vm13, %v939_v2  ;;  %4519 = vmatmul.mubr.msk.f32.gmra.mrb[78].mxu1 %vm3602_vm14, %v936_v4  ;;  %v2329_v10 = vxor.u32 %v2201_v32, %v2073_v30  ;;  %v1117_v25 = vmul.u32 512, %v5936_v41  ;;  %v771_v13 = vpop.f32.mrb[18].mxu1  ;;  %v516_v20 = vpop.f32.mrb[19].mxu0 }
 0x18c   : > { %v1944_v37 = vxor.u32 %v1816_v27, %v1688_v45  ;;  %v940_v39 = vmax.f32 %v5988_v56, 0.0  ;;  %v942_v18 = vmax.f32 %v5991_v52, 0.0  ;;  %4583 = vmatmul.mubr.msk.f32.gmra.mrb[78].mxu0 %vm3604_vm15, %v938_v47  ;;  %v2326_v12 = vxor.u32 %v2198_v21, %v2070_v57  ;;  %v773_v8 = vpop.f32.mrb[19].mxu1 }
 0x18d   : > { %v2455_v46 = vxor.u32 2654435769, %v2327_v5  ;;  %v941_v44 = vmax.f32 %v5994_v23, 0.0  ;;  %v943_v29 = vmax.f32 %v5999_v61, 0.0  ;;  %v6013_v0 = vadd.f32 %v514_v51, %v5500_v42 }
 0x18e   : > { %v2457_v41 = vxor.u32 2654435769, %v2329_v10  ;;  %v6016_v1 = vadd.f32 %v771_v13, %v5555_v26  ;;  %v6019_v50 = vadd.f32 %v516_v20, %v5532_v6  ;;  %v2454_v54 = vxor.u32 2654435769, %v2326_v12  ;;  %v520_v14 = vpop.f32.mrb[20].mxu0 }
 0x18f   : > { %v2583_v53 = vshrl.u32 %v2455_v46, 16  ;;  %v6022_v19 = vadd.f32 %v773_v8, %v5545_v16  ;;  %v2072_v38 = vmul.u32 2221713035, %v1944_v37  ;;  %v1177_v22 = vadd.s32 %v1117_v25, %v7372_v17  ;;  %v777_v4 = vpop.f32.mrb[20].mxu1  ;;  %v522_v31 = vpop.f32.mrb[21].mxu0 }
 0x190   : > { %v2585_v63 = vshrl.u32 %v2457_v41, 16  ;;  %v2582_v28 = vshrl.u32 %v2454_v54, 16  ;;  %v6029_v24 = vadd.f32 %v520_v14, %v5500_v42  ;;  %v6032_v47 = vadd.f32 %v777_v4, %v5555_v26  ;;  %v779_v11 = vpop.f32.mrb[21].mxu1 }
 0x191   : > { %v2711_v36 = vxor.u32 %v2583_v53, %v2455_v46  ;;  %v2200_v15 = vshrl.u32 %v2072_v38, 16  ;;  %v6035_v58 = vadd.f32 %v522_v31, %v5532_v6  ;;  %v6041_v55 = vadd.f32 %v779_v11, %v5545_v16 }
 0x192   : > { %v2713_v7 = vxor.u32 %v2585_v63, %v2457_v41  ;;  %v2710_v45 = vxor.u32 %v2582_v28, %v2454_v54  ;;  %v526_v5 = vpop.f32.mrb[22].mxu0  ;;  %v1307_v51 = vxor.u32 %v7375_v48, %v1177_v22  ;;  %v1179_v41 = vadd.s32 %v1117_v25, %v7373_v59 }
 0x193   : > { %v2839_v30 = vmul.u32 2146121005, %v2711_v36  ;;  %v2328_v2 = vxor.u32 %v2200_v15, %v2072_v38  ;;  %v6045_v46 = vpop.f32.mrb[22].mxu1  ;;  %v6047_v12 = vpop.f32.mrb[23].mxu0  ;;  %v1176_v8 = vadd.s32 %v1117_v25, %v7374_v34  ;;  %v1178_v36 = vadd.s32 %v1117_v25, %v7376_v43 }
 0x194   : > { %v2841_v57 = vmul.u32 2146121005, %v2713_v7  ;;  %v2838_v32 = vmul.u32 2146121005, %v2710_v45  ;;  %v6051_v53 = vpop.f32.mrb[23].mxu1  ;;  %v1435_v38 = vshrl.u32 %v1307_v51, 16  ;;  %v1309_v22 = vxor.u32 %v7375_v48, %v1179_v41 }
 0x195   : > { %v2967_v35 = vshrl.u32 %v2839_v30, 15  ;;  %v2456_v10 = vxor.u32 2654435769, %v2328_v2  ;;  %v1306_v7 = vxor.u32 %v7375_v48, %v1176_v8  ;;  %v1308_v45 = vxor.u32 %v7375_v48, %v1178_v36 }
 0x196   : > { %v2969_v21 = vshrl.u32 %v2841_v57, 15  ;;  %v2966_v20 = vshrl.u32 %v2838_v32, 15  ;;  %v6056_v15 = vpop.f32.mrb[24].mxu0  ;;  %v1437_v25 = vshrl.u32 %v1309_v22, 16 }
 0x197   : > { %v3095_v13 = vxor.u32 %v2967_v35, %v2839_v30  ;;  %v2584_v63 = vshrl.u32 %v2456_v10, 16  ;;  %v1563_v30 = vxor.u32 %v1435_v38, %v1307_v51  ;;  %v6059_v11 = vpop.f32.mrb[24].mxu1  ;;  %v1436_v8 = vshrl.u32 %v1308_v45, 16 }
 0x198   : > { %v3097_v54 = vxor.u32 %v2969_v21, %v2841_v57  ;;  %v3094_v14 = vxor.u32 %v2966_v20, %v2838_v32  ;;  %v6061_v57 = vpop.f32.mrb[25].mxu0  ;;  %v1434_v21 = vshrl.u32 %v1306_v7, 16  ;;  %v6063_v32 = vpop.f32.mrb[25].mxu1 }
 0x199   : > { %v3223_v28 = vmul.u32 2221713035, %v3095_v13  ;;  %v2712_v31 = vxor.u32 %v2584_v63, %v2456_v10  ;;  %v1691_v41 = vmul.u32 2146121005, %v1563_v30  ;;  %v1565_v10 = vxor.u32 %v1437_v25, %v1309_v22 }
 0x19a   : > { %v3225_v4 = vmul.u32 2221713035, %v3097_v54  ;;  %v3222_v35 = vmul.u32 2221713035, %v3094_v14  ;;  %v1562_v51 = vxor.u32 %v1434_v21, %v1306_v7  ;;  %v6065_v63 = vpop.f32.mrb[26].mxu0  ;;  %v1564_v37 = vxor.u32 %v1436_v8, %v1308_v45 }
 0x19b   : > { %v3351_v2 = vshrl.u32 %v3223_v28, 16  ;;  %v2840_v20 = vmul.u32 2146121005, %v2712_v31  ;;  %v1819_v40 = vshrl.u32 %v1691_v41, 15  ;;  %v6067_v33 = vpop.f32.mrb[26].mxu1  ;;  %v6069_v14 = vpop.f32.mrb[27].mxu0  ;;  %v6098_v8 = vadd.f32 %v6047_v12, %v5532_v6 }
 0x19c   : > { %v3353_v13 = vshrl.u32 %v3225_v4, 16  ;;  %v3350_v54 = vshrl.u32 %v3222_v35, 16  ;;  %v1693_v9 = vmul.u32 2146121005, %v1565_v10  ;;  %v1690_v31 = vmul.u32 2146121005, %v1562_v51 }
 0x19d   : > { %v3479_v27 = vxor.u32 %v3351_v2, %v3223_v28  ;;  %v2968_v36 = vshrl.u32 %v2840_v20, 15  ;;  %v1947_v22 = vxor.u32 %v1819_v40, %v1691_v41  ;;  %v1692_v7 = vmul.u32 2146121005, %v1564_v37  ;;  %v6073_v30 = vpop.f32.mrb[27].mxu1 }
 0x19e   : > { %v3481_v38 = vxor.u32 %v3353_v13, %v3225_v4  ;;  %v3478_v62 = vxor.u32 %v3350_v54, %v3222_v35  ;;  %v1821_v4 = vshrl.u32 %v1693_v9, 15  ;;  %v1818_v45 = vshrl.u32 %v1690_v31, 15  ;;  %v6080_v2 = vpop.f32.mrb[28].mxu0 }
 0x19f   : > { %vm3607_vm0 = vcmp.ge.u32.totalorder %v3479_v27, 429496730  ;;  %v3096_v28 = vxor.u32 %v2968_v36, %v2840_v20  ;;  %v6078_v27 = vadd.f32 %v526_v5, %v5500_v42  ;;  %v1820_v40 = vshrl.u32 %v1692_v7, 15  ;;  %v6084_v37 = vpop.f32.mrb[28].mxu1  ;;  %v6091_v5 = vpop.f32.mrb[29].mxu0 }
 0x1a0   : > { %4520 = vmatprep.mubr.msk.f32.mxu1 %vm3607_vm0, %v941_v44  ;;  %vm3609_vm1 = vcmp.ge.u32.totalorder %v3481_v38, 429496730  ;;  %vm3606_vm2 = vcmp.ge.u32.totalorder %v3478_v62, 429496730  ;;  %v2075_v44 = vmul.u32 2221713035, %v1947_v22  ;;  %v1949_v61 = vxor.u32 %v1821_v4, %v1693_v9 }
 0x1a1   : > { %4584 = vmatprep.mubr.msk.f32.mxu0 %vm3609_vm1, %v943_v29  ;;  %4521 = vmatmul.mubr.msk.f32.gmra.mrb[80].mxu1 %vm3606_vm2, %v940_v39  ;;  %v3224_v23 = vmul.u32 2221713035, %v3096_v28  ;;  %v1946_v29 = vxor.u32 %v1818_v45, %v1690_v31  ;;  %v6089_v62 = vadd.f32 %v6045_v46, %v5555_v26  ;;  %v6093_v25 = vpop.f32.mrb[29].mxu1  ;;  %v1948_v39 = vxor.u32 %v1820_v40, %v1692_v7 }
 0x1a2   : > { %7378 = vst [vmem:[#allocation15_spill] sm:$0xff] %v6093_v25  ;;  %v2203_v56 = vshrl.u32 %v2075_v44, 16  ;;  %v2077_v20 = vmul.u32 2221713035, %v1949_v61  ;;  %v6102_v9 = vadd.f32 %v6051_v53, %v5545_v16  ;;  %v6104_v46 = vpop.f32.mrb[30].mxu0  ;;  %v1047_v38 = vadd.s32 80, %v5399_v60 }
 0x1a3   : > { %7377 = vst [vmem:[#allocation20_spill] sm:$0xff] %v6089_v62  ;;  %v3352_v21 = vshrl.u32 %v3224_v23, 16  ;;  %v2074_v41 = vmul.u32 2221713035, %v1946_v29  ;;  %7379 = vst [vmem:[#allocation16_spill] sm:$0xff] %v6104_v46  ;;  %v6107_v36 = vpop.f32.mrb[30].mxu1  ;;  %v6114_v7 = vadd.f32 %v6056_v15, %v5500_v42  ;;  %v6130_v52 = vadd.f32 %v6061_v57, %v5532_v6 }
 0x1a4   : > { %v2331_v10 = vxor.u32 %v2203_v56, %v2075_v44  ;;  %v2076_v51 = vmul.u32 2221713035, %v1948_v39  ;;  %7380 = vst [vmem:[#allocation14_spill] sm:$0xff] %v6107_v36  ;;  %v6109_v31 = vpop.f32.mrb[31].mxu0  ;;  %v2205_v28 = vshrl.u32 %v2077_v20, 16  ;;  %v6116_v53 = vpop.f32.mrb[31].mxu1 }
 0x1a5   : > { %v3480_v54 = vxor.u32 %v3352_v21, %v3224_v23  ;;  %7381 = vst [vmem:[#allocation18_spill] sm:$0xff] %v6109_v31  ;;  %v2202_v22 = vshrl.u32 %v2074_v41, 16  ;;  %7382 = vst [vmem:[#allocation17_spill] sm:$0xff] %v6114_v7  ;;  %v1081_v23 = vadd.s32 %v5406_v3, %v1047_v38 }
 0x1a6   : > { %7383 = vst [vmem:[#allocation21_spill] sm:$0xff] %v6116_v53  ;;  %v2459_v4 = vxor.u32 2654435769, %v2331_v10  ;;  %v2204_v45 = vshrl.u32 %v2076_v51, 16  ;;  %v2333_v44 = vxor.u32 %v2205_v28, %v2077_v20  ;;  %v6126_v10 = vadd.f32 %v6059_v11, %v5555_v26 }
 0x1a7   : > { %vm3608_vm3 = vcmp.ge.u32.totalorder %v3480_v54, 429496730  ;;  %v2330_v40 = vxor.u32 %v2202_v22, %v2074_v41  ;;  %v1118_v15 = vmul.u32 512, %v1081_v23  ;;  %v6136_v28 = vpop.f32.mrb[32].mxu1 }
 0x1a8   : > { %4585 = vmatmul.mubr.msk.f32.gmra.mrb[80].mxu0 %vm3608_vm3, %v942_v18  ;;  %v2587_v21 = vshrl.u32 %v2459_v4, 16  ;;  %v2332_v56 = vxor.u32 %v2204_v45, %v2076_v51  ;;  %v2461_v12 = vxor.u32 2654435769, %v2333_v44  ;;  %v6132_v18 = vpop.f32.mrb[32].mxu0  ;;  %7385 = vst [vmem:[#allocation23_spill] sm:$0xff] %v6136_v28  ;;  %v6142_v57 = vpop.f32.mrb[33].mxu1 }
 0x1a9   : > { %v2458_v54 = vxor.u32 2654435769, %v2330_v40  ;;  %7384 = vst [vmem:[#allocation22_spill] sm:$0xff] %v6132_v18  ;;  %v1181_v38 = vadd.s32 %v1118_v15, %v7372_v17  ;;  %v1183_v51 = vadd.s32 %v1118_v15, %v7373_v59  ;;  %v6138_v22 = vpop.f32.mrb[33].mxu0  ;;  %v1180_v11 = vadd.s32 %v1118_v15, %v7374_v34  ;;  %7387 = vst [vmem:[#allocation25_spill] sm:$0xff] %v6142_v57 }
 0x1aa   : > { %v2715_v20 = vxor.u32 %v2587_v21, %v2459_v4  ;;  %v2460_v41 = vxor.u32 2654435769, %v2332_v56  ;;  %7386 = vst [vmem:[#allocation24_spill] sm:$0xff] %v6138_v22  ;;  %v2589_v45 = vshrl.u32 %v2461_v12, 16  ;;  %v1182_v44 = vadd.s32 %v1118_v15, %v7376_v43 }
 0x1ab   : > { %v2586_v23 = vshrl.u32 %v2458_v54, 16  ;;  %v1311_v4 = vxor.u32 %v7375_v48, %v1181_v38  ;;  %v1313_v21 = vxor.u32 %v7375_v48, %v1183_v51  ;;  %v1310_v29 = vxor.u32 %v7375_v48, %v1180_v11 }
 0x1ac   : > { %v2843_v40 = vmul.u32 2146121005, %v2715_v20  ;;  %v2588_v39 = vshrl.u32 %v2460_v41, 16  ;;  %v2717_v56 = vxor.u32 %v2589_v45, %v2461_v12  ;;  %v1312_v61 = vxor.u32 %v7375_v48, %v1182_v44 }
 0x1ad   : > { %v2714_v13 = vxor.u32 %v2586_v23, %v2458_v54  ;;  %v1439_v22 = vshrl.u32 %v1311_v4, 16  ;;  %v1441_v28 = vshrl.u32 %v1313_v21, 16  ;;  %v1438_v7 = vshrl.u32 %v1310_v29, 16 }
 0x1ae   : > { %v2971_v35 = vshrl.u32 %v2843_v40, 15  ;;  %v2716_v49 = vxor.u32 %v2588_v39, %v2460_v41  ;;  %v2845_v18 = vmul.u32 2146121005, %v2717_v56  ;;  %v1440_v57 = vshrl.u32 %v1312_v61, 16 }
 0x1af   : > { %v2842_v15 = vmul.u32 2146121005, %v2714_v13  ;;  %v1567_v31 = vxor.u32 %v1439_v22, %v1311_v4  ;;  %v1569_v38 = vxor.u32 %v1441_v28, %v1313_v21  ;;  %v1566_v12 = vxor.u32 %v1438_v7, %v1310_v29 }
 0x1b0   : > { %v3099_v20 = vxor.u32 %v2971_v35, %v2843_v40  ;;  %v2844_v53 = vmul.u32 2146121005, %v2716_v49  ;;  %v2973_v36 = vshrl.u32 %v2845_v18, 15  ;;  %v1568_v54 = vxor.u32 %v1440_v57, %v1312_v61 }
 0x1b1   : > { %v2970_v51 = vshrl.u32 %v2842_v15, 15  ;;  %v1695_v11 = vmul.u32 2146121005, %v1567_v31  ;;  %v1697_v46 = vmul.u32 2146121005, %v1569_v38 }
 0x1b2   : > { %v3227_v45 = vmul.u32 2221713035, %v3099_v20  ;;  %v2972_v23 = vshrl.u32 %v2844_v53, 15  ;;  %v3101_v39 = vxor.u32 %v2973_v36, %v2845_v18  ;;  %v1694_v56 = vmul.u32 2146121005, %v1566_v12 }
 0x1b3   : > { %v3098_v41 = vxor.u32 %v2970_v51, %v2842_v15  ;;  %v1823_v62 = vshrl.u32 %v1695_v11, 15  ;;  %v1696_v35 = vmul.u32 2146121005, %v1568_v54  ;;  %v1825_v28 = vshrl.u32 %v1697_v46, 15 }
 0x1b4   : > { %v3355_v13 = vshrl.u32 %v3227_v45, 16  ;;  %v3100_v25 = vxor.u32 %v2972_v23, %v2844_v53  ;;  %v3229_v49 = vmul.u32 2221713035, %v3101_v39  ;;  %v1822_v40 = vshrl.u32 %v1694_v56, 15 }
 0x1b5   : > { %v3226_v22 = vmul.u32 2221713035, %v3098_v41  ;;  %v1951_v61 = vxor.u32 %v1823_v62, %v1695_v11  ;;  %v1824_v29 = vshrl.u32 %v1696_v35, 15  ;;  %v1953_v21 = vxor.u32 %v1825_v28, %v1697_v46 }
 0x1b6   : > { %v3483_v4 = vxor.u32 %v3355_v13, %v3227_v45  ;;  %v3228_v7 = vmul.u32 2221713035, %v3100_v25  ;;  %v3357_v57 = vshrl.u32 %v3229_v49, 16  ;;  %v1950_v20 = vxor.u32 %v1822_v40, %v1694_v56 }
 0x1b7   : > { %v3354_v31 = vshrl.u32 %v3226_v22, 16  ;;  %v2079_v18 = vmul.u32 2221713035, %v1951_v61  ;;  %v1952_v15 = vxor.u32 %v1824_v29, %v1696_v35  ;;  %v7388_v53 = vmax.f32 %v6019_v50, 0.0 }
 0x1b8   : > { %vm3611_vm4 = vcmp.ge.u32.totalorder %v3483_v4, 429496730  ;;  %v3356_v36 = vshrl.u32 %v3228_v7, 16  ;;  %v3485_v38 = vxor.u32 %v3357_v57, %v3229_v49  ;;  %v2081_v12 = vmul.u32 2221713035, %v1953_v21 }
 0x1b9   : > { %4522 = vmatprep.mubr.msk.f32.mxu1 %vm3611_vm4, %v7388_v53  ;;  %v3482_v51 = vxor.u32 %v3354_v31, %v3226_v22  ;;  %v2078_v54 = vmul.u32 2221713035, %v1950_v20  ;;  %v2207_v45 = vshrl.u32 %v2079_v18, 16  ;;  %v2080_v25 = vmul.u32 2221713035, %v1952_v15 }
 0x1ba   : > { %v3484_v23 = vxor.u32 %v3356_v36, %v3228_v7  ;;  %v6153_v62 = vadd.f32 %v6063_v32, %v5545_v16  ;;  %vm3613_vm5 = vcmp.ge.u32.totalorder %v3485_v38, 429496730  ;;  %v2209_v46 = vshrl.u32 %v2081_v12, 16 }
 0x1bb   : > { %vm3610_vm6 = vcmp.ge.u32.totalorder %v3482_v51, 429496730  ;;  %v2206_v11 = vshrl.u32 %v2078_v54, 16  ;;  %v7389_v39 = vmax.f32 %v6022_v19, 0.0  ;;  %v7390_v50 = vmax.f32 %v6013_v0, 0.0 }
 0x1bc   : > { %vm3612_vm7 = vcmp.ge.u32.totalorder %v3484_v23, 429496730  ;;  %v2335_v41 = vxor.u32 %v2207_v45, %v2079_v18  ;;  %v2208_v56 = vshrl.u32 %v2080_v25, 16  ;;  %v1048_v13 = vadd.s32 88, %v5399_v60 }
 0x1bd   : > { %4586 = vmatprep.mubr.msk.f32.mxu0 %vm3613_vm5, %v7389_v39  ;;  %4523 = vmatmul.mubr.msk.f32.gmra.mrb[82].mxu1 %vm3610_vm6, %v7390_v50  ;;  %v7391_v35 = vmax.f32 %v6016_v1, 0.0  ;;  %v2337_v32 = vxor.u32 %v2209_v46, %v2081_v12  ;;  %v2334_v49 = vxor.u32 %v2206_v11, %v2078_v54  ;;  %v6164_v22 = vadd.f32 %v6065_v63, %v5500_v42 }
 0x1be   : > { %v6168_v19 = vadd.f32 %v6067_v33, %v5555_v26  ;;  %v2463_v0 = vxor.u32 2654435769, %v2335_v41  ;;  %v2336_v28 = vxor.u32 %v2208_v56, %v2080_v25  ;;  %v1082_v4 = vadd.s32 %v5406_v3, %v1048_v13 }
 0x1bf   : > { %4587 = vmatmul.mubr.msk.f32.gmra.mrb[82].mxu0 %vm3612_vm7, %v7391_v35  ;;  %v2465_v7 = vxor.u32 2654435769, %v2337_v32  ;;  %v2462_v61 = vxor.u32 2654435769, %v2334_v49  ;;  %v6175_v29 = vadd.f32 %v6069_v14, %v5532_v6  ;;  %v1049_v18 = vadd.s32 96, %v5399_v60 }
 0x1c0   : > { %v2591_v63 = vshrl.u32 %v2463_v0, 16  ;;  %v2464_v57 = vxor.u32 2654435769, %v2336_v28  ;;  %v1119_v31 = vmul.u32 512, %v1082_v4  ;;  %v6193_v36 = vadd.f32 %v6073_v30, %v5545_v16 }
 0x1c1   : > { %v2593_v21 = vshrl.u32 %v2465_v7, 16  ;;  %v2590_v20 = vshrl.u32 %v2462_v61, 16 }
 0x1c2   : > { %v2719_v15 = vxor.u32 %v2591_v63, %v2463_v0  ;;  %v2592_v53 = vshrl.u32 %v2464_v57, 16  ;;  %v1185_v38 = vadd.s32 %v1119_v31, %v7372_v17  ;;  %v1187_v51 = vadd.s32 %v1119_v31, %v7373_v59 }
 0x1c3   : > { %v2721_v12 = vxor.u32 %v2593_v21, %v2465_v7  ;;  %v2718_v14 = vxor.u32 %v2590_v20, %v2462_v61  ;;  %v1184_v54 = vadd.s32 %v1119_v31, %v7374_v34  ;;  %v1186_v23 = vadd.s32 %v1119_v31, %v7376_v43 }
 0x1c4   : > { %v2847_v45 = vmul.u32 2146121005, %v2719_v15  ;;  %v2720_v25 = vxor.u32 %v2592_v53, %v2464_v57  ;;  %v1315_v46 = vxor.u32 %v7375_v48, %v1185_v38  ;;  %v1317_v11 = vxor.u32 %v7375_v48, %v1187_v51 }
 0x1c5   : > { %v2849_v39 = vmul.u32 2146121005, %v2721_v12  ;;  %v2846_v50 = vmul.u32 2146121005, %v2718_v14  ;;  %v1314_v41 = vxor.u32 %v7375_v48, %v1184_v54  ;;  %v1316_v56 = vxor.u32 %v7375_v48, %v1186_v23  ;;  %v6189_v54 = vpop.f32.mrb[34].mxu0 }
 0x1c6   : > { %v2975_v13 = vshrl.u32 %v2847_v45, 15  ;;  %v2848_v35 = vmul.u32 2146121005, %v2720_v25  ;;  %v1443_v32 = vshrl.u32 %v1315_v46, 16  ;;  %v1445_v49 = vshrl.u32 %v1317_v11, 16 }
 0x1c7   : > { %v2977_v0 = vshrl.u32 %v2849_v39, 15  ;;  %v2974_v28 = vshrl.u32 %v2846_v50, 15  ;;  %v1442_v4 = vshrl.u32 %v1314_v41, 16  ;;  %v1444_v7 = vshrl.u32 %v1316_v56, 16 }
 0x1c8   : > { %v3103_v61 = vxor.u32 %v2975_v13, %v2847_v45  ;;  %v2976_v63 = vshrl.u32 %v2848_v35, 15  ;;  %v1571_v57 = vxor.u32 %v1443_v32, %v1315_v46  ;;  %v1573_v31 = vxor.u32 %v1445_v49, %v1317_v11  ;;  %v6196_v46 = vpop.f32.mrb[34].mxu1  ;;  %v6198_v11 = vpop.f32.mrb[35].mxu0 }
 0x1c9   : > { %v3105_v21 = vxor.u32 %v2977_v0, %v2849_v39  ;;  %v3102_v20 = vxor.u32 %v2974_v28, %v2846_v50  ;;  %v1570_v15 = vxor.u32 %v1442_v4, %v1314_v41  ;;  %v1572_v53 = vxor.u32 %v1444_v7, %v1316_v56  ;;  %v6200_v30 = vpop.f32.mrb[35].mxu1 }
 0x1ca   : > { %v3231_v38 = vmul.u32 2221713035, %v3103_v61  ;;  %v3104_v51 = vxor.u32 %v2976_v63, %v2848_v35  ;;  %v1699_v12 = vmul.u32 2146121005, %v1571_v57  ;;  %v1083_v45 = vadd.s32 %v5406_v3, %v1049_v18 }
 0x1cb   : > { %v3233_v23 = vmul.u32 2221713035, %v3105_v21  ;;  %v3230_v25 = vmul.u32 2221713035, %v3102_v20 }
 0x1cc   : > { %v3359_v39 = vshrl.u32 %v3231_v38, 16  ;;  %v3232_v50 = vmul.u32 2221713035, %v3104_v51  ;;  %v1827_v41 = vshrl.u32 %v1699_v12, 15  ;;  %v1701_v56 = vmul.u32 2146121005, %v1573_v31 }
 0x1cd   : > { %v3361_v13 = vshrl.u32 %v3233_v23, 16  ;;  %v3358_v35 = vshrl.u32 %v3230_v25, 16  ;;  %v1698_v32 = vmul.u32 2146121005, %v1570_v15  ;;  %v1700_v49 = vmul.u32 2146121005, %v1572_v53 }
 0x1ce   : > { %v3487_v0 = vxor.u32 %v3359_v39, %v3231_v38  ;;  %v3360_v28 = vshrl.u32 %v3232_v50, 16  ;;  %v1955_v4 = vxor.u32 %v1827_v41, %v1699_v12  ;;  %v1829_v7 = vshrl.u32 %v1701_v56, 15 }
 0x1cf   : > { %v3489_v61 = vxor.u32 %v3361_v13, %v3233_v23  ;;  %v3486_v18 = vxor.u32 %v3358_v35, %v3230_v25  ;;  %v1826_v63 = vshrl.u32 %v1698_v32, 15  ;;  %v1828_v57 = vshrl.u32 %v1700_v49, 15 }
 0x1d0   : > { %vm3615_vm8 = vcmp.ge.u32.totalorder %v3487_v0, 429496730  ;;  %v3488_v21 = vxor.u32 %v3360_v28, %v3232_v50  ;;  %v2083_v20 = vmul.u32 2221713035, %v1955_v4  ;;  %v1957_v51 = vxor.u32 %v1829_v7, %v1701_v56 }
 0x1d1   : > { %v7392_v31 = vmax.f32 %v6035_v58, 0.0  ;;  %vm3617_vm9 = vcmp.ge.u32.totalorder %v3489_v61, 429496730  ;;  %vm3614_vm10 = vcmp.ge.u32.totalorder %v3486_v18, 429496730  ;;  %v1954_v15 = vxor.u32 %v1826_v63, %v1698_v32 }
 0x1d2   : > { %v1956_v53 = vxor.u32 %v1828_v57, %v1700_v49  ;;  %v7393_v38 = vmax.f32 %v6041_v55, 0.0  ;;  %v7394_v12 = vmax.f32 %v6029_v24, 0.0  ;;  %vm3616_vm11 = vcmp.ge.u32.totalorder %v3488_v21, 429496730 }
 0x1d3   : > { %4524 = vmatprep.mubr.msk.f32.mxu1 %vm3615_vm8, %v7392_v31  ;;  %v2211_v23 = vshrl.u32 %v2083_v20, 16  ;;  %v2085_v25 = vmul.u32 2221713035, %v1957_v51  ;;  %v1120_v39 = vmul.u32 512, %v1083_v45  ;;  %v7395_v50 = vmax.f32 %v6032_v47, 0.0 }
 0x1d4   : > { %4588 = vmatprep.mubr.msk.f32.mxu0 %vm3617_vm9, %v7393_v38  ;;  %4525 = vmatmul.mubr.msk.f32.gmra.mrb[84].mxu1 %vm3614_vm10, %v7394_v12  ;;  %v2082_v41 = vmul.u32 2221713035, %v1954_v15  ;;  %v2084_v58 = vmul.u32 2221713035, %v1956_v53  ;;  %v6213_v13 = vadd.f32 %v6080_v2, %v5500_v42  ;;  %v6223_v15 = vpop.f32.mrb[36].mxu0 }
 0x1d5   : > { %4589 = vmatmul.mubr.msk.f32.gmra.mrb[84].mxu0 %vm3616_vm11, %v7395_v50  ;;  %v2339_v55 = vxor.u32 %v2211_v23, %v2083_v20  ;;  %v2213_v35 = vshrl.u32 %v2085_v25, 16  ;;  %v1189_v24 = vadd.s32 %v1120_v39, %v7372_v17  ;;  %v1191_v32 = vadd.s32 %v1120_v39, %v7373_v59 }
 0x1d6   : > { %v2210_v49 = vshrl.u32 %v2082_v41, 16  ;;  %v2212_v0 = vshrl.u32 %v2084_v58, 16  ;;  %v1188_v45 = vadd.s32 %v1120_v39, %v7374_v34  ;;  %v1190_v47 = vadd.s32 %v1120_v39, %v7376_v43 }
 0x1d7   : > { %v2467_v28 = vxor.u32 2654435769, %v2339_v55  ;;  %v2341_v4 = vxor.u32 %v2213_v35, %v2085_v25  ;;  %v1319_v7 = vxor.u32 %v7375_v48, %v1189_v24  ;;  %v1321_v61 = vxor.u32 %v7375_v48, %v1191_v32 }
 0x1d8   : > { %v2338_v2 = vxor.u32 %v2210_v49, %v2082_v41  ;;  %v2340_v18 = vxor.u32 %v2212_v0, %v2084_v58  ;;  %v1318_v63 = vxor.u32 %v7375_v48, %v1188_v45  ;;  %v1320_v57 = vxor.u32 %v7375_v48, %v1190_v47  ;;  %v6225_v41 = vpop.f32.mrb[36].mxu1  ;;  %v6227_v58 = vpop.f32.mrb[37].mxu0 }
 0x1d9   : > { %v2595_v21 = vshrl.u32 %v2467_v28, 16  ;;  %v2469_v20 = vxor.u32 2654435769, %v2341_v4  ;;  %v1447_v51 = vshrl.u32 %v1319_v7, 16  ;;  %v1449_v31 = vshrl.u32 %v1321_v61, 16  ;;  %7396 = vst [vmem:[#allocation26_spill] sm:$0xff] %v6227_v58 }
 0x1da   : > { %v2466_v53 = vxor.u32 2654435769, %v2338_v2  ;;  %v2468_v38 = vxor.u32 2654435769, %v2340_v18  ;;  %v1446_v12 = vshrl.u32 %v1318_v63, 16  ;;  %v1448_v23 = vshrl.u32 %v1320_v57, 16 }
 0x1db   : > { %v2723_v25 = vxor.u32 %v2595_v21, %v2467_v28  ;;  %v2597_v39 = vshrl.u32 %v2469_v20, 16  ;;  %v1575_v50 = vxor.u32 %v1447_v51, %v1319_v7  ;;  %v1577_v55 = vxor.u32 %v1449_v31, %v1321_v61  ;;  %v6229_v0 = vpop.f32.mrb[37].mxu1 }
 0x1dc   : > { %v2594_v35 = vshrl.u32 %v2466_v53, 16  ;;  %v2596_v24 = vshrl.u32 %v2468_v38, 16  ;;  %v1574_v32 = vxor.u32 %v1446_v12, %v1318_v63  ;;  %v1576_v49 = vxor.u32 %v1448_v23, %v1320_v57  ;;  %7397 = vst [vmem:[#allocation27_spill] sm:$0xff] %v6229_v0 }
 0x1dd   : > { %v2851_v45 = vmul.u32 2146121005, %v2723_v25  ;;  %v2725_v47 = vxor.u32 %v2597_v39, %v2469_v20  ;;  %v1703_v4 = vmul.u32 2146121005, %v1575_v50  ;;  %v6233_v2 = vadd.f32 %v6084_v37, %v5555_v26 }
 0x1de   : > { %v2722_v28 = vxor.u32 %v2594_v35, %v2466_v53  ;;  %v2724_v7 = vxor.u32 %v2596_v24, %v2468_v38  ;;  %v1705_v61 = vmul.u32 2146121005, %v1577_v55  ;;  %v1702_v18 = vmul.u32 2146121005, %v1574_v32 }
 0x1df   : > { %v2979_v21 = vshrl.u32 %v2851_v45, 15  ;;  %v2853_v51 = vmul.u32 2146121005, %v2725_v47  ;;  %v1831_v31 = vshrl.u32 %v1703_v4, 15  ;;  %v1704_v33 = vmul.u32 2146121005, %v1576_v49 }
 0x1e0   : > { %v2850_v56 = vmul.u32 2146121005, %v2722_v28  ;;  %v2852_v63 = vmul.u32 2146121005, %v2724_v7  ;;  %v1833_v57 = vshrl.u32 %v1705_v61, 15  ;;  %v1830_v12 = vshrl.u32 %v1702_v18, 15 }
 0x1e1   : > { %v3107_v23 = vxor.u32 %v2979_v21, %v2851_v45  ;;  %v2981_v25 = vshrl.u32 %v2853_v51, 15  ;;  %v1959_v20 = vxor.u32 %v1831_v31, %v1703_v4  ;;  %v1832_v39 = vshrl.u32 %v1704_v33, 15 }
 0x1e2   : > { %v2978_v50 = vshrl.u32 %v2850_v56, 15  ;;  %v2980_v14 = vshrl.u32 %v2852_v63, 15  ;;  %v1961_v37 = vxor.u32 %v1833_v57, %v1705_v61  ;;  %v1958_v44 = vxor.u32 %v1830_v12, %v1702_v18 }
 0x1e3   : > { %v3235_v53 = vmul.u32 2221713035, %v3107_v23  ;;  %v3109_v38 = vxor.u32 %v2981_v25, %v2853_v51  ;;  %v2087_v55 = vmul.u32 2221713035, %v1959_v20  ;;  %v1960_v35 = vxor.u32 %v1832_v39, %v1704_v33 }
 0x1e4   : > { %v3106_v24 = vxor.u32 %v2978_v50, %v2850_v56  ;;  %v3108_v32 = vxor.u32 %v2980_v14, %v2852_v63  ;;  %v2089_v47 = vmul.u32 2221713035, %v1961_v37  ;;  %v2086_v49 = vmul.u32 2221713035, %v1958_v44 }
 0x1e5   : > { %v3363_v28 = vshrl.u32 %v3235_v53, 16  ;;  %v3237_v7 = vmul.u32 2221713035, %v3109_v38  ;;  %v2215_v1 = vshrl.u32 %v2087_v55, 16  ;;  %v2088_v40 = vmul.u32 2221713035, %v1960_v35 }
 0x1e6   : > { %v3234_v45 = vmul.u32 2221713035, %v3106_v24  ;;  %v3236_v21 = vmul.u32 2221713035, %v3108_v32  ;;  %v2217_v4 = vshrl.u32 %v2089_v47, 16  ;;  %v2214_v31 = vshrl.u32 %v2086_v49, 16 }
 0x1e7   : > { %v3491_v0 = vxor.u32 %v3363_v28, %v3235_v53  ;;  %v3365_v58 = vshrl.u32 %v3237_v7, 16  ;;  %v2343_v61 = vxor.u32 %v2215_v1, %v2087_v55  ;;  %v2216_v18 = vshrl.u32 %v2088_v40, 16  ;;  %v7404_v28 = vld [vmem:[#allocation16_spill] sm:$0xff] }
 0x1e8   : > { %v3362_v57 = vshrl.u32 %v3234_v45, 16  ;;  %v3364_v51 = vshrl.u32 %v3236_v21, 16  ;;  %v2345_v12 = vxor.u32 %v2217_v4, %v2089_v47  ;;  %v2342_v33 = vxor.u32 %v2214_v31, %v2086_v49  ;;  %v7414_v4 = vld [vmem:[#allocation17_spill] sm:$0xff] }
 0x1e9   : > { %vm3619_vm12 = vcmp.ge.u32.totalorder %v3491_v0, 429496730  ;;  %v3493_v14 = vxor.u32 %v3365_v58, %v3237_v7  ;;  %v2471_v56 = vxor.u32 2654435769, %v2343_v61  ;;  %v2344_v44 = vxor.u32 %v2216_v18, %v2088_v40  ;;  %v7401_v0 = vld [vmem:[#allocation20_spill] sm:$0xff] }
 0x1ea   : > { %v7398_v63 = vmax.f32 %v6098_v8, 0.0  ;;  %v3490_v23 = vxor.u32 %v3362_v57, %v3234_v45  ;;  %v3492_v25 = vxor.u32 %v3364_v51, %v3236_v21  ;;  %v2473_v20 = vxor.u32 2654435769, %v2345_v12 }
 0x1eb   : > { %v2470_v39 = vxor.u32 2654435769, %v2342_v33  ;;  %vm3621_vm13 = vcmp.ge.u32.totalorder %v3493_v14, 429496730  ;;  %v2599_v50 = vshrl.u32 %v2471_v56, 16  ;;  %v6239_v1 = vadd.f32 %v6091_v5, %v5532_v6  ;;  %v7403_v5 = vld [vmem:[#allocation15_spill] sm:$0xff] }
 0x1ec   : > { %4526 = vmatprep.mubr.msk.f32.mxu1 %vm3619_vm12, %v7398_v63  ;;  %v2472_v37 = vxor.u32 2654435769, %v2344_v44  ;;  %v7399_v53 = vmax.f32 %v6102_v9, 0.0  ;;  %vm3618_vm14 = vcmp.ge.u32.totalorder %v3490_v23, 429496730  ;;  %v2601_v40 = vshrl.u32 %v2473_v20, 16 }
 0x1ed   : > { %vm3620_vm15 = vcmp.ge.u32.totalorder %v3492_v25, 429496730  ;;  %v2598_v58 = vshrl.u32 %v2470_v39, 16  ;;  %v7400_v8 = vmax.f32 %v6078_v27, 0.0  ;;  %v7402_v38 = vmax.f32 %v7401_v0, 0.0  ;;  %v7405_v14 = vld [vmem:[#allocation14_spill] sm:$0xff] }
 0x1ee   : > { %4590 = vmatprep.mubr.msk.f32.mxu0 %vm3621_vm13, %v7399_v53  ;;  %v2727_v55 = vxor.u32 %v2599_v50, %v2471_v56  ;;  %v2600_v35 = vshrl.u32 %v2472_v37, 16  ;;  %v6250_v32 = vadd.f32 %v7403_v5, %v5545_v16  ;;  %v2729_v9 = vxor.u32 %v2601_v40, %v2473_v20  ;;  %v7407_v25 = vld [vmem:[#allocation18_spill] sm:$0xff] }
 0x1ef   : > { %4527 = vmatmul.mubr.msk.f32.gmra.mrb[86].mxu1 %vm3618_vm14, %v7400_v8  ;;  %4591 = vmatmul.mubr.msk.f32.gmra.mrb[86].mxu0 %vm3620_vm15, %v7402_v38  ;;  %v2726_v47 = vxor.u32 %v2598_v58, %v2470_v39  ;;  %v1050_v49 = vadd.s32 104, %v5399_v60  ;;  %v6255_v7 = vadd.f32 %v7404_v28, %v5500_v42  ;;  %v6264_v56 = vadd.f32 %v7405_v14, %v5555_v26 }
 0x1f0   : > { %v2855_v27 = vmul.u32 2146121005, %v2727_v55  ;;  %v2728_v45 = vxor.u32 %v2600_v35, %v2472_v37  ;;  %v2857_v31 = vmul.u32 2146121005, %v2729_v9  ;;  %v6268_v20 = vadd.f32 %v7407_v25, %v5532_v6  ;;  %v7408_v37 = vld [vmem:[#allocation21_spill] sm:$0xff]  ;;  %v6285_v25 = vpop.f32.mrb[38].mxu1 }
 0x1f1   : > { %v2854_v61 = vmul.u32 2146121005, %v2726_v47  ;;  %v1084_v57 = vadd.s32 %v5406_v3, %v1050_v49  ;;  %7406 = vst [vmem:[#allocation20_spill] sm:$0xff] %v6264_v56  ;;  %v6272_v53 = vadd.f32 %v7408_v37, %v5545_v16  ;;  %v1051_v40 = vadd.s32 112, %v5399_v60  ;;  %7409 = vst [vmem:[#allocation15_spill] sm:$0xff] %v6285_v25 }
 0x1f2   : > { %v2983_v51 = vshrl.u32 %v2855_v27, 15  ;;  %v2856_v12 = vmul.u32 2146121005, %v2728_v45  ;;  %v2985_v44 = vshrl.u32 %v2857_v31, 15  ;;  %v7412_v24 = vmax.f32 %v6130_v52, 0.0 }
 0x1f3   : > { %v2982_v63 = vshrl.u32 %v2854_v61, 15  ;;  %v1121_v23 = vmul.u32 512, %v1084_v57  ;;  %v7413_v18 = vmax.f32 %v6153_v62, 0.0 }
 0x1f4   : > { %v3111_v39 = vxor.u32 %v2983_v51, %v2855_v27  ;;  %v2984_v50 = vshrl.u32 %v2856_v12, 15  ;;  %v3113_v58 = vxor.u32 %v2985_v44, %v2857_v31 }
 0x1f5   : > { %v3110_v8 = vxor.u32 %v2982_v63, %v2854_v61  ;;  %v1193_v0 = vadd.s32 %v1121_v23, %v7372_v17  ;;  %v1195_v38 = vadd.s32 %v1121_v23, %v7373_v59  ;;  %v1192_v5 = vadd.s32 %v1121_v23, %v7374_v34  ;;  %v6283_v63 = vpop.f32.mrb[38].mxu0 }
 0x1f6   : > { %v3239_v55 = vmul.u32 2221713035, %v3111_v39  ;;  %v3112_v35 = vxor.u32 %v2984_v50, %v2856_v12  ;;  %v1194_v9 = vadd.s32 %v1121_v23, %v7376_v43  ;;  %v3241_v47 = vmul.u32 2221713035, %v3113_v58  ;;  %v6287_v58 = vpop.f32.mrb[39].mxu0 }
 0x1f7   : > { %v3238_v49 = vmul.u32 2221713035, %v3110_v8  ;;  %v1323_v28 = vxor.u32 %v7375_v48, %v1193_v0  ;;  %v1325_v27 = vxor.u32 %v7375_v48, %v1195_v38  ;;  %v1322_v31 = vxor.u32 %v7375_v48, %v1192_v5  ;;  %7410 = vst [vmem:[#allocation16_spill] sm:$0xff] %v6287_v58  ;;  %v6289_v8 = vpop.f32.mrb[39].mxu1 }
 0x1f8   : > { %v3367_v45 = vshrl.u32 %v3239_v55, 16  ;;  %v3240_v57 = vmul.u32 2221713035, %v3112_v35  ;;  %v1324_v61 = vxor.u32 %v7375_v48, %v1194_v9  ;;  %v3369_v51 = vshrl.u32 %v3241_v47, 16  ;;  %7411 = vst [vmem:[#allocation14_spill] sm:$0xff] %v6289_v8 }
 0x1f9   : > { %v3366_v14 = vshrl.u32 %v3238_v49, 16  ;;  %v1451_v44 = vshrl.u32 %v1323_v28, 16  ;;  %v1453_v12 = vshrl.u32 %v1325_v27, 16  ;;  %v1450_v50 = vshrl.u32 %v1322_v31, 16 }
 0x1fa   : > { %v3495_v23 = vxor.u32 %v3367_v45, %v3239_v55  ;;  %v3368_v39 = vshrl.u32 %v3240_v57, 16  ;;  %v1452_v37 = vshrl.u32 %v1324_v61, 16  ;;  %v3497_v0 = vxor.u32 %v3369_v51, %v3241_v47 }
 0x1fb   : > { %v3494_v38 = vxor.u32 %v3366_v14, %v3238_v49  ;;  %v1579_v35 = vxor.u32 %v1451_v44, %v1323_v28  ;;  %v1581_v5 = vxor.u32 %v1453_v12, %v1325_v27  ;;  %v1578_v33 = vxor.u32 %v1450_v50, %v1322_v31 }
 0x1fc   : > { %vm3623_vm0 = vcmp.ge.u32.totalorder %v3495_v23, 429496730  ;;  %v3496_v9 = vxor.u32 %v3368_v39, %v3240_v57  ;;  %v1580_v21 = vxor.u32 %v1452_v37, %v1324_v61  ;;  %vm3625_vm1 = vcmp.ge.u32.totalorder %v3497_v0, 429496730 }
 0x1fd   : > { %4528 = vmatprep.mubr.msk.f32.mxu1 %vm3623_vm0, %v7412_v24  ;;  %vm3622_vm2 = vcmp.ge.u32.totalorder %v3494_v38, 429496730  ;;  %v1707_v55 = vmul.u32 2146121005, %v1579_v35  ;;  %v1085_v45 = vadd.s32 %v5406_v3, %v1051_v40  ;;  %4592 = vmatprep.mubr.msk.f32.mxu0 %vm3625_vm1, %v7413_v18  ;;  %v7415_v47 = vmax.f32 %v7414_v4, 0.0 }
 0x1fe   : > { %vm3624_vm3 = vcmp.ge.u32.totalorder %v3496_v9, 429496730  ;;  %v1709_v49 = vmul.u32 2146121005, %v1581_v5  ;;  %v1706_v28 = vmul.u32 2146121005, %v1578_v33 }
 0x1ff   : > { %4529 = vmatmul.mubr.msk.f32.gmra.mrb[88].mxu1 %vm3622_vm2, %v7415_v47  ;;  %v7416_v27 = vmax.f32 %v6126_v10, 0.0  ;;  %v1835_v57 = vshrl.u32 %v1707_v55, 15  ;;  %v1708_v52 = vmul.u32 2146121005, %v1580_v21  ;;  %v1122_v31 = vmul.u32 512, %v1085_v45 }
 0x200   : > { %v1837_v61 = vshrl.u32 %v1709_v49, 15  ;;  %v1834_v51 = vshrl.u32 %v1706_v28, 15 }
 0x201   : > { %4593 = vmatmul.mubr.msk.f32.gmra.mrb[88].mxu0 %vm3624_vm3, %v7416_v27  ;;  %v1963_v18 = vxor.u32 %v1835_v57, %v1707_v55  ;;  %v1836_v4 = vshrl.u32 %v1708_v52, 15  ;;  %v1197_v14 = vadd.s32 %v1122_v31, %v7372_v17  ;;  %v1199_v33 = vadd.s32 %v1122_v31, %v7373_v59 }
 0x202   : > { %v1965_v44 = vxor.u32 %v1837_v61, %v1709_v49  ;;  %v1962_v10 = vxor.u32 %v1834_v51, %v1706_v28  ;;  %v1196_v12 = vadd.s32 %v1122_v31, %v7374_v34  ;;  %v1198_v21 = vadd.s32 %v1122_v31, %v7376_v43 }
 0x203   : > { %v2091_v23 = vmul.u32 2221713035, %v1963_v18  ;;  %v1964_v39 = vxor.u32 %v1836_v4, %v1708_v52  ;;  %v1327_v50 = vxor.u32 %v7375_v48, %v1197_v14  ;;  %v1329_v37 = vxor.u32 %v7375_v48, %v1199_v33  ;;  %v6311_v18 = vpop.f32.mrb[40].mxu0  ;;  %v6313_v4 = vpop.f32.mrb[40].mxu1 }
 0x204   : > { %v2093_v0 = vmul.u32 2221713035, %v1965_v44  ;;  %v2090_v38 = vmul.u32 2221713035, %v1962_v10  ;;  %v1326_v35 = vxor.u32 %v7375_v48, %v1196_v12  ;;  %v1328_v5 = vxor.u32 %v7375_v48, %v1198_v21  ;;  %7417 = vst [vmem:[#allocation18_spill] sm:$0xff] %v6311_v18  ;;  %7418 = vst [vmem:[#allocation21_spill] sm:$0xff] %v6313_v4 }
 0x205   : > { %v2219_v9 = vshrl.u32 %v2091_v23, 16  ;;  %v2092_v55 = vmul.u32 2221713035, %v1964_v39  ;;  %v1455_v45 = vshrl.u32 %v1327_v50, 16  ;;  %v1457_v47 = vshrl.u32 %v1329_v37, 16  ;;  %v6315_v12 = vpop.f32.mrb[41].mxu0 }
 0x206   : > { %v2221_v49 = vshrl.u32 %v2093_v0, 16  ;;  %v2218_v28 = vshrl.u32 %v2090_v38, 16  ;;  %v1454_v27 = vshrl.u32 %v1326_v35, 16  ;;  %v1456_v57 = vshrl.u32 %v1328_v5, 16  ;;  %7419 = vst [vmem:[#allocation17_spill] sm:$0xff] %v6315_v12  ;;  %v6317_v21 = vpop.f32.mrb[41].mxu1 }
 0x207   : > { %v2347_v31 = vxor.u32 %v2219_v9, %v2091_v23  ;;  %v2220_v52 = vshrl.u32 %v2092_v55, 16  ;;  %v1583_v61 = vxor.u32 %v1455_v45, %v1327_v50  ;;  %v1585_v51 = vxor.u32 %v1457_v47, %v1329_v37  ;;  %7420 = vst [vmem:[#allocation28_spill] sm:$0xff] %v6317_v21  ;;  %v7421_v37 = vld [vmem:[#allocation22_spill] sm:$0xff]  ;;  %v7422_v12 = vld [vmem:[#allocation23_spill] sm:$0xff] }
 0x208   : > { %v2349_v14 = vxor.u32 %v2221_v49, %v2093_v0  ;;  %v2346_v33 = vxor.u32 %v2218_v28, %v2090_v38  ;;  %v1582_v44 = vxor.u32 %v1454_v27, %v1326_v35  ;;  %v1584_v10 = vxor.u32 %v1456_v57, %v1328_v5 }
 0x209   : > { %v2475_v39 = vxor.u32 2654435769, %v2347_v31  ;;  %v2348_v24 = vxor.u32 %v2220_v52, %v2092_v55  ;;  %v1711_v62 = vmul.u32 2146121005, %v1583_v61  ;;  %v1713_v40 = vmul.u32 2146121005, %v1585_v51 }
 0x20a   : > { %v2477_v23 = vxor.u32 2654435769, %v2349_v14  ;;  %v2474_v9 = vxor.u32 2654435769, %v2346_v33  ;;  %v1710_v50 = vmul.u32 2146121005, %v1582_v44  ;;  %v6321_v45 = vadd.f32 %v7421_v37, %v5500_v42 }
 0x20b   : > { %v2603_v47 = vshrl.u32 %v2475_v39, 16  ;;  %v2476_v0 = vxor.u32 2654435769, %v2348_v24  ;;  %v1839_v38 = vshrl.u32 %v1711_v62, 15  ;;  %v1841_v35 = vshrl.u32 %v1713_v40, 15 }
 0x20c   : > { %v2605_v5 = vshrl.u32 %v2477_v23, 16  ;;  %v2602_v49 = vshrl.u32 %v2474_v9, 16  ;;  %v1838_v28 = vshrl.u32 %v1710_v50, 15  ;;  %v1712_v27 = vmul.u32 2146121005, %v1584_v10  ;;  %v7423_v10 = vld [vmem:[#allocation24_spill] sm:$0xff] }
 0x20d   : > { %v2731_v57 = vxor.u32 %v2603_v47, %v2475_v39  ;;  %v2604_v31 = vshrl.u32 %v2476_v0, 16  ;;  %v1967_v55 = vxor.u32 %v1839_v38, %v1711_v62  ;;  %v1969_v52 = vxor.u32 %v1841_v35, %v1713_v40 }
 0x20e   : > { %v2733_v61 = vxor.u32 %v2605_v5, %v2477_v23  ;;  %v2730_v51 = vxor.u32 %v2602_v49, %v2474_v9  ;;  %v1966_v14 = vxor.u32 %v1838_v28, %v1710_v50  ;;  %v1840_v33 = vshrl.u32 %v1712_v27, 15 }
 0x20f   : > { %v2859_v44 = vmul.u32 2146121005, %v2731_v57  ;;  %v2732_v21 = vxor.u32 %v2604_v31, %v2476_v0  ;;  %v2095_v37 = vmul.u32 2221713035, %v1967_v55  ;;  %v6325_v24 = vadd.f32 %v7422_v12, %v5555_v26 }
 0x210   : > { %v2861_v4 = vmul.u32 2146121005, %v2733_v61  ;;  %v2858_v18 = vmul.u32 2146121005, %v2730_v51  ;;  %v1968_v8 = vxor.u32 %v1840_v33, %v1712_v27  ;;  %v6329_v39 = vadd.f32 %v7423_v10, %v5532_v6 }
 0x211   : > { %v2987_v62 = vshrl.u32 %v2859_v44, 15  ;;  %v2860_v40 = vmul.u32 2146121005, %v2732_v21  ;;  %v2223_v23 = vshrl.u32 %v2095_v37, 16  ;;  %v2097_v9 = vmul.u32 2221713035, %v1969_v52 }
 0x212   : > { %v2989_v50 = vshrl.u32 %v2861_v4, 15  ;;  %v2986_v47 = vshrl.u32 %v2858_v18, 15  ;;  %v2094_v38 = vmul.u32 2221713035, %v1966_v14  ;;  %v2096_v0 = vmul.u32 2221713035, %v1968_v8 }
 0x213   : > { %v3115_v35 = vxor.u32 %v2987_v62, %v2859_v44  ;;  %v2988_v5 = vshrl.u32 %v2860_v40, 15  ;;  %v2351_v49 = vxor.u32 %v2223_v23, %v2095_v37  ;;  %v2225_v12 = vshrl.u32 %v2097_v9, 16 }
 0x214   : > { %v3117_v28 = vxor.u32 %v2989_v50, %v2861_v4  ;;  %v3114_v57 = vxor.u32 %v2986_v47, %v2858_v18  ;;  %v2222_v31 = vshrl.u32 %v2094_v38, 16  ;;  %v2224_v27 = vshrl.u32 %v2096_v0, 16 }
 0x215   : > { %v3243_v55 = vmul.u32 2221713035, %v3115_v35  ;;  %v3116_v61 = vxor.u32 %v2988_v5, %v2860_v40  ;;  %v2479_v51 = vxor.u32 2654435769, %v2351_v49  ;;  %v2353_v33 = vxor.u32 %v2225_v12, %v2097_v9 }
 0x216   : > { %v3245_v10 = vmul.u32 2221713035, %v3117_v28  ;;  %v3242_v21 = vmul.u32 2221713035, %v3114_v57  ;;  %v2350_v58 = vxor.u32 %v2222_v31, %v2094_v38  ;;  %v2352_v52 = vxor.u32 %v2224_v27, %v2096_v0 }
 0x217   : > { %v3371_v25 = vshrl.u32 %v3243_v55, 16  ;;  %v3244_v56 = vmul.u32 2221713035, %v3116_v61  ;;  %v2607_v14 = vshrl.u32 %v2479_v51, 16  ;;  %v2481_v8 = vxor.u32 2654435769, %v2353_v33 }
 0x218   : > { %v3373_v44 = vshrl.u32 %v3245_v10, 16  ;;  %v3370_v62 = vshrl.u32 %v3242_v21, 16  ;;  %v2478_v37 = vxor.u32 2654435769, %v2350_v58  ;;  %v2480_v23 = vxor.u32 2654435769, %v2352_v52 }
 0x219   : > { %v3499_v4 = vxor.u32 %v3371_v25, %v3243_v55  ;;  %v3372_v18 = vshrl.u32 %v3244_v56, 16  ;;  %v2735_v50 = vxor.u32 %v2607_v14, %v2479_v51  ;;  %v2609_v47 = vshrl.u32 %v2481_v8, 16 }
 0x21a   : > { %v3501_v35 = vxor.u32 %v3373_v44, %v3245_v10  ;;  %v3498_v40 = vxor.u32 %v3370_v62, %v3242_v21  ;;  %v2606_v5 = vshrl.u32 %v2478_v37, 16  ;;  %v2608_v9 = vshrl.u32 %v2480_v23, 16  ;;  %v7437_v21 = vld [vmem:[#allocation26_spill] sm:$0xff] }
 0x21b   : > { %vm3627_vm4 = vcmp.ge.u32.totalorder %v3499_v4, 429496730  ;;  %v3500_v49 = vxor.u32 %v3372_v18, %v3244_v56  ;;  %v2863_v38 = vmul.u32 2146121005, %v2735_v50  ;;  %v2737_v0 = vxor.u32 %v2609_v47, %v2481_v8  ;;  %v7427_v56 = vld [vmem:[#allocation25_spill] sm:$0xff] }
 0x21c   : > { %v7424_v12 = vmax.f32 %v6175_v29, 0.0  ;;  %vm3629_vm5 = vcmp.ge.u32.totalorder %v3501_v35, 429496730  ;;  %vm3626_vm6 = vcmp.ge.u32.totalorder %v3498_v40, 429496730  ;;  %v2734_v28 = vxor.u32 %v2606_v5, %v2478_v37 }
 0x21d   : > { %v2736_v58 = vxor.u32 %v2608_v9, %v2480_v23  ;;  %v7425_v25 = vmax.f32 %v6193_v36, 0.0  ;;  %v7426_v57 = vmax.f32 %v6164_v22, 0.0  ;;  %vm3628_vm7 = vcmp.ge.u32.totalorder %v3500_v49, 429496730 }
 0x21e   : > { %4530 = vmatprep.mubr.msk.f32.mxu1 %vm3627_vm4, %v7424_v12  ;;  %v2991_v31 = vshrl.u32 %v2863_v38, 15  ;;  %v2865_v27 = vmul.u32 2146121005, %v2737_v0  ;;  %v6339_v55 = vadd.f32 %v7427_v56, %v5545_v16  ;;  %v7428_v29 = vmax.f32 %v6168_v19, 0.0  ;;  %v6369_v56 = vpop.f32.mrb[42].mxu0 }
 0x21f   : > { %4594 = vmatprep.mubr.msk.f32.mxu0 %vm3629_vm5, %v7425_v25  ;;  %4531 = vmatmul.mubr.msk.f32.gmra.mrb[90].mxu1 %vm3626_vm6, %v7426_v57  ;;  %v2862_v61 = vmul.u32 2146121005, %v2734_v28  ;;  %v2864_v51 = vmul.u32 2146121005, %v2736_v58  ;;  %v1052_v33 = vadd.s32 120, %v5399_v60  ;;  %v6346_v36 = vadd.f32 %v6189_v54, %v5500_v42 }
 0x220   : > { %4595 = vmatmul.mubr.msk.f32.gmra.mrb[90].mxu0 %vm3628_vm7, %v7428_v29  ;;  %v3119_v22 = vxor.u32 %v2991_v31, %v2863_v38  ;;  %v2993_v10 = vshrl.u32 %v2865_v27, 15  ;;  %v6355_v54 = vadd.f32 %v6196_v46, %v5555_v26  ;;  %v6360_v5 = vadd.f32 %v6198_v11, %v5532_v6  ;;  %v6371_v29 = vpop.f32.mrb[42].mxu1 }
 0x221   : > { %v2990_v14 = vshrl.u32 %v2862_v61, 15  ;;  %v2992_v8 = vshrl.u32 %v2864_v51, 15  ;;  %v1086_v19 = vadd.s32 %v5406_v3, %v1052_v33  ;;  %v1053_v9 = vadd.s32 128, %v5399_v60 }
 0x222   : > { %v3247_v62 = vmul.u32 2221713035, %v3119_v22  ;;  %v3121_v37 = vxor.u32 %v2993_v10, %v2865_v27  ;;  %v6375_v22 = vpop.f32.mrb[43].mxu0  ;;  %v6377_v10 = vpop.f32.mrb[43].mxu1  ;;  %v6426_v23 = vadd.f32 %v7437_v21, %v5532_v6 }
 0x223   : > { %v3118_v4 = vxor.u32 %v2990_v14, %v2862_v61  ;;  %v3120_v18 = vxor.u32 %v2992_v8, %v2864_v51  ;;  %v1123_v50 = vmul.u32 512, %v1086_v19  ;;  %v7429_v14 = vmax.f32 %v6239_v1, 0.0 }
 0x224   : > { %v3375_v35 = vshrl.u32 %v3247_v62, 16  ;;  %v3249_v40 = vmul.u32 2221713035, %v3121_v37  ;;  %v7431_v1 = vmax.f32 %v6213_v13, 0.0 }
 0x225   : > { %v3246_v49 = vmul.u32 2221713035, %v3118_v4  ;;  %v3248_v38 = vmul.u32 2221713035, %v3120_v18  ;;  %v1201_v0 = vadd.s32 %v1123_v50, %v7372_v17  ;;  %v1203_v46 = vadd.s32 %v1123_v50, %v7373_v59 }
 0x226   : > { %v3503_v12 = vxor.u32 %v3375_v35, %v3247_v62  ;;  %v3377_v28 = vshrl.u32 %v3249_v40, 16  ;;  %v1200_v58 = vadd.s32 %v1123_v50, %v7374_v34  ;;  %v1202_v25 = vadd.s32 %v1123_v50, %v7376_v43 }
 0x227   : > { %v3374_v57 = vshrl.u32 %v3246_v49, 16  ;;  %v3376_v31 = vshrl.u32 %v3248_v38, 16  ;;  %v1331_v27 = vxor.u32 %v7375_v48, %v1201_v0  ;;  %v1333_v11 = vxor.u32 %v7375_v48, %v1203_v46 }
 0x228   : > { %vm3631_vm8 = vcmp.ge.u32.totalorder %v3503_v12, 429496730  ;;  %v3505_v61 = vxor.u32 %v3377_v28, %v3249_v40  ;;  %v1330_v51 = vxor.u32 %v7375_v48, %v1200_v58  ;;  %v1332_v33 = vxor.u32 %v7375_v48, %v1202_v25 }
 0x229   : > { %4532 = vmatprep.mubr.msk.f32.mxu1 %vm3631_vm8, %v7429_v14  ;;  %v3502_v8 = vxor.u32 %v3374_v57, %v3246_v49  ;;  %v3504_v19 = vxor.u32 %v3376_v31, %v3248_v38  ;;  %v1459_v62 = vshrl.u32 %v1331_v27, 16  ;;  %v1461_v37 = vshrl.u32 %v1333_v11, 16 }
 0x22a   : > { %vm3633_vm9 = vcmp.ge.u32.totalorder %v3505_v61, 429496730  ;;  %v1458_v4 = vshrl.u32 %v1330_v51, 16  ;;  %v1460_v18 = vshrl.u32 %v1332_v33, 16  ;;  %v6383_v50 = vadd.f32 %v6200_v30, %v5545_v16 }
 0x22b   : > { %v7430_v35 = vmax.f32 %v6250_v32, 0.0  ;;  %vm3630_vm10 = vcmp.ge.u32.totalorder %v3502_v8, 429496730  ;;  %vm3632_vm11 = vcmp.ge.u32.totalorder %v3504_v19, 429496730  ;;  %v1587_v40 = vxor.u32 %v1459_v62, %v1331_v27 }
 0x22c   : > { %v1589_v0 = vxor.u32 %v1461_v37, %v1333_v11  ;;  %4533 = vmatmul.mubr.msk.f32.gmra.mrb[92].mxu1 %vm3630_vm10, %v7431_v1  ;;  %v7432_v49 = vmax.f32 %v6233_v2, 0.0  ;;  %v1586_v38 = vxor.u32 %v1458_v4, %v1330_v51  ;;  %v1588_v46 = vxor.u32 %v1460_v18, %v1332_v33 }
 0x22d   : > { %4596 = vmatprep.mubr.msk.f32.mxu0 %vm3633_vm9, %v7430_v35  ;;  %v1087_v30 = vadd.s32 %v5406_v3, %v1053_v9  ;;  %v1715_v28 = vmul.u32 2146121005, %v1587_v40  ;;  %v6395_v32 = vadd.f32 %v6223_v15, %v5500_v42  ;;  %v6399_v25 = vadd.f32 %v6225_v41, %v5555_v26 }
 0x22e   : > { %4597 = vmatmul.mubr.msk.f32.gmra.mrb[92].mxu0 %vm3632_vm11, %v7432_v49  ;;  %v1717_v58 = vmul.u32 2146121005, %v1589_v0  ;;  %v1714_v13 = vmul.u32 2146121005, %v1586_v38  ;;  %v6404_v9 = vadd.s32 136, %v5399_v60 }
 0x22f   : > { %7433 = vst [vmem:[#allocation22_spill] sm:$0xff] %v6399_v25  ;;  %v1716_v57 = vmul.u32 2146121005, %v1588_v46  ;;  %v1843_v27 = vshrl.u32 %v1715_v28, 15  ;;  %v1124_v61 = vmul.u32 512, %v1087_v30 }
 0x230   : > { %v1845_v11 = vshrl.u32 %v1717_v58, 15  ;;  %v1842_v51 = vshrl.u32 %v1714_v13, 15 }
 0x231   : > { %v1844_v33 = vshrl.u32 %v1716_v57, 15  ;;  %v1971_v41 = vxor.u32 %v1843_v27, %v1715_v28  ;;  %v1205_v19 = vadd.s32 %v1124_v61, %v7372_v17  ;;  %v1207_v62 = vadd.s32 %v1124_v61, %v7373_v59 }
 0x232   : > { %v1973_v8 = vxor.u32 %v1845_v11, %v1717_v58  ;;  %v1970_v37 = vxor.u32 %v1842_v51, %v1714_v13  ;;  %v1204_v18 = vadd.s32 %v1124_v61, %v7374_v34  ;;  %v1206_v35 = vadd.s32 %v1124_v61, %v7376_v43 }
 0x233   : > { %v1972_v4 = vxor.u32 %v1844_v33, %v1716_v57  ;;  %v2099_v40 = vmul.u32 2221713035, %v1971_v41  ;;  %v1335_v1 = vxor.u32 %v7375_v48, %v1205_v19  ;;  %v1337_v49 = vxor.u32 %v7375_v48, %v1207_v62  ;;  %v6416_v41 = vpop.f32.mrb[44].mxu0 }
 0x234   : > { %v2101_v0 = vmul.u32 2221713035, %v1973_v8  ;;  %v2098_v38 = vmul.u32 2221713035, %v1970_v37  ;;  %v1334_v30 = vxor.u32 %v7375_v48, %v1204_v18  ;;  %v1336_v28 = vxor.u32 %v7375_v48, %v1206_v35  ;;  %v6418_v8 = vpop.f32.mrb[44].mxu1  ;;  %v6420_v14 = vpop.f32.mrb[45].mxu0 }
 0x235   : > { %v2100_v46 = vmul.u32 2221713035, %v1972_v4  ;;  %v2227_v58 = vshrl.u32 %v2099_v40, 16  ;;  %v1463_v13 = vshrl.u32 %v1335_v1, 16  ;;  %v1465_v57 = vshrl.u32 %v1337_v49, 16  ;;  %7434 = vst [vmem:[#allocation23_spill] sm:$0xff] %v6418_v8 }
 0x236   : > { %v2229_v27 = vshrl.u32 %v2101_v0, 16  ;;  %v2226_v11 = vshrl.u32 %v2098_v38, 16  ;;  %v1462_v33 = vshrl.u32 %v1334_v30, 16  ;;  %v1464_v61 = vshrl.u32 %v1336_v28, 16  ;;  %7435 = vst [vmem:[#allocation24_spill] sm:$0xff] %v6420_v14  ;;  %v6422_v18 = vpop.f32.mrb[45].mxu1 }
 0x237   : > { %v2228_v51 = vshrl.u32 %v2100_v46, 16  ;;  %v2355_v19 = vxor.u32 %v2227_v58, %v2099_v40  ;;  %v1591_v37 = vxor.u32 %v1463_v13, %v1335_v1  ;;  %v1593_v4 = vxor.u32 %v1465_v57, %v1337_v49  ;;  %7436 = vst [vmem:[#allocation25_spill] sm:$0xff] %v6422_v18  ;;  %v7438_v1 = vld [vmem:[#allocation27_spill] sm:$0xff] }
 0x238   : > { %v2357_v62 = vxor.u32 %v2229_v27, %v2101_v0  ;;  %v2354_v35 = vxor.u32 %v2226_v11, %v2098_v38  ;;  %v1590_v12 = vxor.u32 %v1462_v33, %v1334_v30  ;;  %v1592_v47 = vxor.u32 %v1464_v61, %v1336_v28 }
 0x239   : > { %v2356_v15 = vxor.u32 %v2228_v51, %v2100_v46  ;;  %v2483_v31 = vxor.u32 2654435769, %v2355_v19  ;;  %v1719_v52 = vmul.u32 2146121005, %v1591_v37  ;;  %v1721_v0 = vmul.u32 2146121005, %v1593_v4 }
 0x23a   : > { %v2485_v2 = vxor.u32 2654435769, %v2357_v62  ;;  %v2482_v44 = vxor.u32 2654435769, %v2354_v35  ;;  %v6430_v49 = vadd.f32 %v7438_v1, %v5545_v16  ;;  %v1718_v46 = vmul.u32 2146121005, %v1590_v12 }
 0x23b   : > { %v2484_v40 = vxor.u32 2654435769, %v2356_v15  ;;  %v2611_v58 = vshrl.u32 %v2483_v31, 16  ;;  %v1847_v38 = vshrl.u32 %v1719_v52, 15  ;;  %v1849_v13 = vshrl.u32 %v1721_v0, 15 }
 0x23c   : > { %v2613_v27 = vshrl.u32 %v2485_v2, 16  ;;  %v2610_v30 = vshrl.u32 %v2482_v44, 16  ;;  %v1720_v57 = vmul.u32 2146121005, %v1592_v47  ;;  %v1846_v21 = vshrl.u32 %v1718_v46, 15 }
 0x23d   : > { %v2612_v28 = vshrl.u32 %v2484_v40, 16  ;;  %v2739_v11 = vxor.u32 %v2611_v58, %v2483_v31  ;;  %v1975_v33 = vxor.u32 %v1847_v38, %v1719_v52  ;;  %v1977_v15 = vxor.u32 %v1849_v13, %v1721_v0 }
 0x23e   : > { %v2741_v51 = vxor.u32 %v2613_v27, %v2485_v2  ;;  %v2738_v61 = vxor.u32 %v2610_v30, %v2482_v44  ;;  %v1848_v62 = vshrl.u32 %v1720_v57, 15  ;;  %v1974_v35 = vxor.u32 %v1846_v21, %v1718_v46 }
 0x23f   : > { %v2740_v19 = vxor.u32 %v2612_v28, %v2484_v40  ;;  %v2867_v37 = vmul.u32 2146121005, %v2739_v11  ;;  %v6434_v1 = vadd.s32 %v5406_v3, %v6404_v9  ;;  %v6438_v47 = vadd.f32 %v6283_v63, %v5500_v42 }
 0x240   : > { %v2869_v4 = vmul.u32 2146121005, %v2741_v51  ;;  %v2866_v12 = vmul.u32 2146121005, %v2738_v61  ;;  %v1976_v14 = vxor.u32 %v1848_v62, %v1720_v57 }
 0x241   : > { %v2868_v18 = vmul.u32 2146121005, %v2740_v19  ;;  %v2995_v52 = vshrl.u32 %v2867_v37, 15  ;;  %v2103_v44 = vmul.u32 2221713035, %v1975_v33 }
 0x242   : > { %v2997_v2 = vshrl.u32 %v2869_v4, 15  ;;  %v2105_v31 = vmul.u32 2221713035, %v1977_v15  ;;  %v2994_v40 = vshrl.u32 %v2866_v12, 15  ;;  %v2102_v58 = vmul.u32 2221713035, %v1974_v35 }
 0x243   : > { %v2996_v0 = vshrl.u32 %v2868_v18, 15  ;;  %v2104_v27 = vmul.u32 2221713035, %v1976_v14  ;;  %v3123_v38 = vxor.u32 %v2995_v52, %v2867_v37  ;;  %v2231_v30 = vshrl.u32 %v2103_v44, 16 }
 0x244   : > { %v3125_v46 = vxor.u32 %v2997_v2, %v2869_v4  ;;  %v2233_v9 = vshrl.u32 %v2105_v31, 16  ;;  %v3122_v28 = vxor.u32 %v2994_v40, %v2866_v12  ;;  %v2230_v11 = vshrl.u32 %v2102_v58, 16 }
 0x245   : > { %v3124_v13 = vxor.u32 %v2996_v0, %v2868_v18  ;;  %v2232_v57 = vshrl.u32 %v2104_v27, 16  ;;  %v3251_v51 = vmul.u32 2221713035, %v3123_v38  ;;  %v2359_v63 = vxor.u32 %v2231_v30, %v2103_v44 }
 0x246   : > { %v3253_v21 = vmul.u32 2221713035, %v3125_v46  ;;  %v2361_v61 = vxor.u32 %v2233_v9, %v2105_v31  ;;  %v3250_v19 = vmul.u32 2221713035, %v3122_v28  ;;  %v2358_v33 = vxor.u32 %v2230_v11, %v2102_v58 }
 0x247   : > { %v3252_v62 = vmul.u32 2221713035, %v3124_v13  ;;  %v2360_v15 = vxor.u32 %v2232_v57, %v2104_v27  ;;  %v3379_v8 = vshrl.u32 %v3251_v51, 16  ;;  %v2487_v35 = vxor.u32 2654435769, %v2359_v63  ;;  %v7442_v13 = vld [vmem:[#allocation20_spill] sm:$0xff] }
 0x248   : > { %v3381_v25 = vshrl.u32 %v3253_v21, 16  ;;  %v2489_v14 = vxor.u32 2654435769, %v2361_v61  ;;  %v3378_v37 = vshrl.u32 %v3250_v19, 16  ;;  %v2486_v52 = vxor.u32 2654435769, %v2358_v33 }
 0x249   : > { %v3380_v4 = vshrl.u32 %v3252_v62, 16  ;;  %v2488_v2 = vxor.u32 2654435769, %v2360_v15  ;;  %v3507_v12 = vxor.u32 %v3379_v8, %v3251_v51  ;;  %v2615_v40 = vshrl.u32 %v2487_v35, 16 }
 0x24a   : > { %v3509_v18 = vxor.u32 %v3381_v25, %v3253_v21  ;;  %v2617_v0 = vshrl.u32 %v2489_v14, 16  ;;  %v3506_v38 = vxor.u32 %v3378_v37, %v3250_v19  ;;  %v2614_v44 = vshrl.u32 %v2486_v52, 16  ;;  %v7444_v19 = vld [vmem:[#allocation15_spill] sm:$0xff] }
 0x24b   : > { %v3508_v46 = vxor.u32 %v3380_v4, %v3252_v62  ;;  %v2616_v31 = vshrl.u32 %v2488_v2, 16  ;;  %vm3635_vm12 = vcmp.ge.u32.totalorder %v3507_v12, 429496730  ;;  %v2743_v58 = vxor.u32 %v2615_v40, %v2487_v35  ;;  %v7445_v35 = vld [vmem:[#allocation16_spill] sm:$0xff] }
 0x24c   : > { %vm3637_vm13 = vcmp.ge.u32.totalorder %v3509_v18, 429496730  ;;  %v2745_v27 = vxor.u32 %v2617_v0, %v2489_v14  ;;  %v7439_v30 = vmax.f32 %v6268_v20, 0.0  ;;  %v7440_v9 = vmax.f32 %v6272_v53, 0.0 }
 0x24d   : > { %vm3634_vm14 = vcmp.ge.u32.totalorder %v3506_v38, 429496730  ;;  %vm3636_vm15 = vcmp.ge.u32.totalorder %v3508_v46, 429496730  ;;  %v2742_v8 = vxor.u32 %v2614_v44, %v2486_v52  ;;  %v2744_v25 = vxor.u32 %v2616_v31, %v2488_v2  ;;  %v7446_v52 = vld [vmem:[#allocation14_spill] sm:$0xff] }
 0x24e   : > { %4534 = vmatprep.mubr.msk.f32.mxu1 %vm3635_vm12, %v7439_v30  ;;  %4598 = vmatprep.mubr.msk.f32.mxu0 %vm3637_vm13, %v7440_v9  ;;  %v7441_v28 = vmax.f32 %v6255_v7, 0.0  ;;  %v7443_v11 = vmax.f32 %v7442_v13, 0.0  ;;  %v2871_v57 = vmul.u32 2146121005, %v2743_v58  ;;  %v2873_v51 = vmul.u32 2146121005, %v2745_v27 }
 0x24f   : > { %v2870_v63 = vmul.u32 2146121005, %v2742_v8  ;;  %v2872_v61 = vmul.u32 2146121005, %v2744_v25  ;;  %v6453_v62 = vadd.f32 %v7444_v19, %v5555_v26  ;;  %v6458_v14 = vadd.f32 %v7445_v35, %v5532_v6  ;;  %v6475_v19 = vpop.f32.mrb[46].mxu1 }
 0x250   : > { %4535 = vmatmul.mubr.msk.f32.gmra.mrb[94].mxu1 %vm3634_vm14, %v7441_v28  ;;  %4599 = vmatmul.mubr.msk.f32.gmra.mrb[94].mxu0 %vm3636_vm15, %v7443_v11  ;;  %v2999_v33 = vshrl.u32 %v2871_v57, 15  ;;  %v3001_v7 = vshrl.u32 %v2873_v51, 15  ;;  %v1125_v15 = vmul.u32 512, %v6434_v1  ;;  %v6462_v2 = vadd.f32 %v7446_v52, %v5545_v16 }
 0x251   : > { %v2998_v37 = vshrl.u32 %v2870_v63, 15  ;;  %v3000_v4 = vshrl.u32 %v2872_v61, 15  ;;  %v1055_v12 = vadd.s32 144, %v5399_v60  ;;  %v7449_v20 = vmax.f32 %v6329_v39, 0.0 }
 0x252   : > { %v3127_v18 = vxor.u32 %v2999_v33, %v2871_v57  ;;  %v3129_v40 = vxor.u32 %v3001_v7, %v2873_v51  ;;  %v1209_v0 = vadd.s32 %v1125_v15, %v7372_v17  ;;  %v1211_v38 = vadd.s32 %v1125_v15, %v7373_v59 }
 0x253   : > { %v3126_v46 = vxor.u32 %v2998_v37, %v2870_v63  ;;  %v3128_v1 = vxor.u32 %v3000_v4, %v2872_v61  ;;  %v1208_v44 = vadd.s32 %v1125_v15, %v7374_v34  ;;  %v1210_v31 = vadd.s32 %v1125_v15, %v7376_v43  ;;  %v6473_v61 = vpop.f32.mrb[46].mxu0  ;;  %v6479_v4 = vpop.f32.mrb[47].mxu1 }
 0x254   : > { %v3255_v58 = vmul.u32 2221713035, %v3127_v18  ;;  %v3257_v27 = vmul.u32 2221713035, %v3129_v40  ;;  %v1339_v30 = vxor.u32 %v7375_v48, %v1209_v0  ;;  %v1341_v9 = vxor.u32 %v7375_v48, %v1211_v38  ;;  %v6477_v37 = vpop.f32.mrb[47].mxu0  ;;  %7448 = vst [vmem:[#allocation27_spill] sm:$0xff] %v6479_v4 }
 0x255   : > { %v3254_v8 = vmul.u32 2221713035, %v3126_v46  ;;  %v3256_v25 = vmul.u32 2221713035, %v3128_v1  ;;  %v1338_v28 = vxor.u32 %v7375_v48, %v1208_v44  ;;  %v1340_v13 = vxor.u32 %v7375_v48, %v1210_v31  ;;  %7447 = vst [vmem:[#allocation26_spill] sm:$0xff] %v6477_v37 }
 0x256   : > { %v3383_v11 = vshrl.u32 %v3255_v58, 16  ;;  %v3385_v57 = vshrl.u32 %v3257_v27, 16  ;;  %v1467_v51 = vshrl.u32 %v1339_v30, 16  ;;  %v1469_v63 = vshrl.u32 %v1341_v9, 16 }
 0x257   : > { %v3382_v33 = vshrl.u32 %v3254_v8, 16  ;;  %v3384_v7 = vshrl.u32 %v3256_v25, 16  ;;  %v1466_v15 = vshrl.u32 %v1338_v28, 16  ;;  %v1468_v35 = vshrl.u32 %v1340_v13, 16 }
 0x258   : > { %v3511_v52 = vxor.u32 %v3383_v11, %v3255_v58  ;;  %v3513_v18 = vxor.u32 %v3385_v57, %v3257_v27  ;;  %v1595_v40 = vxor.u32 %v1467_v51, %v1339_v30  ;;  %v1597_v0 = vxor.u32 %v1469_v63, %v1341_v9  ;;  %v7451_v27 = vld [vmem:[#allocation18_spill] sm:$0xff] }
 0x259   : > { %v3510_v38 = vxor.u32 %v3382_v33, %v3254_v8  ;;  %v3512_v46 = vxor.u32 %v3384_v7, %v3256_v25  ;;  %v1594_v1 = vxor.u32 %v1466_v15, %v1338_v28  ;;  %v1596_v44 = vxor.u32 %v1468_v35, %v1340_v13  ;;  %v7459_v28 = vld [vmem:[#allocation21_spill] sm:$0xff] }
 0x25a   : > { %vm3639_vm0 = vcmp.ge.u32.totalorder %v3511_v52, 429496730  ;;  %vm3641_vm1 = vcmp.ge.u32.totalorder %v3513_v18, 429496730  ;;  %v1723_v31 = vmul.u32 2146121005, %v1595_v40  ;;  %v1089_v53 = vadd.s32 %v5406_v3, %v1055_v12 }
 0x25b   : > { %4536 = vmatprep.mubr.msk.f32.mxu1 %vm3639_vm0, %v7449_v20  ;;  %v7450_v21 = vmax.f32 %v6339_v55, 0.0  ;;  %vm3638_vm2 = vcmp.ge.u32.totalorder %v3510_v38, 429496730  ;;  %vm3640_vm3 = vcmp.ge.u32.totalorder %v3512_v46, 429496730  ;;  %v6488_v30 = vadd.f32 %v7451_v27, %v5500_v42 }
 0x25c   : > { %v1725_v58 = vmul.u32 2146121005, %v1597_v0  ;;  %v7453_v9 = vmax.f32 %v6321_v45, 0.0  ;;  %v7454_v8 = vmax.f32 %v6325_v24, 0.0  ;;  %v1851_v12 = vshrl.u32 %v1723_v31, 15 }
 0x25d   : > { %4600 = vmatprep.mubr.msk.f32.mxu0 %vm3641_vm1, %v7450_v21  ;;  %7452 = vst [vmem:[#allocation20_spill] sm:$0xff] %v6488_v30  ;;  %v1722_v25 = vmul.u32 2146121005, %v1594_v1  ;;  %v1724_v39 = vmul.u32 2146121005, %v1596_v44  ;;  %v6516_v21 = vadd.f32 %v7459_v28, %v5555_v26 }
 0x25e   : > { %4537 = vmatmul.mubr.msk.f32.gmra.mrb[96].mxu1 %vm3638_vm2, %v7453_v9  ;;  %4601 = vmatmul.mubr.msk.f32.gmra.mrb[96].mxu0 %vm3640_vm3, %v7454_v8  ;;  %v1853_v55 = vshrl.u32 %v1725_v58, 15  ;;  %v1126_v13 = vmul.u32 512, %v1089_v53  ;;  %v1979_v11 = vxor.u32 %v1851_v12, %v1723_v31 }
 0x25f   : > { %v1850_v57 = vshrl.u32 %v1722_v25, 15  ;;  %v1852_v51 = vshrl.u32 %v1724_v39, 15 }
 0x260   : > { %v1981_v63 = vxor.u32 %v1853_v55, %v1725_v58  ;;  %v1213_v24 = vadd.s32 %v1126_v13, %v7372_v17  ;;  %v1215_v33 = vadd.s32 %v1126_v13, %v7373_v59  ;;  %v1212_v7 = vadd.s32 %v1126_v13, %v7374_v34 }
 0x261   : > { %v2107_v15 = vmul.u32 2221713035, %v1979_v11  ;;  %v1978_v35 = vxor.u32 %v1850_v57, %v1722_v25  ;;  %v1980_v52 = vxor.u32 %v1852_v51, %v1724_v39  ;;  %v1214_v18 = vadd.s32 %v1126_v13, %v7376_v43  ;;  %v6506_v13 = vpop.f32.mrb[48].mxu0  ;;  %v6508_v11 = vpop.f32.mrb[48].mxu1 }
 0x262   : > { %v2109_v40 = vmul.u32 2221713035, %v1981_v63  ;;  %v1343_v53 = vxor.u32 %v7375_v48, %v1213_v24  ;;  %v1345_v0 = vxor.u32 %v7375_v48, %v1215_v33  ;;  %v1342_v38 = vxor.u32 %v7375_v48, %v1212_v7  ;;  %7455 = vst [vmem:[#allocation15_spill] sm:$0xff] %v6506_v13  ;;  %7456 = vst [vmem:[#allocation16_spill] sm:$0xff] %v6508_v11  ;;  %v6510_v33 = vpop.f32.mrb[49].mxu0  ;;  %v6512_v7 = vpop.f32.mrb[49].mxu1 }
 0x263   : > { %v2235_v46 = vshrl.u32 %v2107_v15, 16  ;;  %v2106_v1 = vmul.u32 2221713035, %v1978_v35  ;;  %v2108_v44 = vmul.u32 2221713035, %v1980_v52  ;;  %v1344_v31 = vxor.u32 %v7375_v48, %v1214_v18  ;;  %7457 = vst [vmem:[#allocation14_spill] sm:$0xff] %v6510_v33 }
 0x264   : > { %v2237_v58 = vshrl.u32 %v2109_v40, 16  ;;  %v1471_v27 = vshrl.u32 %v1343_v53, 16  ;;  %v1473_v9 = vshrl.u32 %v1345_v0, 16  ;;  %v1470_v8 = vshrl.u32 %v1342_v38, 16  ;;  %7458 = vst [vmem:[#allocation18_spill] sm:$0xff] %v6512_v7  ;;  %v7461_v33 = vld [vmem:[#allocation28_spill] sm:$0xff] }
 0x265   : > { %v2363_v12 = vxor.u32 %v2235_v46, %v2107_v15  ;;  %v2234_v25 = vshrl.u32 %v2106_v1, 16  ;;  %v2236_v39 = vshrl.u32 %v2108_v44, 16  ;;  %v1472_v55 = vshrl.u32 %v1344_v31, 16 }
 0x266   : > { %v2365_v57 = vxor.u32 %v2237_v58, %v2109_v40  ;;  %v1599_v51 = vxor.u32 %v1471_v27, %v1343_v53  ;;  %v1601_v63 = vxor.u32 %v1473_v9, %v1345_v0  ;;  %v1598_v24 = vxor.u32 %v1470_v8, %v1342_v38  ;;  %v7460_v0 = vld [vmem:[#allocation17_spill] sm:$0xff] }
 0x267   : > { %v2491_v35 = vxor.u32 2654435769, %v2363_v12  ;;  %v2362_v52 = vxor.u32 %v2234_v25, %v2106_v1  ;;  %v2364_v18 = vxor.u32 %v2236_v39, %v2108_v44  ;;  %v1600_v45 = vxor.u32 %v1472_v55, %v1344_v31 }
 0x268   : > { %v2493_v15 = vxor.u32 2654435769, %v2365_v57  ;;  %v1727_v46 = vmul.u32 2146121005, %v1599_v51  ;;  %v1729_v20 = vmul.u32 2146121005, %v1601_v63  ;;  %v6520_v38 = vadd.f32 %v7460_v0, %v5532_v6 }
 0x269   : > { %v2619_v11 = vshrl.u32 %v2491_v35, 16  ;;  %v2490_v40 = vxor.u32 2654435769, %v2362_v52  ;;  %v2492_v53 = vxor.u32 2654435769, %v2364_v18  ;;  %v6524_v30 = vadd.f32 %v7461_v33, %v5545_v16 }
 0x26a   : > { %v2621_v58 = vshrl.u32 %v2493_v15, 16  ;;  %v1855_v27 = vshrl.u32 %v1727_v46, 15  ;;  %v1857_v9 = vshrl.u32 %v1729_v20, 15  ;;  %v1726_v1 = vmul.u32 2146121005, %v1598_v24 }
 0x26b   : > { %v2747_v44 = vxor.u32 %v2619_v11, %v2491_v35  ;;  %v2618_v31 = vshrl.u32 %v2490_v40, 16  ;;  %v2620_v8 = vshrl.u32 %v2492_v53, 16  ;;  %v1728_v12 = vmul.u32 2146121005, %v1600_v45 }
 0x26c   : > { %v2749_v25 = vxor.u32 %v2621_v58, %v2493_v15  ;;  %v1983_v39 = vxor.u32 %v1855_v27, %v1727_v46  ;;  %v1985_v55 = vxor.u32 %v1857_v9, %v1729_v20  ;;  %v1854_v28 = vshrl.u32 %v1726_v1, 15 }
 0x26d   : > { %v2875_v57 = vmul.u32 2146121005, %v2747_v44  ;;  %v2746_v51 = vxor.u32 %v2618_v31, %v2490_v40  ;;  %v2748_v63 = vxor.u32 %v2620_v8, %v2492_v53  ;;  %v1856_v52 = vshrl.u32 %v1728_v12, 15 }
 0x26e   : > { %v2877_v18 = vmul.u32 2146121005, %v2749_v25  ;;  %v2111_v7 = vmul.u32 2221713035, %v1983_v39  ;;  %v1982_v0 = vxor.u32 %v1854_v28, %v1726_v1 }
 0x26f   : > { %v3003_v24 = vshrl.u32 %v2875_v57, 15  ;;  %v2874_v11 = vmul.u32 2146121005, %v2746_v51  ;;  %v2876_v35 = vmul.u32 2146121005, %v2748_v63  ;;  %v1984_v13 = vxor.u32 %v1856_v52, %v1728_v12 }
 0x270   : > { %v3005_v45 = vshrl.u32 %v2877_v18, 15  ;;  %v2239_v15 = vshrl.u32 %v2111_v7, 16  ;;  %v2113_v46 = vmul.u32 2221713035, %v1985_v55  ;;  %v2110_v20 = vmul.u32 2221713035, %v1982_v0 }
 0x271   : > { %v3131_v58 = vxor.u32 %v3003_v24, %v2875_v57  ;;  %v3002_v27 = vshrl.u32 %v2874_v11, 15  ;;  %v3004_v40 = vshrl.u32 %v2876_v35, 15  ;;  %v2112_v53 = vmul.u32 2221713035, %v1984_v13 }
 0x272   : > { %v3133_v9 = vxor.u32 %v3005_v45, %v2877_v18  ;;  %v2367_v44 = vxor.u32 %v2239_v15, %v2111_v7  ;;  %v2241_v31 = vshrl.u32 %v2113_v46, 16  ;;  %v2238_v1 = vshrl.u32 %v2110_v20, 16 }
 0x273   : > { %v3259_v8 = vmul.u32 2221713035, %v3131_v58  ;;  %v3130_v25 = vxor.u32 %v3002_v27, %v2874_v11  ;;  %v3132_v33 = vxor.u32 %v3004_v40, %v2876_v35  ;;  %v2240_v39 = vshrl.u32 %v2112_v53, 16 }
 0x274   : > { %v3261_v28 = vmul.u32 2221713035, %v3133_v9  ;;  %v2495_v51 = vxor.u32 2654435769, %v2367_v44  ;;  %v2369_v63 = vxor.u32 %v2241_v31, %v2113_v46  ;;  %v2366_v12 = vxor.u32 %v2238_v1, %v2110_v20 }
 0x275   : > { %v3387_v52 = vshrl.u32 %v3259_v8, 16  ;;  %v3258_v4 = vmul.u32 2221713035, %v3130_v25  ;;  %v3260_v55 = vmul.u32 2221713035, %v3132_v33  ;;  %v2368_v0 = vxor.u32 %v2240_v39, %v2112_v53 }
 0x276   : > { %v3389_v57 = vshrl.u32 %v3261_v28, 16  ;;  %v2623_v24 = vshrl.u32 %v2495_v51, 16  ;;  %v2497_v37 = vxor.u32 2654435769, %v2369_v63  ;;  %v2494_v13 = vxor.u32 2654435769, %v2366_v12 }
 0x277   : > { %v3515_v18 = vxor.u32 %v3387_v52, %v3259_v8  ;;  %v3386_v7 = vshrl.u32 %v3258_v4, 16  ;;  %v3388_v45 = vshrl.u32 %v3260_v55, 16  ;;  %v2496_v15 = vxor.u32 2654435769, %v2368_v0 }
 0x278   : > { %v3517_v58 = vxor.u32 %v3389_v57, %v3261_v28  ;;  %v2751_v11 = vxor.u32 %v2623_v24, %v2495_v51  ;;  %v2625_v35 = vshrl.u32 %v2497_v37, 16  ;;  %v2622_v27 = vshrl.u32 %v2494_v13, 16 }
 0x279   : > { %vm3643_vm4 = vcmp.ge.u32.totalorder %v3515_v18, 429496730  ;;  %v3514_v40 = vxor.u32 %v3386_v7, %v3258_v4  ;;  %v3516_v46 = vxor.u32 %v3388_v45, %v3260_v55  ;;  %v2624_v20 = vshrl.u32 %v2496_v15, 16 }
 0x27a   : > { %v7462_v9 = vmax.f32 %v6360_v5, 0.0  ;;  %vm3645_vm5 = vcmp.ge.u32.totalorder %v3517_v58, 429496730  ;;  %v2879_v53 = vmul.u32 2146121005, %v2751_v11  ;;  %v2753_v44 = vxor.u32 %v2625_v35, %v2497_v37 }
 0x27b   : > { %v2750_v31 = vxor.u32 %v2622_v27, %v2494_v13  ;;  %v7463_v1 = vmax.f32 %v6383_v50, 0.0  ;;  %vm3642_vm6 = vcmp.ge.u32.totalorder %v3514_v40, 429496730  ;;  %vm3644_vm7 = vcmp.ge.u32.totalorder %v3516_v46, 429496730 }
 0x27c   : > { %4538 = vmatprep.mubr.msk.f32.mxu1 %vm3643_vm4, %v7462_v9  ;;  %v2752_v8 = vxor.u32 %v2624_v20, %v2496_v15  ;;  %v1056_v25 = vadd.s32 152, %v5399_v60  ;;  %v7464_v33 = vmax.f32 %v6346_v36, 0.0  ;;  %v7465_v4 = vmax.f32 %v6355_v54, 0.0 }
 0x27d   : > { %4602 = vmatprep.mubr.msk.f32.mxu0 %vm3645_vm5, %v7463_v1  ;;  %v3007_v5 = vshrl.u32 %v2879_v53, 15  ;;  %v2881_v39 = vmul.u32 2146121005, %v2753_v44  ;;  %v2878_v28 = vmul.u32 2146121005, %v2750_v31  ;;  %v6541_v36 = vadd.f32 %v6369_v56, %v5500_v42 }
 0x27e   : > { %4539 = vmatmul.mubr.msk.f32.gmra.mrb[98].mxu1 %vm3642_vm6, %v7464_v33  ;;  %4603 = vmatmul.mubr.msk.f32.gmra.mrb[98].mxu0 %vm3644_vm7, %v7465_v4  ;;  %v2880_v51 = vmul.u32 2146121005, %v2752_v8  ;;  %v1090_v12 = vadd.s32 %v5406_v3, %v1056_v25  ;;  %v6545_v24 = vadd.f32 %v6371_v29, %v5555_v26  ;;  %v6549_v13 = vadd.f32 %v6375_v22, %v5532_v6  ;;  %v6563_v8 = vpop.f32.mrb[50].mxu0  ;;  %v6565_v25 = vpop.f32.mrb[50].mxu1 }
 0x27f   : > { %v3135_v52 = vxor.u32 %v3007_v5, %v2879_v53  ;;  %v3009_v55 = vshrl.u32 %v2881_v39, 15  ;;  %v3006_v0 = vshrl.u32 %v2878_v28, 15  ;;  %v6553_v15 = vadd.f32 %v6377_v10, %v5545_v16 }
 0x280   : > { %v3008_v54 = vshrl.u32 %v2880_v51, 15  ;;  %v1127_v57 = vmul.u32 512, %v1090_v12 }
 0x281   : > { %v3263_v18 = vmul.u32 2221713035, %v3135_v52  ;;  %v3137_v7 = vxor.u32 %v3009_v55, %v2881_v39  ;;  %v3134_v45 = vxor.u32 %v3006_v0, %v2878_v28  ;;  %v6567_v28 = vpop.f32.mrb[51].mxu0  ;;  %v7466_v0 = vmax.f32 %v6426_v23, 0.0 }
 0x282   : > { %v3136_v58 = vxor.u32 %v3008_v54, %v2880_v51  ;;  %v1217_v56 = vadd.s32 %v1127_v57, %v7372_v17  ;;  %v1219_v11 = vadd.s32 %v1127_v57, %v7373_v59  ;;  %v1216_v35 = vadd.s32 %v1127_v57, %v7374_v34  ;;  %v6569_v51 = vpop.f32.mrb[51].mxu1 }
 0x283   : > { %v3391_v29 = vshrl.u32 %v3263_v18, 16  ;;  %v3265_v27 = vmul.u32 2221713035, %v3137_v7  ;;  %v3262_v40 = vmul.u32 2221713035, %v3134_v45  ;;  %v1218_v22 = vadd.s32 %v1127_v57, %v7376_v43 }
 0x284   : > { %v3264_v46 = vmul.u32 2221713035, %v3136_v58  ;;  %v1347_v20 = vxor.u32 %v7375_v48, %v1217_v56  ;;  %v1349_v9 = vxor.u32 %v7375_v48, %v1219_v11  ;;  %v1346_v10 = vxor.u32 %v7375_v48, %v1216_v35 }
 0x285   : > { %v3519_v53 = vxor.u32 %v3391_v29, %v3263_v18  ;;  %v3393_v44 = vshrl.u32 %v3265_v27, 16  ;;  %v3390_v31 = vshrl.u32 %v3262_v40, 16  ;;  %v1348_v1 = vxor.u32 %v7375_v48, %v1218_v22 }
 0x286   : > { %v3392_v33 = vshrl.u32 %v3264_v46, 16  ;;  %v1475_v4 = vshrl.u32 %v1347_v20, 16  ;;  %v1477_v5 = vshrl.u32 %v1349_v9, 16  ;;  %v1474_v39 = vshrl.u32 %v1346_v10, 16 }
 0x287   : > { %vm3647_vm8 = vcmp.ge.u32.totalorder %v3519_v53, 429496730  ;;  %v3521_v12 = vxor.u32 %v3393_v44, %v3265_v27  ;;  %v3518_v52 = vxor.u32 %v3390_v31, %v3262_v40  ;;  %v1476_v55 = vshrl.u32 %v1348_v1, 16  ;;  %v7470_v27 = vld [vmem:[#allocation22_spill] sm:$0xff] }
 0x288   : > { %4540 = vmatprep.mubr.msk.f32.mxu1 %vm3647_vm8, %v7466_v0  ;;  %v3520_v54 = vxor.u32 %v3392_v33, %v3264_v46  ;;  %v1603_v57 = vxor.u32 %v1475_v4, %v1347_v20  ;;  %v1605_v18 = vxor.u32 %v1477_v5, %v1349_v9  ;;  %v1602_v7 = vxor.u32 %v1474_v39, %v1346_v10 }
 0x289   : > { %vm3649_vm9 = vcmp.ge.u32.totalorder %v3521_v12, 429496730  ;;  %vm3646_vm10 = vcmp.ge.u32.totalorder %v3518_v52, 429496730  ;;  %v1604_v45 = vxor.u32 %v1476_v55, %v1348_v1  ;;  %v7467_v56 = vmax.f32 %v6430_v49, 0.0  ;;  %v7472_v1 = vld [vmem:[#allocation23_spill] sm:$0xff] }
 0x28a   : > { %v7468_v11 = vmax.f32 %v6395_v32, 0.0  ;;  %vm3648_vm11 = vcmp.ge.u32.totalorder %v3520_v54, 429496730  ;;  %v1731_v35 = vmul.u32 2146121005, %v1603_v57  ;;  %v6580_v23 = vadd.f32 %v6416_v41, %v5500_v42  ;;  %v7473_v12 = vld [vmem:[#allocation24_spill] sm:$0xff] }
 0x28b   : > { %4604 = vmatprep.mubr.msk.f32.mxu0 %vm3649_vm9, %v7467_v56  ;;  %v1733_v29 = vmul.u32 2146121005, %v1605_v18  ;;  %v7471_v40 = vmax.f32 %v7470_v27, 0.0  ;;  %v1730_v22 = vmul.u32 2146121005, %v1602_v7  ;;  %v1057_v49 = vadd.s32 160, %v5399_v60 }
 0x28c   : > { %4541 = vmatmul.mubr.msk.f32.gmra.mrb[100].mxu1 %vm3646_vm10, %v7468_v11  ;;  %7469 = vst [vmem:[#allocation21_spill] sm:$0xff] %v6580_v23  ;;  %v1732_v46 = vmul.u32 2146121005, %v1604_v45  ;;  %v1859_v9 = vshrl.u32 %v1731_v35, 15  ;;  %v6591_v33 = vadd.f32 %v7472_v1, %v5555_v26  ;;  %v6596_v52 = vadd.f32 %v7473_v12, %v5532_v6  ;;  %v7474_v57 = vld [vmem:[#allocation25_spill] sm:$0xff]  ;;  %v6617_v12 = vpop.f32.mrb[52].mxu0 }
 0x28d   : > { %4605 = vmatmul.mubr.msk.f32.gmra.mrb[100].mxu0 %vm3648_vm11, %v7471_v40  ;;  %v1861_v10 = vshrl.u32 %v1733_v29, 15  ;;  %v1858_v44 = vshrl.u32 %v1730_v22, 15  ;;  %v1091_v41 = vadd.s32 %v5406_v3, %v1057_v49  ;;  %v6600_v18 = vadd.f32 %v7474_v57, %v5545_v16  ;;  %7475 = vst [vmem:[#allocation17_spill] sm:$0xff] %v6617_v12  ;;  %v6621_v20 = vpop.f32.mrb[53].mxu0 }
 0x28e   : > { %v1860_v31 = vshrl.u32 %v1732_v46, 15  ;;  %v1987_v4 = vxor.u32 %v1859_v9, %v1731_v35  ;;  %v6603_v56 = vadd.s32 168, %v5399_v60  ;;  %v6607_v11 = vadd.f32 %v6473_v61, %v5500_v42  ;;  %7477 = vst [vmem:[#allocation22_spill] sm:$0xff] %v6621_v20 }
 0x28f   : > { %v1989_v5 = vxor.u32 %v1861_v10, %v1733_v29  ;;  %v1986_v55 = vxor.u32 %v1858_v44, %v1730_v22  ;;  %v1128_v54 = vmul.u32 512, %v1091_v41 }
 0x290   : > { %v1988_v0 = vxor.u32 %v1860_v31, %v1732_v46  ;;  %v2115_v7 = vmul.u32 2221713035, %v1987_v4 }
 0x291   : > { %v2117_v45 = vmul.u32 2221713035, %v1989_v5  ;;  %v2114_v35 = vmul.u32 2221713035, %v1986_v55  ;;  %v1221_v27 = vadd.s32 %v1128_v54, %v7372_v17  ;;  %v1223_v40 = vadd.s32 %v1128_v54, %v7373_v59  ;;  %v6619_v55 = vpop.f32.mrb[52].mxu1 }
 0x292   : > { %v2116_v29 = vmul.u32 2221713035, %v1988_v0  ;;  %v2243_v22 = vshrl.u32 %v2115_v7, 16  ;;  %v1220_v49 = vadd.s32 %v1128_v54, %v7374_v34  ;;  %v1222_v9 = vadd.s32 %v1128_v54, %v7376_v43  ;;  %7476 = vst [vmem:[#allocation28_spill] sm:$0xff] %v6619_v55  ;;  %v6623_v58 = vpop.f32.mrb[53].mxu1 }
 0x293   : > { %v2245_v46 = vshrl.u32 %v2117_v45, 16  ;;  %v2242_v10 = vshrl.u32 %v2114_v35, 16  ;;  %v1351_v31 = vxor.u32 %v7375_v48, %v1221_v27  ;;  %v1353_v41 = vxor.u32 %v7375_v48, %v1223_v40  ;;  %7478 = vst [vmem:[#allocation23_spill] sm:$0xff] %v6623_v58 }
 0x294   : > { %v2244_v44 = vshrl.u32 %v2116_v29, 16  ;;  %v2371_v61 = vxor.u32 %v2243_v22, %v2115_v7  ;;  %v1350_v4 = vxor.u32 %v7375_v48, %v1220_v49  ;;  %v1352_v5 = vxor.u32 %v7375_v48, %v1222_v9 }
 0x295   : > { %v2373_v1 = vxor.u32 %v2245_v46, %v2117_v45  ;;  %v2370_v0 = vxor.u32 %v2242_v10, %v2114_v35  ;;  %v1479_v39 = vshrl.u32 %v1351_v31, 16  ;;  %v1481_v54 = vshrl.u32 %v1353_v41, 16 }
 0x296   : > { %v2372_v57 = vxor.u32 %v2244_v44, %v2116_v29  ;;  %v2499_v27 = vxor.u32 2654435769, %v2371_v61  ;;  %v1478_v7 = vshrl.u32 %v1350_v4, 16  ;;  %v1480_v45 = vshrl.u32 %v1352_v5, 16 }
 0x297   : > { %v2501_v40 = vxor.u32 2654435769, %v2373_v1  ;;  %v2498_v22 = vxor.u32 2654435769, %v2370_v0  ;;  %v1607_v49 = vxor.u32 %v1479_v39, %v1351_v31  ;;  %v1609_v9 = vxor.u32 %v1481_v54, %v1353_v41 }
 0x298   : > { %v2500_v46 = vxor.u32 2654435769, %v2372_v57  ;;  %v2627_v53 = vshrl.u32 %v2499_v27, 16  ;;  %v1606_v37 = vxor.u32 %v1478_v7, %v1350_v4  ;;  %v1608_v63 = vxor.u32 %v1480_v45, %v1352_v5 }
 0x299   : > { %v2629_v32 = vshrl.u32 %v2501_v40, 16  ;;  %v2626_v35 = vshrl.u32 %v2498_v22, 16  ;;  %v1735_v10 = vmul.u32 2146121005, %v1607_v49  ;;  %v1737_v44 = vmul.u32 2146121005, %v1609_v9 }
 0x29a   : > { %v2628_v29 = vshrl.u32 %v2500_v46, 16  ;;  %v2755_v50 = vxor.u32 %v2627_v53, %v2499_v27  ;;  %v1734_v55 = vmul.u32 2146121005, %v1606_v37  ;;  %v1736_v58 = vmul.u32 2146121005, %v1608_v63 }
 0x29b   : > { %v2757_v20 = vxor.u32 %v2629_v32, %v2501_v40  ;;  %v2754_v61 = vxor.u32 %v2626_v35, %v2498_v22  ;;  %v1863_v12 = vshrl.u32 %v1735_v10, 15  ;;  %v1865_v23 = vshrl.u32 %v1737_v44, 15 }
 0x29c   : > { %v2756_v1 = vxor.u32 %v2628_v29, %v2500_v46  ;;  %v2883_v0 = vmul.u32 2146121005, %v2755_v50  ;;  %v1862_v39 = vshrl.u32 %v1734_v55, 15  ;;  %v1864_v31 = vshrl.u32 %v1736_v58, 15 }
 0x29d   : > { %v2885_v57 = vmul.u32 2146121005, %v2757_v20  ;;  %v2882_v41 = vmul.u32 2146121005, %v2754_v61  ;;  %v1991_v4 = vxor.u32 %v1863_v12, %v1735_v10  ;;  %v1993_v5 = vxor.u32 %v1865_v23, %v1737_v44 }
 0x29e   : > { %v2884_v54 = vmul.u32 2146121005, %v2756_v1  ;;  %v3011_v7 = vshrl.u32 %v2883_v0, 15  ;;  %v1990_v49 = vxor.u32 %v1862_v39, %v1734_v55  ;;  %v1992_v9 = vxor.u32 %v1864_v31, %v1736_v58 }
 0x29f   : > { %v3013_v45 = vshrl.u32 %v2885_v57, 15  ;;  %v3010_v53 = vshrl.u32 %v2882_v41, 15  ;;  %v2119_v37 = vmul.u32 2221713035, %v1991_v4  ;;  %v2121_v63 = vmul.u32 2221713035, %v1993_v5 }
 0x2a0   : > { %v3012_v32 = vshrl.u32 %v2884_v54, 15  ;;  %v3139_v27 = vxor.u32 %v3011_v7, %v2883_v0  ;;  %v2118_v22 = vmul.u32 2221713035, %v1990_v49  ;;  %v2120_v46 = vmul.u32 2221713035, %v1992_v9 }
 0x2a1   : > { %v3141_v40 = vxor.u32 %v3013_v45, %v2885_v57  ;;  %v3138_v50 = vxor.u32 %v3010_v53, %v2882_v41  ;;  %v2247_v35 = vshrl.u32 %v2119_v37, 16  ;;  %v2249_v29 = vshrl.u32 %v2121_v63, 16 }
 0x2a2   : > { %v3140_v20 = vxor.u32 %v3012_v32, %v2884_v54  ;;  %v3267_v61 = vmul.u32 2221713035, %v3139_v27  ;;  %v2246_v12 = vshrl.u32 %v2118_v22, 16  ;;  %v2248_v23 = vshrl.u32 %v2120_v46, 16 }
 0x2a3   : > { %v3269_v1 = vmul.u32 2221713035, %v3141_v40  ;;  %v3266_v10 = vmul.u32 2221713035, %v3138_v50  ;;  %v2375_v55 = vxor.u32 %v2247_v35, %v2119_v37  ;;  %v2377_v58 = vxor.u32 %v2249_v29, %v2121_v63 }
 0x2a4   : > { %v3268_v44 = vmul.u32 2221713035, %v3140_v20  ;;  %v3395_v39 = vshrl.u32 %v3267_v61, 16  ;;  %v2374_v4 = vxor.u32 %v2246_v12, %v2118_v22  ;;  %v2376_v5 = vxor.u32 %v2248_v23, %v2120_v46 }
 0x2a5   : > { %v3397_v31 = vshrl.u32 %v3269_v1, 16  ;;  %v3394_v0 = vshrl.u32 %v3266_v10, 16  ;;  %v2503_v7 = vxor.u32 2654435769, %v2375_v55  ;;  %v2505_v45 = vxor.u32 2654435769, %v2377_v58 }
 0x2a6   : > { %v3396_v57 = vshrl.u32 %v3268_v44, 16  ;;  %v3523_v41 = vxor.u32 %v3395_v39, %v3267_v61  ;;  %v2502_v49 = vxor.u32 2654435769, %v2374_v4  ;;  %v2504_v9 = vxor.u32 2654435769, %v2376_v5  ;;  %v7483_v5 = vld [vmem:[#allocation26_spill] sm:$0xff] }
 0x2a7   : > { %v3525_v54 = vxor.u32 %v3397_v31, %v3269_v1  ;;  %v3522_v53 = vxor.u32 %v3394_v0, %v3266_v10  ;;  %v2631_v27 = vshrl.u32 %v2503_v7, 16  ;;  %v2633_v40 = vshrl.u32 %v2505_v45, 16 }
 0x2a8   : > { %v3524_v32 = vxor.u32 %v3396_v57, %v3268_v44  ;;  %vm3651_vm12 = vcmp.ge.u32.totalorder %v3523_v41, 429496730  ;;  %v2630_v37 = vshrl.u32 %v2502_v49, 16  ;;  %v2632_v63 = vshrl.u32 %v2504_v9, 16 }
 0x2a9   : > { %vm3653_vm13 = vcmp.ge.u32.totalorder %v3525_v54, 429496730  ;;  %v7479_v50 = vmax.f32 %v6458_v14, 0.0  ;;  %v7480_v22 = vmax.f32 %v6462_v2, 0.0  ;;  %vm3650_vm14 = vcmp.ge.u32.totalorder %v3522_v53, 429496730 }
 0x2aa   : > { %vm3652_vm15 = vcmp.ge.u32.totalorder %v3524_v32, 429496730  ;;  %v2759_v46 = vxor.u32 %v2631_v27, %v2503_v7  ;;  %v2761_v20 = vxor.u32 %v2633_v40, %v2505_v45  ;;  %v7481_v35 = vmax.f32 %v6438_v47, 0.0  ;;  %v7484_v7 = vld [vmem:[#allocation27_spill] sm:$0xff] }
 0x2ab   : > { %4542 = vmatprep.mubr.msk.f32.mxu1 %vm3651_vm12, %v7479_v50  ;;  %4606 = vmatprep.mubr.msk.f32.mxu0 %vm3653_vm13, %v7480_v22  ;;  %v7482_v29 = vmax.f32 %v6453_v62, 0.0  ;;  %v2758_v61 = vxor.u32 %v2630_v37, %v2502_v49  ;;  %v2760_v1 = vxor.u32 %v2632_v63, %v2504_v9  ;;  %v1092_v14 = vadd.s32 %v5406_v3, %v6603_v56 }
 0x2ac   : > { %4543 = vmatmul.mubr.msk.f32.gmra.mrb[102].mxu1 %vm3650_vm14, %v7481_v35  ;;  %v2887_v23 = vmul.u32 2146121005, %v2759_v46  ;;  %v2889_v2 = vmul.u32 2146121005, %v2761_v20  ;;  %v6641_v62 = vadd.f32 %v6475_v19, %v5555_v26  ;;  %v6645_v56 = vadd.f32 %v7483_v5, %v5532_v6 }
 0x2ad   : > { %4607 = vmatmul.mubr.msk.f32.gmra.mrb[102].mxu0 %vm3652_vm15, %v7482_v29  ;;  %v2886_v55 = vmul.u32 2146121005, %v2758_v61  ;;  %v2888_v58 = vmul.u32 2146121005, %v2760_v1  ;;  %v6649_v45 = vadd.f32 %v7484_v7, %v5545_v16  ;;  %v1059_v41 = vadd.s32 176, %v5399_v60 }
 0x2ae   : > { %v3015_v39 = vshrl.u32 %v2887_v23, 15  ;;  %v3017_v31 = vshrl.u32 %v2889_v2, 15  ;;  %v1129_v4 = vmul.u32 512, %v1092_v14  ;;  %v7486_v47 = vmax.f32 %v6520_v38, 0.0 }
 0x2af   : > { %v3014_v0 = vshrl.u32 %v2886_v55, 15  ;;  %v3016_v57 = vshrl.u32 %v2888_v58, 15  ;;  %v7487_v12 = vmax.f32 %v6524_v30, 0.0 }
 0x2b0   : > { %v3143_v54 = vxor.u32 %v3015_v39, %v2887_v23  ;;  %v3145_v49 = vxor.u32 %v3017_v31, %v2889_v2  ;;  %v1225_v19 = vadd.s32 %v1129_v4, %v7372_v17  ;;  %v1227_v9 = vadd.s32 %v1129_v4, %v7373_v59  ;;  %v6660_v2 = vpop.f32.mrb[54].mxu0 }
 0x2b1   : > { %v3142_v53 = vxor.u32 %v3014_v0, %v2886_v55  ;;  %v3144_v32 = vxor.u32 %v3016_v57, %v2888_v58  ;;  %v1224_v27 = vadd.s32 %v1129_v4, %v7374_v34  ;;  %v1226_v40 = vadd.s32 %v1129_v4, %v7376_v43  ;;  %v6662_v55 = vpop.f32.mrb[54].mxu1  ;;  %v6664_v5 = vpop.f32.mrb[55].mxu0 }
 0x2b2   : > { %v3271_v37 = vmul.u32 2221713035, %v3143_v54  ;;  %v3273_v63 = vmul.u32 2221713035, %v3145_v49  ;;  %v1355_v50 = vxor.u32 %v7375_v48, %v1225_v19  ;;  %v1357_v22 = vxor.u32 %v7375_v48, %v1227_v9  ;;  %v6666_v0 = vpop.f32.mrb[55].mxu1 }
 0x2b3   : > { %v3270_v46 = vmul.u32 2221713035, %v3142_v53  ;;  %v3272_v20 = vmul.u32 2221713035, %v3144_v32  ;;  %v1354_v35 = vxor.u32 %v7375_v48, %v1224_v27  ;;  %v1356_v29 = vxor.u32 %v7375_v48, %v1226_v40  ;;  %7485 = vst [vmem:[#allocation24_spill] sm:$0xff] %v6666_v0 }
 0x2b4   : > { %v3399_v61 = vshrl.u32 %v3271_v37, 16  ;;  %v3401_v1 = vshrl.u32 %v3273_v63, 16  ;;  %v1483_v14 = vshrl.u32 %v1355_v50, 16  ;;  %v1485_v23 = vshrl.u32 %v1357_v22, 16 }
 0x2b5   : > { %v3398_v58 = vshrl.u32 %v3270_v46, 16  ;;  %v3400_v39 = vshrl.u32 %v3272_v20, 16  ;;  %v1482_v31 = vshrl.u32 %v1354_v35, 16  ;;  %v1484_v4 = vshrl.u32 %v1356_v29, 16 }
 0x2b6   : > { %v3527_v57 = vxor.u32 %v3399_v61, %v3271_v37  ;;  %v3529_v7 = vxor.u32 %v3401_v1, %v3273_v63  ;;  %v1611_v54 = vxor.u32 %v1483_v14, %v1355_v50  ;;  %v1613_v49 = vxor.u32 %v1485_v23, %v1357_v22  ;;  %v7488_v63 = vld [vmem:[#allocation15_spill] sm:$0xff]  ;;  %v7490_v22 = vld [vmem:[#allocation20_spill] sm:$0xff] }
 0x2b7   : > { %v3526_v19 = vxor.u32 %v3398_v58, %v3270_v46  ;;  %v3528_v9 = vxor.u32 %v3400_v39, %v3272_v20  ;;  %v1610_v53 = vxor.u32 %v1482_v31, %v1354_v35  ;;  %v1612_v32 = vxor.u32 %v1484_v4, %v1356_v29 }
 0x2b8   : > { %vm3655_vm0 = vcmp.ge.u32.totalorder %v3527_v57, 429496730  ;;  %vm3657_vm1 = vcmp.ge.u32.totalorder %v3529_v7, 429496730  ;;  %v1739_v27 = vmul.u32 2146121005, %v1611_v54  ;;  %v1093_v40 = vadd.s32 %v5406_v3, %v1059_v41 }
 0x2b9   : > { %4544 = vmatprep.mubr.msk.f32.mxu1 %vm3655_vm0, %v7486_v47  ;;  %4608 = vmatprep.mubr.msk.f32.mxu0 %vm3657_vm1, %v7487_v12  ;;  %vm3654_vm2 = vcmp.ge.u32.totalorder %v3526_v19, 429496730  ;;  %vm3656_vm3 = vcmp.ge.u32.totalorder %v3528_v9, 429496730  ;;  %v1741_v37 = vmul.u32 2146121005, %v1613_v49  ;;  %v6675_v50 = vadd.f32 %v7488_v63, %v5500_v42 }
 0x2ba   : > { %v7491_v46 = vmax.f32 %v7490_v22, 0.0  ;;  %v7492_v20 = vmax.f32 %v6516_v21, 0.0  ;;  %v1867_v41 = vshrl.u32 %v1739_v27, 15  ;;  %v1738_v35 = vmul.u32 2146121005, %v1610_v53  ;;  %v7497_v12 = vld [vmem:[#allocation16_spill] sm:$0xff] }
 0x2bb   : > { %7489 = vst [vmem:[#allocation25_spill] sm:$0xff] %v6675_v50  ;;  %v1740_v38 = vmul.u32 2146121005, %v1612_v32  ;;  %v1869_v30 = vshrl.u32 %v1741_v37, 15  ;;  %v1130_v61 = vmul.u32 512, %v1093_v40  ;;  %v6703_v44 = vadd.f32 %v7497_v12, %v5555_v26 }
 0x2bc   : > { %4545 = vmatmul.mubr.msk.f32.gmra.mrb[104].mxu1 %vm3654_vm2, %v7491_v46  ;;  %4609 = vmatmul.mubr.msk.f32.gmra.mrb[104].mxu0 %vm3656_vm3, %v7492_v20  ;;  %v1995_v1 = vxor.u32 %v1867_v41, %v1739_v27  ;;  %v1866_v14 = vshrl.u32 %v1738_v35, 15 }
 0x2bd   : > { %v1868_v23 = vshrl.u32 %v1740_v38, 15  ;;  %v1997_v39 = vxor.u32 %v1869_v30, %v1741_v37  ;;  %v1229_v21 = vadd.s32 %v1130_v61, %v7372_v17  ;;  %v1231_v31 = vadd.s32 %v1130_v61, %v7373_v59 }
 0x2be   : > { %v1228_v4 = vadd.s32 %v1130_v61, %v7374_v34  ;;  %v2123_v57 = vmul.u32 2221713035, %v1995_v1  ;;  %v1994_v7 = vxor.u32 %v1866_v14, %v1738_v35  ;;  %v1230_v49 = vadd.s32 %v1130_v61, %v7376_v43  ;;  %v6693_v1 = vpop.f32.mrb[56].mxu0  ;;  %v6695_v14 = vpop.f32.mrb[56].mxu1 }
 0x2bf   : > { %v1996_v54 = vxor.u32 %v1868_v23, %v1740_v38  ;;  %v2125_v19 = vmul.u32 2221713035, %v1997_v39  ;;  %v1359_v9 = vxor.u32 %v7375_v48, %v1229_v21  ;;  %v1361_v53 = vxor.u32 %v7375_v48, %v1231_v31  ;;  %7493 = vst [vmem:[#allocation26_spill] sm:$0xff] %v6693_v1  ;;  %7494 = vst [vmem:[#allocation27_spill] sm:$0xff] %v6695_v14 }
 0x2c0   : > { %v1358_v32 = vxor.u32 %v7375_v48, %v1228_v4  ;;  %v2251_v27 = vshrl.u32 %v2123_v57, 16  ;;  %v2122_v40 = vmul.u32 2221713035, %v1994_v7  ;;  %v1360_v63 = vxor.u32 %v7375_v48, %v1230_v49  ;;  %v6697_v4 = vpop.f32.mrb[57].mxu0  ;;  %v6699_v7 = vpop.f32.mrb[57].mxu1 }
 0x2c1   : > { %v2124_v37 = vmul.u32 2221713035, %v1996_v54  ;;  %v2253_v22 = vshrl.u32 %v2125_v19, 16  ;;  %v1487_v46 = vshrl.u32 %v1359_v9, 16  ;;  %v1489_v20 = vshrl.u32 %v1361_v53, 16  ;;  %7495 = vst [vmem:[#allocation15_spill] sm:$0xff] %v6697_v4 }
 0x2c2   : > { %v1486_v41 = vshrl.u32 %v1358_v32, 16  ;;  %v2379_v35 = vxor.u32 %v2251_v27, %v2123_v57  ;;  %v2250_v38 = vshrl.u32 %v2122_v40, 16  ;;  %v1488_v61 = vshrl.u32 %v1360_v63, 16  ;;  %7496 = vst [vmem:[#allocation20_spill] sm:$0xff] %v6699_v7  ;;  %v7499_v4 = vld [vmem:[#allocation18_spill] sm:$0xff] }
 0x2c3   : > { %v2252_v30 = vshrl.u32 %v2124_v37, 16  ;;  %v2381_v23 = vxor.u32 %v2253_v22, %v2125_v19  ;;  %v1615_v39 = vxor.u32 %v1487_v46, %v1359_v9  ;;  %v1617_v21 = vxor.u32 %v1489_v20, %v1361_v53  ;;  %v7498_v53 = vld [vmem:[#allocation14_spill] sm:$0xff] }
 0x2c4   : > { %v1614_v31 = vxor.u32 %v1486_v41, %v1358_v32  ;;  %v2507_v54 = vxor.u32 2654435769, %v2379_v35  ;;  %v2378_v49 = vxor.u32 %v2250_v38, %v2122_v40  ;;  %v1616_v47 = vxor.u32 %v1488_v61, %v1360_v63 }
 0x2c5   : > { %v2380_v58 = vxor.u32 %v2252_v30, %v2124_v37  ;;  %v2509_v57 = vxor.u32 2654435769, %v2381_v23  ;;  %v1743_v27 = vmul.u32 2146121005, %v1615_v39  ;;  %v1745_v29 = vmul.u32 2146121005, %v1617_v21 }
 0x2c6   : > { %v2635_v10 = vshrl.u32 %v2507_v54, 16  ;;  %v2506_v19 = vxor.u32 2654435769, %v2378_v49  ;;  %v6707_v32 = vadd.f32 %v7498_v53, %v5532_v6  ;;  %v1742_v40 = vmul.u32 2146121005, %v1614_v31 }
 0x2c7   : > { %v2508_v9 = vxor.u32 2654435769, %v2380_v58  ;;  %v2637_v22 = vshrl.u32 %v2509_v57, 16  ;;  %v1871_v46 = vshrl.u32 %v1743_v27, 15  ;;  %v1873_v20 = vshrl.u32 %v1745_v29, 15 }
 0x2c8   : > { %v2763_v37 = vxor.u32 %v2635_v10, %v2507_v54  ;;  %v2634_v63 = vshrl.u32 %v2506_v19, 16  ;;  %v1744_v35 = vmul.u32 2146121005, %v1616_v47  ;;  %v1870_v12 = vshrl.u32 %v1742_v40, 15 }
 0x2c9   : > { %v2636_v41 = vshrl.u32 %v2508_v9, 16  ;;  %v2765_v38 = vxor.u32 %v2637_v22, %v2509_v57  ;;  %v1999_v30 = vxor.u32 %v1871_v46, %v1743_v27  ;;  %v2001_v61 = vxor.u32 %v1873_v20, %v1745_v29 }
 0x2ca   : > { %v2891_v23 = vmul.u32 2146121005, %v2763_v37  ;;  %v2762_v39 = vxor.u32 %v2634_v63, %v2506_v19  ;;  %v1872_v58 = vshrl.u32 %v1744_v35, 15  ;;  %v1998_v53 = vxor.u32 %v1870_v12, %v1742_v40 }
 0x2cb   : > { %v2764_v21 = vxor.u32 %v2636_v41, %v2508_v9  ;;  %v2893_v49 = vmul.u32 2146121005, %v2765_v38  ;;  %v2127_v7 = vmul.u32 2221713035, %v1999_v30  ;;  %v6711_v14 = vadd.f32 %v7499_v4, %v5545_v16 }
 0x2cc   : > { %v3019_v31 = vshrl.u32 %v2891_v23, 15  ;;  %v2890_v10 = vmul.u32 2146121005, %v2762_v39  ;;  %v2000_v50 = vxor.u32 %v1872_v58, %v1744_v35  ;;  %v2129_v27 = vmul.u32 2221713035, %v2001_v61 }
 0x2cd   : > { %v2892_v54 = vmul.u32 2146121005, %v2764_v21  ;;  %v3021_v47 = vshrl.u32 %v2893_v49, 15  ;;  %v2255_v57 = vshrl.u32 %v2127_v7, 16  ;;  %v2126_v29 = vmul.u32 2221713035, %v1998_v53 }
 0x2ce   : > { %v3147_v22 = vxor.u32 %v3019_v31, %v2891_v23  ;;  %v3018_v46 = vshrl.u32 %v2890_v10, 15  ;;  %v2128_v9 = vmul.u32 2221713035, %v2000_v50  ;;  %v2257_v63 = vshrl.u32 %v2129_v27, 16 }
 0x2cf   : > { %v3020_v19 = vshrl.u32 %v2892_v54, 15  ;;  %v3149_v20 = vxor.u32 %v3021_v47, %v2893_v49  ;;  %v2383_v37 = vxor.u32 %v2255_v57, %v2127_v7  ;;  %v2254_v40 = vshrl.u32 %v2126_v29, 16 }
 0x2d0   : > { %v3275_v41 = vmul.u32 2221713035, %v3147_v22  ;;  %v3146_v38 = vxor.u32 %v3018_v46, %v2890_v10  ;;  %v2256_v30 = vshrl.u32 %v2128_v9, 16  ;;  %v2385_v21 = vxor.u32 %v2257_v63, %v2129_v27 }
 0x2d1   : > { %v3148_v4 = vxor.u32 %v3020_v19, %v2892_v54  ;;  %v3277_v12 = vmul.u32 2221713035, %v3149_v20  ;;  %v2511_v39 = vxor.u32 2654435769, %v2383_v37  ;;  %v2382_v35 = vxor.u32 %v2254_v40, %v2126_v29 }
 0x2d2   : > { %v3403_v58 = vshrl.u32 %v3275_v41, 16  ;;  %v3274_v1 = vmul.u32 2221713035, %v3146_v38  ;;  %v2384_v53 = vxor.u32 %v2256_v30, %v2128_v9  ;;  %v2513_v0 = vxor.u32 2654435769, %v2385_v21 }
 0x2d3   : > { %v3276_v61 = vmul.u32 2221713035, %v3148_v4  ;;  %v3405_v23 = vshrl.u32 %v3277_v12, 16  ;;  %v2639_v31 = vshrl.u32 %v2511_v39, 16  ;;  %v2510_v50 = vxor.u32 2654435769, %v2382_v35 }
 0x2d4   : > { %v3531_v49 = vxor.u32 %v3403_v58, %v3275_v41  ;;  %v3402_v7 = vshrl.u32 %v3274_v1, 16  ;;  %v2512_v57 = vxor.u32 2654435769, %v2384_v53  ;;  %v2641_v54 = vshrl.u32 %v2513_v0, 16 }
 0x2d5   : > { %v3404_v47 = vshrl.u32 %v3276_v61, 16  ;;  %v3533_v22 = vxor.u32 %v3405_v23, %v3277_v12  ;;  %v2767_v10 = vxor.u32 %v2639_v31, %v2511_v39  ;;  %v2638_v46 = vshrl.u32 %v2510_v50, 16 }
 0x2d6   : > { %vm3659_vm4 = vcmp.ge.u32.totalorder %v3531_v49, 429496730  ;;  %v3530_v19 = vxor.u32 %v3402_v7, %v3274_v1  ;;  %v2640_v29 = vshrl.u32 %v2512_v57, 16  ;;  %v7500_v20 = vmax.f32 %v6549_v13, 0.0 }
 0x2d7   : > { %v3532_v27 = vxor.u32 %v3404_v47, %v3276_v61  ;;  %vm3661_vm5 = vcmp.ge.u32.totalorder %v3533_v22, 429496730  ;;  %v2895_v9 = vmul.u32 2146121005, %v2767_v10  ;;  %v2769_v37 = vxor.u32 %v2641_v54, %v2513_v0 }
 0x2d8   : > { %4546 = vmatprep.mubr.msk.f32.mxu1 %vm3659_vm4, %v7500_v20  ;;  %v2766_v63 = vxor.u32 %v2638_v46, %v2510_v50  ;;  %v7501_v40 = vmax.f32 %v6553_v15, 0.0  ;;  %vm3658_vm6 = vcmp.ge.u32.totalorder %v3530_v19, 429496730  ;;  %v2768_v41 = vxor.u32 %v2640_v29, %v2512_v57 }
 0x2d9   : > { %vm3660_vm7 = vcmp.ge.u32.totalorder %v3532_v27, 429496730  ;;  %v1060_v38 = vadd.s32 184, %v5399_v60  ;;  %v7502_v4 = vmax.f32 %v6541_v36, 0.0  ;;  %v7503_v1 = vmax.f32 %v6545_v24, 0.0 }
 0x2da   : > { %4610 = vmatprep.mubr.msk.f32.mxu0 %vm3661_vm5, %v7501_v40  ;;  %v3023_v13 = vshrl.u32 %v2895_v9, 15  ;;  %v2897_v30 = vmul.u32 2146121005, %v2769_v37  ;;  %v2894_v12 = vmul.u32 2146121005, %v2766_v63  ;;  %v6728_v36 = vadd.f32 %v6563_v8, %v5500_v42 }
 0x2db   : > { %4547 = vmatmul.mubr.msk.f32.gmra.mrb[106].mxu1 %vm3658_vm6, %v7502_v4  ;;  %4611 = vmatmul.mubr.msk.f32.gmra.mrb[106].mxu0 %vm3660_vm7, %v7503_v1  ;;  %v2896_v39 = vmul.u32 2146121005, %v2768_v41  ;;  %v1094_v35 = vadd.s32 %v5406_v3, %v1060_v38  ;;  %v6732_v31 = vadd.f32 %v6565_v25, %v5555_v26  ;;  %v6736_v50 = vadd.f32 %v6567_v28, %v5532_v6  ;;  %v6750_v41 = vpop.f32.mrb[58].mxu0  ;;  %v6752_v38 = vpop.f32.mrb[58].mxu1 }
 0x2dc   : > { %v3151_v58 = vxor.u32 %v3023_v13, %v2895_v9  ;;  %v3025_v61 = vshrl.u32 %v2897_v30, 15  ;;  %v3022_v53 = vshrl.u32 %v2894_v12, 15  ;;  %v6740_v57 = vadd.f32 %v6569_v51, %v5545_v16 }
 0x2dd   : > { %v3024_v24 = vshrl.u32 %v2896_v39, 15  ;;  %v1131_v23 = vmul.u32 512, %v1094_v35 }
 0x2de   : > { %v3279_v49 = vmul.u32 2221713035, %v3151_v58  ;;  %v3153_v7 = vxor.u32 %v3025_v61, %v2897_v30  ;;  %v3150_v47 = vxor.u32 %v3022_v53, %v2894_v12  ;;  %v6754_v12 = vpop.f32.mrb[59].mxu0  ;;  %v7505_v53 = vmax.f32 %v6596_v52, 0.0  ;;  %v7509_v52 = vld [vmem:[#allocation17_spill] sm:$0xff] }
 0x2df   : > { %v3152_v22 = vxor.u32 %v3024_v24, %v2896_v39  ;;  %v1233_v8 = vadd.s32 %v1131_v23, %v7372_v17  ;;  %v1235_v10 = vadd.s32 %v1131_v23, %v7373_v59  ;;  %v1232_v54 = vadd.s32 %v1131_v23, %v7374_v34  ;;  %v6756_v39 = vpop.f32.mrb[59].mxu1 }
 0x2e0   : > { %v3407_v25 = vshrl.u32 %v3279_v49, 16  ;;  %v3281_v46 = vmul.u32 2221713035, %v3153_v7  ;;  %v3278_v19 = vmul.u32 2221713035, %v3150_v47  ;;  %v1234_v28 = vadd.s32 %v1131_v23, %v7376_v43  ;;  %7504 = vst [vmem:[#allocation16_spill] sm:$0xff] %v6756_v39 }
 0x2e1   : > { %v3280_v27 = vmul.u32 2221713035, %v3152_v22  ;;  %v1363_v29 = vxor.u32 %v7375_v48, %v1233_v8  ;;  %v1365_v20 = vxor.u32 %v7375_v48, %v1235_v10  ;;  %v1362_v51 = vxor.u32 %v7375_v48, %v1232_v54  ;;  %v7507_v10 = vld [vmem:[#allocation21_spill] sm:$0xff] }
 0x2e2   : > { %v3535_v9 = vxor.u32 %v3407_v25, %v3279_v49  ;;  %v3409_v37 = vshrl.u32 %v3281_v46, 16  ;;  %v3406_v63 = vshrl.u32 %v3278_v19, 16  ;;  %v1364_v40 = vxor.u32 %v7375_v48, %v1234_v28 }
 0x2e3   : > { %v3408_v4 = vshrl.u32 %v3280_v27, 16  ;;  %v1491_v1 = vshrl.u32 %v1363_v29, 16  ;;  %v1493_v13 = vshrl.u32 %v1365_v20, 16  ;;  %v1490_v30 = vshrl.u32 %v1362_v51, 16 }
 0x2e4   : > { %vm3663_vm8 = vcmp.ge.u32.totalorder %v3535_v9, 429496730  ;;  %v3537_v35 = vxor.u32 %v3409_v37, %v3281_v46  ;;  %v3534_v58 = vxor.u32 %v3406_v63, %v3278_v19  ;;  %v1492_v61 = vshrl.u32 %v1364_v40, 16 }
 0x2e5   : > { %4548 = vmatprep.mubr.msk.f32.mxu1 %vm3663_vm8, %v7505_v53  ;;  %v3536_v24 = vxor.u32 %v3408_v4, %v3280_v27  ;;  %v1619_v23 = vxor.u32 %v1491_v1, %v1363_v29  ;;  %v1621_v49 = vxor.u32 %v1493_v13, %v1365_v20  ;;  %v1618_v7 = vxor.u32 %v1490_v30, %v1362_v51  ;;  %v7512_v13 = vld [vmem:[#allocation28_spill] sm:$0xff] }
 0x2e6   : > { %vm3665_vm9 = vcmp.ge.u32.totalorder %v3537_v35, 429496730  ;;  %vm3662_vm10 = vcmp.ge.u32.totalorder %v3534_v58, 429496730  ;;  %v1620_v47 = vxor.u32 %v1492_v61, %v1364_v40  ;;  %v7506_v8 = vmax.f32 %v6600_v18, 0.0  ;;  %v7513_v61 = vld [vmem:[#allocation22_spill] sm:$0xff] }
 0x2e7   : > { %v7508_v54 = vmax.f32 %v7507_v10, 0.0  ;;  %vm3664_vm11 = vcmp.ge.u32.totalorder %v3536_v24, 429496730  ;;  %v1747_v25 = vmul.u32 2146121005, %v1619_v23  ;;  %v6767_v19 = vadd.f32 %v7509_v52, %v5500_v42 }
 0x2e8   : > { %4612 = vmatprep.mubr.msk.f32.mxu0 %vm3665_vm9, %v7506_v8  ;;  %v1749_v46 = vmul.u32 2146121005, %v1621_v49  ;;  %v7511_v28 = vmax.f32 %v6591_v33, 0.0  ;;  %v1746_v27 = vmul.u32 2146121005, %v1618_v7  ;;  %v1061_v18 = vadd.s32 192, %v5399_v60 }
 0x2e9   : > { %4549 = vmatmul.mubr.msk.f32.gmra.mrb[108].mxu1 %vm3662_vm10, %v7508_v54  ;;  %7510 = vst [vmem:[#allocation14_spill] sm:$0xff] %v6767_v19  ;;  %v1748_v29 = vmul.u32 2146121005, %v1620_v47  ;;  %v1875_v51 = vshrl.u32 %v1747_v25, 15  ;;  %v6778_v33 = vadd.f32 %v7512_v13, %v5555_v26  ;;  %v6783_v53 = vadd.f32 %v7513_v61, %v5532_v6  ;;  %v7514_v7 = vld [vmem:[#allocation23_spill] sm:$0xff] }
 0x2ea   : > { %4613 = vmatmul.mubr.msk.f32.gmra.mrb[108].mxu0 %vm3664_vm11, %v7511_v28  ;;  %v1877_v9 = vshrl.u32 %v1749_v46, 15  ;;  %v1874_v40 = vshrl.u32 %v1746_v27, 15  ;;  %v1095_v1 = vadd.s32 %v5406_v3, %v1061_v18  ;;  %v6787_v47 = vadd.f32 %v7514_v7, %v5545_v16 }
 0x2eb   : > { %v1876_v4 = vshrl.u32 %v1748_v29, 15  ;;  %v2003_v30 = vxor.u32 %v1875_v51, %v1747_v25  ;;  %v6790_v54 = vadd.s32 200, %v5399_v60  ;;  %v6794_v25 = vadd.f32 %v6660_v2, %v5500_v42 }
 0x2ec   : > { %v2005_v35 = vxor.u32 %v1877_v9, %v1749_v46  ;;  %v2002_v24 = vxor.u32 %v1874_v40, %v1746_v27  ;;  %v1132_v49 = vmul.u32 512, %v1095_v1 }
 0x2ed   : > { %v2004_v23 = vxor.u32 %v1876_v4, %v1748_v29  ;;  %v2131_v8 = vmul.u32 2221713035, %v2003_v30 }
 0x2ee   : > { %v2133_v10 = vmul.u32 2221713035, %v2005_v35  ;;  %v2130_v46 = vmul.u32 2221713035, %v2002_v24  ;;  %v1237_v28 = vadd.s32 %v1132_v49, %v7372_v17  ;;  %v1239_v27 = vadd.s32 %v1132_v49, %v7373_v59  ;;  %v6804_v24 = vpop.f32.mrb[60].mxu0 }
 0x2ef   : > { %v2132_v52 = vmul.u32 2221713035, %v2004_v23  ;;  %v2259_v29 = vshrl.u32 %v2131_v8, 16  ;;  %v1236_v51 = vadd.s32 %v1132_v49, %v7374_v34  ;;  %v1238_v9 = vadd.s32 %v1132_v49, %v7376_v43  ;;  %7515 = vst [vmem:[#allocation18_spill] sm:$0xff] %v6804_v24  ;;  %v6806_v23 = vpop.f32.mrb[60].mxu1  ;;  %v6808_v22 = vpop.f32.mrb[61].mxu0 }
 0x2f0   : > { %v2261_v18 = vshrl.u32 %v2133_v10, 16  ;;  %v2258_v40 = vshrl.u32 %v2130_v46, 16  ;;  %v1367_v1 = vxor.u32 %v7375_v48, %v1237_v28  ;;  %v1369_v13 = vxor.u32 %v7375_v48, %v1239_v27  ;;  %7516 = vst [vmem:[#allocation21_spill] sm:$0xff] %v6806_v23  ;;  %7517 = vst [vmem:[#allocation17_spill] sm:$0xff] %v6808_v22  ;;  %v6810_v63 = vpop.f32.mrb[61].mxu1 }
 0x2f1   : > { %v2260_v4 = vshrl.u32 %v2132_v52, 16  ;;  %v2387_v2 = vxor.u32 %v2259_v29, %v2131_v8  ;;  %v1366_v35 = vxor.u32 %v7375_v48, %v1236_v51  ;;  %v1368_v61 = vxor.u32 %v7375_v48, %v1238_v9  ;;  %7518 = vst [vmem:[#allocation28_spill] sm:$0xff] %v6810_v63 }
 0x2f2   : > { %v2389_v30 = vxor.u32 %v2261_v18, %v2133_v10  ;;  %v2386_v7 = vxor.u32 %v2258_v40, %v2130_v46  ;;  %v1495_v20 = vshrl.u32 %v1367_v1, 16  ;;  %v1497_v49 = vshrl.u32 %v1369_v13, 16 }
 0x2f3   : > { %v2388_v58 = vxor.u32 %v2260_v4, %v2132_v52  ;;  %v2515_v28 = vxor.u32 2654435769, %v2387_v2  ;;  %v1494_v8 = vshrl.u32 %v1366_v35, 16  ;;  %v1496_v10 = vshrl.u32 %v1368_v61, 16 }
 0x2f4   : > { %v2517_v27 = vxor.u32 2654435769, %v2389_v30  ;;  %v2514_v29 = vxor.u32 2654435769, %v2386_v7  ;;  %v1623_v51 = vxor.u32 %v1495_v20, %v1367_v1  ;;  %v1625_v9 = vxor.u32 %v1497_v49, %v1369_v13 }
 0x2f5   : > { %v2516_v18 = vxor.u32 2654435769, %v2388_v58  ;;  %v2643_v37 = vshrl.u32 %v2515_v28, 16  ;;  %v1622_v21 = vxor.u32 %v1494_v8, %v1366_v35  ;;  %v1624_v15 = vxor.u32 %v1496_v10, %v1368_v61 }
 0x2f6   : > { %v2645_v0 = vshrl.u32 %v2517_v27, 16  ;;  %v2642_v46 = vshrl.u32 %v2514_v29, 16  ;;  %v1751_v40 = vmul.u32 2146121005, %v1623_v51  ;;  %v1753_v4 = vmul.u32 2146121005, %v1625_v9 }
 0x2f7   : > { %v2644_v52 = vshrl.u32 %v2516_v18, 16  ;;  %v2771_v23 = vxor.u32 %v2643_v37, %v2515_v28  ;;  %v1750_v24 = vmul.u32 2146121005, %v1622_v21  ;;  %v1752_v63 = vmul.u32 2146121005, %v1624_v15 }
 0x2f8   : > { %v2773_v22 = vxor.u32 %v2645_v0, %v2517_v27  ;;  %v2770_v2 = vxor.u32 %v2642_v46, %v2514_v29  ;;  %v1879_v19 = vshrl.u32 %v1751_v40, 15  ;;  %v1881_v39 = vshrl.u32 %v1753_v4, 15 }
 0x2f9   : > { %v2772_v30 = vxor.u32 %v2644_v52, %v2516_v18  ;;  %v2899_v7 = vmul.u32 2146121005, %v2771_v23  ;;  %v1878_v20 = vshrl.u32 %v1750_v24, 15  ;;  %v1880_v1 = vshrl.u32 %v1752_v63, 15 }
 0x2fa   : > { %v2901_v58 = vmul.u32 2146121005, %v2773_v22  ;;  %v2898_v13 = vmul.u32 2146121005, %v2770_v2  ;;  %v2007_v35 = vxor.u32 %v1879_v19, %v1751_v40  ;;  %v2009_v61 = vxor.u32 %v1881_v39, %v1753_v4 }
 0x2fb   : > { %v2900_v49 = vmul.u32 2146121005, %v2772_v30  ;;  %v3027_v8 = vshrl.u32 %v2899_v7, 15  ;;  %v2006_v51 = vxor.u32 %v1878_v20, %v1750_v24  ;;  %v2008_v9 = vxor.u32 %v1880_v1, %v1752_v63 }
 0x2fc   : > { %v3029_v10 = vshrl.u32 %v2901_v58, 15  ;;  %v3026_v37 = vshrl.u32 %v2898_v13, 15  ;;  %v2135_v21 = vmul.u32 2221713035, %v2007_v35  ;;  %v2137_v15 = vmul.u32 2221713035, %v2009_v61 }
 0x2fd   : > { %v3028_v0 = vshrl.u32 %v2900_v49, 15  ;;  %v3155_v28 = vxor.u32 %v3027_v8, %v2899_v7  ;;  %v2134_v29 = vmul.u32 2221713035, %v2006_v51  ;;  %v2136_v18 = vmul.u32 2221713035, %v2008_v9 }
 0x2fe   : > { %v3157_v27 = vxor.u32 %v3029_v10, %v2901_v58  ;;  %v3154_v23 = vxor.u32 %v3026_v37, %v2898_v13  ;;  %v2263_v46 = vshrl.u32 %v2135_v21, 16  ;;  %v2265_v52 = vshrl.u32 %v2137_v15, 16 }
 0x2ff   : > { %v3156_v22 = vxor.u32 %v3028_v0, %v2900_v49  ;;  %v3283_v2 = vmul.u32 2221713035, %v3155_v28  ;;  %v2262_v19 = vshrl.u32 %v2134_v29, 16  ;;  %v2264_v39 = vshrl.u32 %v2136_v18, 16 }
 0x300   : > { %v3285_v30 = vmul.u32 2221713035, %v3157_v27  ;;  %v3282_v40 = vmul.u32 2221713035, %v3154_v23  ;;  %v2391_v24 = vxor.u32 %v2263_v46, %v2135_v21  ;;  %v2393_v63 = vxor.u32 %v2265_v52, %v2137_v15 }
 0x301   : > { %v3284_v4 = vmul.u32 2221713035, %v3156_v22  ;;  %v3411_v20 = vshrl.u32 %v3283_v2, 16  ;;  %v2390_v35 = vxor.u32 %v2262_v19, %v2134_v29  ;;  %v2392_v61 = vxor.u32 %v2264_v39, %v2136_v18  ;;  %v7532_v19 = vld [vmem:[#allocation15_spill] sm:$0xff] }
 0x302   : > { %v3413_v1 = vshrl.u32 %v3285_v30, 16  ;;  %v3410_v7 = vshrl.u32 %v3282_v40, 16  ;;  %v2519_v8 = vxor.u32 2654435769, %v2391_v24  ;;  %v2521_v10 = vxor.u32 2654435769, %v2393_v63 }
 0x303   : > { %v3412_v58 = vshrl.u32 %v3284_v4, 16  ;;  %v3539_v13 = vxor.u32 %v3411_v20, %v3283_v2  ;;  %v2518_v51 = vxor.u32 2654435769, %v2390_v35  ;;  %v2520_v9 = vxor.u32 2654435769, %v2392_v61 }
 0x304   : > { %v3541_v49 = vxor.u32 %v3413_v1, %v3285_v30  ;;  %v3538_v37 = vxor.u32 %v3410_v7, %v3282_v40  ;;  %v2647_v28 = vshrl.u32 %v2519_v8, 16  ;;  %v2649_v27 = vshrl.u32 %v2521_v10, 16 }
 0x305   : > { %v3540_v0 = vxor.u32 %v3412_v58, %v3284_v4  ;;  %vm3667_vm12 = vcmp.ge.u32.totalorder %v3539_v13, 429496730  ;;  %v2646_v21 = vshrl.u32 %v2518_v51, 16  ;;  %v2648_v15 = vshrl.u32 %v2520_v9, 16  ;;  %v7523_v58 = vld [vmem:[#allocation24_spill] sm:$0xff] }
 0x306   : > { %vm3669_vm13 = vcmp.ge.u32.totalorder %v3541_v49, 429496730  ;;  %v7519_v23 = vmax.f32 %v6645_v56, 0.0  ;;  %v7520_v29 = vmax.f32 %v6649_v45, 0.0  ;;  %vm3666_vm14 = vcmp.ge.u32.totalorder %v3538_v37, 429496730 }
 0x307   : > { %vm3668_vm15 = vcmp.ge.u32.totalorder %v3540_v0, 429496730  ;;  %v2775_v18 = vxor.u32 %v2647_v28, %v2519_v8  ;;  %v2777_v22 = vxor.u32 %v2649_v27, %v2521_v10  ;;  %v7521_v46 = vmax.f32 %v6607_v11, 0.0 }
 0x308   : > { %4550 = vmatprep.mubr.msk.f32.mxu1 %vm3667_vm12, %v7519_v23  ;;  %4614 = vmatprep.mubr.msk.f32.mxu0 %vm3669_vm13, %v7520_v29  ;;  %v7522_v52 = vmax.f32 %v6641_v62, 0.0  ;;  %v2774_v2 = vxor.u32 %v2646_v21, %v2518_v51  ;;  %v2776_v30 = vxor.u32 %v2648_v15, %v2520_v9  ;;  %v1096_v56 = vadd.s32 %v5406_v3, %v6790_v54 }
 0x309   : > { %4551 = vmatmul.mubr.msk.f32.gmra.mrb[110].mxu1 %vm3666_vm14, %v7521_v46  ;;  %v2903_v39 = vmul.u32 2146121005, %v2775_v18  ;;  %v2905_v45 = vmul.u32 2146121005, %v2777_v22  ;;  %v6828_v62 = vadd.f32 %v6662_v55, %v5555_v26  ;;  %v6832_v54 = vadd.f32 %v6664_v5, %v5532_v6 }
 0x30a   : > { %4615 = vmatmul.mubr.msk.f32.gmra.mrb[110].mxu0 %vm3668_vm15, %v7522_v52  ;;  %v2902_v24 = vmul.u32 2146121005, %v2774_v2  ;;  %v2904_v63 = vmul.u32 2146121005, %v2776_v30  ;;  %v6836_v8 = vadd.f32 %v7523_v58, %v5545_v16  ;;  %v1063_v10 = vadd.s32 208, %v5399_v60 }
 0x30b   : > { %v3031_v20 = vshrl.u32 %v2903_v39, 15  ;;  %v3033_v1 = vshrl.u32 %v2905_v45, 15  ;;  %v1133_v35 = vmul.u32 512, %v1096_v56  ;;  %v6847_v56 = vpop.f32.mrb[62].mxu0  ;;  %v7526_v11 = vmax.f32 %v6711_v14, 0.0 }
 0x30c   : > { %v3030_v61 = vshrl.u32 %v2902_v24, 15  ;;  %v3032_v7 = vshrl.u32 %v2904_v63, 15  ;;  %7524 = vst [vmem:[#allocation22_spill] sm:$0xff] %v6847_v56 }
 0x30d   : > { %v3159_v13 = vxor.u32 %v3031_v20, %v2903_v39  ;;  %v3161_v49 = vxor.u32 %v3033_v1, %v2905_v45  ;;  %v1241_v55 = vadd.s32 %v1133_v35, %v7372_v17  ;;  %v1243_v51 = vadd.s32 %v1133_v35, %v7373_v59  ;;  %v6849_v39 = vpop.f32.mrb[62].mxu1  ;;  %v6851_v1 = vpop.f32.mrb[63].mxu0 }
 0x30e   : > { %v3158_v9 = vxor.u32 %v3030_v61, %v2902_v24  ;;  %v3160_v37 = vxor.u32 %v3032_v7, %v2904_v63  ;;  %v1240_v0 = vadd.s32 %v1133_v35, %v7374_v34  ;;  %v1242_v5 = vadd.s32 %v1133_v35, %v7376_v43  ;;  %v6853_v35 = vpop.f32.mrb[63].mxu1 }
 0x30f   : > { %v3287_v28 = vmul.u32 2221713035, %v3159_v13  ;;  %v3289_v27 = vmul.u32 2221713035, %v3161_v49  ;;  %v1371_v21 = vxor.u32 %v7375_v48, %v1241_v55  ;;  %v1373_v15 = vxor.u32 %v7375_v48, %v1243_v51 }
 0x310   : > { %v3286_v23 = vmul.u32 2221713035, %v3158_v9  ;;  %v3288_v29 = vmul.u32 2221713035, %v3160_v37  ;;  %v1370_v18 = vxor.u32 %v7375_v48, %v1240_v0  ;;  %v1372_v22 = vxor.u32 %v7375_v48, %v1242_v5 }
 0x311   : > { %v3415_v46 = vshrl.u32 %v3287_v28, 16  ;;  %v3417_v52 = vshrl.u32 %v3289_v27, 16  ;;  %v1499_v2 = vshrl.u32 %v1371_v21, 16  ;;  %v1501_v30 = vshrl.u32 %v1373_v15, 16 }
 0x312   : > { %v3414_v45 = vshrl.u32 %v3286_v23, 16  ;;  %v3416_v24 = vshrl.u32 %v3288_v29, 16  ;;  %v1498_v63 = vshrl.u32 %v1370_v18, 16  ;;  %v1500_v20 = vshrl.u32 %v1372_v22, 16 }
 0x313   : > { %v3543_v61 = vxor.u32 %v3415_v46, %v3287_v28  ;;  %v3545_v7 = vxor.u32 %v3417_v52, %v3289_v27  ;;  %v1627_v58 = vxor.u32 %v1499_v2, %v1371_v21  ;;  %v1629_v13 = vxor.u32 %v1501_v30, %v1373_v15  ;;  %v7527_v27 = vld [vmem:[#allocation26_spill] sm:$0xff]  ;;  %v7528_v15 = vld [vmem:[#allocation25_spill] sm:$0xff] }
 0x314   : > { %v3542_v49 = vxor.u32 %v3414_v45, %v3286_v23  ;;  %v3544_v55 = vxor.u32 %v3416_v24, %v3288_v29  ;;  %v1626_v51 = vxor.u32 %v1498_v63, %v1370_v18  ;;  %v1628_v9 = vxor.u32 %v1500_v20, %v1372_v22 }
 0x315   : > { %vm3671_vm0 = vcmp.ge.u32.totalorder %v3543_v61, 429496730  ;;  %vm3673_vm1 = vcmp.ge.u32.totalorder %v3545_v7, 429496730  ;;  %v1755_v37 = vmul.u32 2146121005, %v1627_v58  ;;  %v1097_v0 = vadd.s32 %v5406_v3, %v1063_v10 }
 0x316   : > { %v7525_v5 = vmax.f32 %v6707_v32, 0.0  ;;  %4616 = vmatprep.mubr.msk.f32.mxu0 %vm3673_vm1, %v7526_v11  ;;  %vm3670_vm2 = vcmp.ge.u32.totalorder %v3542_v49, 429496730  ;;  %vm3672_vm3 = vcmp.ge.u32.totalorder %v3544_v55, 429496730  ;;  %v6862_v21 = vadd.f32 %v7527_v27, %v5500_v42 }
 0x317   : > { %v1757_v28 = vmul.u32 2146121005, %v1629_v13  ;;  %v7529_v23 = vmax.f32 %v7528_v15, 0.0  ;;  %v7530_v29 = vmax.f32 %v6703_v44, 0.0  ;;  %v1883_v10 = vshrl.u32 %v1755_v37, 15 }
 0x318   : > { %4552 = vmatprep.mubr.msk.f32.mxu1 %vm3671_vm0, %v7525_v5  ;;  %v1754_v18 = vmul.u32 2146121005, %v1626_v51  ;;  %v1756_v32 = vmul.u32 2146121005, %v1628_v9 }
 0x319   : > { %4553 = vmatmul.mubr.msk.f32.gmra.mrb[112].mxu1 %vm3670_vm2, %v7529_v23  ;;  %4617 = vmatmul.mubr.msk.f32.gmra.mrb[112].mxu0 %vm3672_vm3, %v7530_v29  ;;  %v1885_v14 = vshrl.u32 %v1757_v28, 15  ;;  %v1134_v52 = vmul.u32 512, %v1097_v0  ;;  %v2011_v2 = vxor.u32 %v1883_v10, %v1755_v37 }
 0x31a   : > { %v1882_v30 = vshrl.u32 %v1754_v18, 15  ;;  %v1884_v45 = vshrl.u32 %v1756_v32, 15 }
 0x31b   : > { %v2013_v63 = vxor.u32 %v1885_v14, %v1757_v28  ;;  %v1245_v44 = vadd.s32 %v1134_v52, %v7372_v17  ;;  %v1247_v20 = vadd.s32 %v1134_v52, %v7373_v59  ;;  %v1244_v61 = vadd.s32 %v1134_v52, %v7374_v34 }
 0x31c   : > { %v2139_v7 = vmul.u32 2221713035, %v2011_v2  ;;  %v2010_v58 = vxor.u32 %v1882_v30, %v1754_v18  ;;  %v2012_v13 = vxor.u32 %v1884_v45, %v1756_v32  ;;  %v1246_v49 = vadd.s32 %v1134_v52, %v7376_v43 }
 0x31d   : > { %v2141_v55 = vmul.u32 2221713035, %v2013_v63  ;;  %v1375_v51 = vxor.u32 %v7375_v48, %v1245_v44  ;;  %v1377_v9 = vxor.u32 %v7375_v48, %v1247_v20  ;;  %v1374_v37 = vxor.u32 %v7375_v48, %v1244_v61 }
 0x31e   : > { %v2267_v0 = vshrl.u32 %v2139_v7, 16  ;;  %v2138_v5 = vmul.u32 2221713035, %v2010_v58  ;;  %v2140_v28 = vmul.u32 2221713035, %v2012_v13  ;;  %v1376_v27 = vxor.u32 %v7375_v48, %v1246_v49  ;;  %v7531_v49 = vld [vmem:[#allocation27_spill] sm:$0xff] }
 0x31f   : > { %v2269_v15 = vshrl.u32 %v2141_v55, 16  ;;  %v1503_v23 = vshrl.u32 %v1375_v51, 16  ;;  %v1505_v29 = vshrl.u32 %v1377_v9, 16  ;;  %v1502_v10 = vshrl.u32 %v1374_v37, 16 }
 0x320   : > { %v2395_v18 = vxor.u32 %v2267_v0, %v2139_v7  ;;  %v2266_v32 = vshrl.u32 %v2138_v5, 16  ;;  %v2268_v14 = vshrl.u32 %v2140_v28, 16  ;;  %v1504_v52 = vshrl.u32 %v1376_v27, 16 }
 0x321   : > { %v2397_v2 = vxor.u32 %v2269_v15, %v2141_v55  ;;  %v1631_v30 = vxor.u32 %v1503_v23, %v1375_v51  ;;  %v1633_v45 = vxor.u32 %v1505_v29, %v1377_v9  ;;  %v1630_v63 = vxor.u32 %v1502_v10, %v1374_v37 }
 0x322   : > { %v2523_v44 = vxor.u32 2654435769, %v2395_v18  ;;  %v2394_v20 = vxor.u32 %v2266_v32, %v2138_v5  ;;  %v2396_v61 = vxor.u32 %v2268_v14, %v2140_v28  ;;  %v1632_v24 = vxor.u32 %v1504_v52, %v1376_v27 }
 0x323   : > { %v2525_v58 = vxor.u32 2654435769, %v2397_v2  ;;  %v1759_v13 = vmul.u32 2146121005, %v1631_v30  ;;  %v1761_v22 = vmul.u32 2146121005, %v1633_v45  ;;  %v6882_v46 = vadd.f32 %v7531_v49, %v5555_v26 }
 0x324   : > { %v2651_v11 = vshrl.u32 %v2523_v44, 16  ;;  %v2522_v7 = vxor.u32 2654435769, %v2394_v20  ;;  %v2524_v0 = vxor.u32 2654435769, %v2396_v61  ;;  %v6886_v55 = vadd.f32 %v7532_v19, %v5532_v6  ;;  %v7533_v61 = vld [vmem:[#allocation20_spill] sm:$0xff] }
 0x325   : > { %v2653_v51 = vshrl.u32 %v2525_v58, 16  ;;  %v1887_v9 = vshrl.u32 %v1759_v13, 15  ;;  %v1889_v37 = vshrl.u32 %v1761_v22, 15  ;;  %v1758_v5 = vmul.u32 2146121005, %v1630_v63 }
 0x326   : > { %v2779_v28 = vxor.u32 %v2651_v11, %v2523_v44  ;;  %v2650_v27 = vshrl.u32 %v2522_v7, 16  ;;  %v2652_v15 = vshrl.u32 %v2524_v0, 16  ;;  %v1760_v23 = vmul.u32 2146121005, %v1632_v24 }
 0x327   : > { %v2781_v29 = vxor.u32 %v2653_v51, %v2525_v58  ;;  %v2015_v10 = vxor.u32 %v1887_v9, %v1759_v13  ;;  %v2017_v18 = vxor.u32 %v1889_v37, %v1761_v22  ;;  %v1886_v32 = vshrl.u32 %v1758_v5, 15 }
 0x328   : > { %v2907_v14 = vmul.u32 2146121005, %v2779_v28  ;;  %v2778_v52 = vxor.u32 %v2650_v27, %v2522_v7  ;;  %v2780_v2 = vxor.u32 %v2652_v15, %v2524_v0  ;;  %v1888_v30 = vshrl.u32 %v1760_v23, 15 }
 0x329   : > { %v2909_v45 = vmul.u32 2146121005, %v2781_v29  ;;  %v2143_v20 = vmul.u32 2221713035, %v2015_v10  ;;  %v2014_v19 = vxor.u32 %v1886_v32, %v1758_v5  ;;  %v6890_v49 = vadd.f32 %v7533_v61, %v5545_v16 }
 0x32a   : > { %v3035_v63 = vshrl.u32 %v2907_v14, 15  ;;  %v2906_v11 = vmul.u32 2146121005, %v2778_v52  ;;  %v2908_v44 = vmul.u32 2146121005, %v2780_v2  ;;  %v2016_v4 = vxor.u32 %v1888_v30, %v1760_v23 }
 0x32b   : > { %v3037_v24 = vshrl.u32 %v2909_v45, 15  ;;  %v2271_v58 = vshrl.u32 %v2143_v20, 16  ;;  %v2145_v13 = vmul.u32 2221713035, %v2017_v18  ;;  %v2142_v22 = vmul.u32 2221713035, %v2014_v19 }
 0x32c   : > { %v3163_v51 = vxor.u32 %v3035_v63, %v2907_v14  ;;  %v3034_v9 = vshrl.u32 %v2906_v11, 15  ;;  %v3036_v7 = vshrl.u32 %v2908_v44, 15  ;;  %v2144_v0 = vmul.u32 2221713035, %v2016_v4 }
 0x32d   : > { %v3165_v37 = vxor.u32 %v3037_v24, %v2909_v45  ;;  %v2399_v28 = vxor.u32 %v2271_v58, %v2143_v20  ;;  %v2273_v27 = vshrl.u32 %v2145_v13, 16  ;;  %v2270_v5 = vshrl.u32 %v2142_v22, 16 }
 0x32e   : > { %v3291_v15 = vmul.u32 2221713035, %v3163_v51  ;;  %v3162_v29 = vxor.u32 %v3034_v9, %v2906_v11  ;;  %v3164_v10 = vxor.u32 %v3036_v7, %v2908_v44  ;;  %v2272_v32 = vshrl.u32 %v2144_v0, 16 }
 0x32f   : > { %v3293_v61 = vmul.u32 2221713035, %v3165_v37  ;;  %v2527_v52 = vxor.u32 2654435769, %v2399_v28  ;;  %v2401_v2 = vxor.u32 %v2273_v27, %v2145_v13  ;;  %v2398_v23 = vxor.u32 %v2270_v5, %v2142_v22 }
 0x330   : > { %v3419_v30 = vshrl.u32 %v3291_v15, 16  ;;  %v3290_v40 = vmul.u32 2221713035, %v3162_v29  ;;  %v3292_v18 = vmul.u32 2221713035, %v3164_v10  ;;  %v2400_v19 = vxor.u32 %v2272_v32, %v2144_v0 }
 0x331   : > { %v3421_v14 = vshrl.u32 %v3293_v61, 16  ;;  %v2655_v63 = vshrl.u32 %v2527_v52, 16  ;;  %v2529_v56 = vxor.u32 2654435769, %v2401_v2  ;;  %v2526_v4 = vxor.u32 2654435769, %v2398_v23 }
 0x332   : > { %v3547_v45 = vxor.u32 %v3419_v30, %v3291_v15  ;;  %v3418_v20 = vshrl.u32 %v3290_v40, 16  ;;  %v3420_v24 = vshrl.u32 %v3292_v18, 16  ;;  %v2528_v58 = vxor.u32 2654435769, %v2400_v19 }
 0x333   : > { %v3549_v51 = vxor.u32 %v3421_v14, %v3293_v61  ;;  %v2783_v11 = vxor.u32 %v2655_v63, %v2527_v52  ;;  %v2657_v44 = vshrl.u32 %v2529_v56, 16  ;;  %v2654_v9 = vshrl.u32 %v2526_v4, 16 }
 0x334   : > { %vm3675_vm4 = vcmp.ge.u32.totalorder %v3547_v45, 429496730  ;;  %v3546_v7 = vxor.u32 %v3418_v20, %v3290_v40  ;;  %v3548_v13 = vxor.u32 %v3420_v24, %v3292_v18  ;;  %v2656_v22 = vshrl.u32 %v2528_v58, 16 }
 0x335   : > { %v7534_v37 = vmax.f32 %v6736_v50, 0.0  ;;  %vm3677_vm5 = vcmp.ge.u32.totalorder %v3549_v51, 429496730  ;;  %v2911_v0 = vmul.u32 2146121005, %v2783_v11  ;;  %v2785_v28 = vxor.u32 %v2657_v44, %v2529_v56  ;;  %v6920_v51 = vpop.f32.mrb[64].mxu0 }
 0x336   : > { %v2782_v27 = vxor.u32 %v2654_v9, %v2526_v4  ;;  %v7535_v5 = vmax.f32 %v6740_v57, 0.0  ;;  %vm3674_vm6 = vcmp.ge.u32.totalorder %v3546_v7, 429496730  ;;  %vm3676_vm7 = vcmp.ge.u32.totalorder %v3548_v13, 429496730  ;;  %v4194_v13 = vpop.f32.mrb[65].mxu0 }
 0x337   : > { %4554 = vmatprep.mubr.msk.f32.mxu1 %vm3675_vm4, %v7534_v37  ;;  %v2784_v15 = vxor.u32 %v2656_v22, %v2528_v58  ;;  %v1064_v29 = vadd.s32 216, %v5399_v60  ;;  %v7536_v10 = vmax.f32 %v6728_v36, 0.0  ;;  %v7537_v40 = vmax.f32 %v6732_v31, 0.0  ;;  %v6918_v58 = vpop.f32.mrb[64].mxu1 }
 0x338   : > { %4618 = vmatprep.mubr.msk.f32.mxu0 %vm3677_vm5, %v7535_v5  ;;  %v3039_v50 = vshrl.u32 %v2911_v0, 15  ;;  %v2913_v32 = vmul.u32 2146121005, %v2785_v28  ;;  %v2910_v61 = vmul.u32 2146121005, %v2782_v27  ;;  %v6903_v56 = vadd.f32 %v6750_v41, %v5500_v42  ;;  %v3969_v7 = vpop.f32.mrb[65].mxu1 }
 0x339   : > { %4555 = vmatmul.mubr.msk.f32.gmra.mrb[114].mxu1 %vm3674_vm6, %v7536_v10  ;;  %4619 = vmatmul.mubr.msk.f32.gmra.mrb[114].mxu0 %vm3676_vm7, %v7537_v40  ;;  %v2912_v57 = vmul.u32 2146121005, %v2784_v15  ;;  %v1098_v23 = vadd.s32 %v5406_v3, %v1064_v29  ;;  %v6911_v63 = vadd.f32 %v6752_v38, %v5555_v26  ;;  %v6915_v41 = vadd.f32 %v6754_v12, %v5532_v6  ;;  %v6926_v28 = vpop.f32.mrb[66].mxu1  ;;  %v6931_v10 = vpop.f32.mrb[66].mxu0 }
 0x33a   : > { %v3167_v30 = vxor.u32 %v3039_v50, %v2911_v0  ;;  %v3041_v36 = vshrl.u32 %v2913_v32, 15  ;;  %v3038_v18 = vshrl.u32 %v2910_v61, 15  ;;  %v3974_v40 = vpop.f32.mrb[67].mxu1  ;;  %v7540_v7 = vmax.f32 %v6783_v53, 0.0  ;;  %v7544_v53 = vld [vmem:[#allocation14_spill] sm:$0xff] }
 0x33b   : > { %v3040_v19 = vshrl.u32 %v2912_v57, 15  ;;  %v1135_v14 = vmul.u32 512, %v1098_v23  ;;  %v4199_v23 = vpop.f32.mrb[67].mxu0 }
 0x33c   : > { %v3295_v4 = vmul.u32 2221713035, %v3167_v30  ;;  %v3169_v45 = vxor.u32 %v3041_v36, %v2913_v32  ;;  %v3166_v20 = vxor.u32 %v3038_v18, %v2910_v61  ;;  %v6934_v30 = vpop.f32.mrb[68].mxu1 }
 0x33d   : > { %v3168_v11 = vxor.u32 %v3040_v19, %v2912_v57  ;;  %v1249_v44 = vadd.s32 %v1135_v14, %v7372_v17  ;;  %v1251_v9 = vadd.s32 %v1135_v14, %v7373_v59  ;;  %v1248_v38 = vadd.s32 %v1135_v14, %v7374_v34 }
 0x33e   : > { %v3423_v12 = vshrl.u32 %v3295_v4, 16  ;;  %v3297_v22 = vmul.u32 2221713035, %v3169_v45  ;;  %v3294_v37 = vmul.u32 2221713035, %v3166_v20  ;;  %v1250_v0 = vadd.s32 %v1135_v14, %v7376_v43  ;;  %v6936_v45 = vpop.f32.mrb[68].mxu0 }
 0x33f   : > { %v3296_v27 = vmul.u32 2221713035, %v3168_v11  ;;  %v1379_v5 = vxor.u32 %v7375_v48, %v1249_v44  ;;  %v1381_v15 = vxor.u32 %v7375_v48, %v1251_v9  ;;  %v1378_v29 = vxor.u32 %v7375_v48, %v1248_v38  ;;  %7538 = vst [vmem:[#allocation23_spill] sm:$0xff] %v6936_v45  ;;  %v3979_v20 = vpop.f32.mrb[69].mxu1  ;;  %v4204_v38 = vpop.f32.mrb[69].mxu0 }
 0x340   : > { %v3551_v50 = vxor.u32 %v3423_v12, %v3295_v4  ;;  %v3425_v32 = vshrl.u32 %v3297_v22, 16  ;;  %v3422_v61 = vshrl.u32 %v3294_v37, 16  ;;  %v1380_v57 = vxor.u32 %v7375_v48, %v1250_v0  ;;  %v6938_v4 = vpop.f32.mrb[70].mxu1  ;;  %v6942_v23 = vpop.f32.mrb[70].mxu0 }
 0x341   : > { %v3424_v36 = vshrl.u32 %v3296_v27, 16  ;;  %v1507_v18 = vshrl.u32 %v1379_v5, 16  ;;  %v1509_v19 = vshrl.u32 %v1381_v15, 16  ;;  %v1506_v14 = vshrl.u32 %v1378_v29, 16  ;;  %7539 = vst [vmem:[#allocation24_spill] sm:$0xff] %v6938_v4  ;;  %7541 = vst [vmem:[#allocation26_spill] sm:$0xff] %v6942_v23 }
 0x342   : > { %vm3679_vm8 = vcmp.ge.u32.totalorder %v3551_v50, 429496730  ;;  %v3553_v11 = vxor.u32 %v3425_v32, %v3297_v22  ;;  %v3550_v44 = vxor.u32 %v3422_v61, %v3294_v37  ;;  %v1508_v9 = vshrl.u32 %v1380_v57, 16  ;;  %v3984_v24 = vpop.f32.mrb[71].mxu1  ;;  %v7542_v22 = vld [vmem:[#allocation16_spill] sm:$0xff]  ;;  %v4209_v50 = vpop.f32.mrb[71].mxu0 }
 0x343   : > { %4556 = vmatprep.mubr.msk.f32.mxu1 %vm3679_vm8, %v7540_v7  ;;  %v3552_v13 = vxor.u32 %v3424_v36, %v3296_v27  ;;  %v1635_v12 = vxor.u32 %v1507_v18, %v1379_v5  ;;  %v1637_v0 = vxor.u32 %v1509_v19, %v1381_v15  ;;  %v1634_v40 = vxor.u32 %v1506_v14, %v1378_v29  ;;  %v7546_v15 = vld [vmem:[#allocation18_spill] sm:$0xff]  ;;  %v6963_v14 = vpop.f32.mrb[72].mxu1  ;;  %v6967_v7 = vpop.f32.mrb[72].mxu0 }
 0x344   : > { %vm3681_vm9 = vcmp.ge.u32.totalorder %v3553_v11, 429496730  ;;  %vm3678_vm10 = vcmp.ge.u32.totalorder %v3550_v44, 429496730  ;;  %v1636_v20 = vxor.u32 %v1508_v9, %v1380_v57  ;;  %v6946_v37 = vadd.f32 %v7542_v22, %v5545_v16  ;;  %7550 = vst [vmem:[#allocation27_spill] sm:$0xff] %v6963_v14  ;;  %7551 = vst [vmem:[#allocation15_spill] sm:$0xff] %v6967_v7 }
 0x345   : > { %v7543_v32 = vmax.f32 %v6787_v47, 0.0  ;;  %v7545_v61 = vmax.f32 %v7544_v53, 0.0  ;;  %vm3680_vm11 = vcmp.ge.u32.totalorder %v3552_v13, 429496730  ;;  %v1763_v27 = vmul.u32 2146121005, %v1635_v12 }
 0x346   : > { %v1765_v5 = vmul.u32 2146121005, %v1637_v0  ;;  %v6954_v24 = vadd.f32 %v7546_v15, %v5500_v42  ;;  %v7547_v29 = vmax.f32 %v6778_v33, 0.0  ;;  %v1762_v57 = vmul.u32 2146121005, %v1634_v40  ;;  %v7548_v47 = vld [vmem:[#allocation21_spill] sm:$0xff] }
 0x347   : > { %4620 = vmatprep.mubr.msk.f32.mxu0 %vm3681_vm9, %v7543_v32  ;;  %4557 = vmatmul.mubr.msk.f32.gmra.mrb[116].mxu1 %vm3678_vm10, %v7545_v61  ;;  %v1764_v36 = vmul.u32 2146121005, %v1636_v20  ;;  %v1065_v18 = vadd.s32 224, %v5399_v60  ;;  %v6961_v19 = vadd.f32 %v7548_v47, %v5555_v26  ;;  %v1891_v11 = vshrl.u32 %v1763_v27, 15  ;;  %v3989_v33 = vpop.f32.mrb[73].mxu1  ;;  %v4214_v20 = vpop.f32.mrb[73].mxu0 }
 0x348   : > { %4621 = vmatmul.mubr.msk.f32.gmra.mrb[116].mxu0 %vm3680_vm11, %v7547_v29  ;;  %v1893_v44 = vshrl.u32 %v1765_v5, 15  ;;  %v1890_v13 = vshrl.u32 %v1762_v57, 15  ;;  %v6971_v22 = vpop.f32.mrb[74].mxu1  ;;  %v7553_v61 = vld [vmem:[#allocation17_spill] sm:$0xff]  ;;  %v6978_v29 = vpop.f32.mrb[74].mxu0 }
 0x349   : > { %7549 = vst [vmem:[#allocation25_spill] sm:$0xff] %v6961_v19  ;;  %v1892_v12 = vshrl.u32 %v1764_v36, 15  ;;  %v1099_v40 = vadd.s32 %v5406_v3, %v1065_v18  ;;  %7552 = vst [vmem:[#allocation20_spill] sm:$0xff] %v6971_v22  ;;  %v2019_v50 = vxor.u32 %v1891_v11, %v1763_v27  ;;  %v6976_v15 = vadd.f32 %v7553_v61, %v5532_v6  ;;  %v3994_v47 = vpop.f32.mrb[75].mxu1  ;;  %v4219_v18 = vpop.f32.mrb[75].mxu0 }
 0x34a   : > { %v2021_v32 = vxor.u32 %v1893_v44, %v1765_v5  ;;  %7554 = vst [vmem:[#allocation16_spill] sm:$0xff] %v6978_v29  ;;  %v2018_v33 = vxor.u32 %v1890_v13, %v1762_v57  ;;  %v6981_v20 = vpop.f32.mrb[76].mxu1  ;;  %v7556_v5 = vld [vmem:[#allocation28_spill] sm:$0xff]  ;;  %v6988_v44 = vadd.s32 232, %v5399_v60  ;;  %v6990_v61 = vpop.f32.mrb[76].mxu0 }
 0x34b   : > { %v2020_v9 = vxor.u32 %v1892_v12, %v1764_v36  ;;  %v1136_v38 = vmul.u32 512, %v1099_v40  ;;  %7555 = vst [vmem:[#allocation14_spill] sm:$0xff] %v6981_v20  ;;  %v2147_v52 = vmul.u32 2221713035, %v2019_v50  ;;  %v6985_v11 = vadd.f32 %v7556_v5, %v5545_v16  ;;  %7557 = vst [vmem:[#allocation18_spill] sm:$0xff] %v6990_v61  ;;  %v3999_v12 = vpop.f32.mrb[77].mxu1 }
 0x34c   : > { %v2149_v27 = vmul.u32 2221713035, %v2021_v32  ;;  %v2146_v47 = vmul.u32 2221713035, %v2018_v33  ;;  %v4224_v40 = vpop.f32.mrb[77].mxu0  ;;  %v6996_v0 = vpop.f32.mrb[78].mxu1 }
 0x34d   : > { %v2148_v57 = vmul.u32 2221713035, %v2020_v9  ;;  %v1253_v36 = vadd.s32 %v1136_v38, %v7372_v17  ;;  %v1255_v13 = vadd.s32 %v1136_v38, %v7373_v59  ;;  %v2275_v18 = vshrl.u32 %v2147_v52, 16  ;;  %7558 = vst [vmem:[#allocation21_spill] sm:$0xff] %v6996_v0  ;;  %v6998_v53 = vpop.f32.mrb[78].mxu0  ;;  %v4004_v42 = vpop.f32.mrb[79].mxu1 }
 0x34e   : > { %v2277_v50 = vshrl.u32 %v2149_v27, 16  ;;  %v1252_v32 = vadd.s32 %v1136_v38, %v7374_v34  ;;  %v1254_v5 = vadd.s32 %v1136_v38, %v7376_v43  ;;  %7559 = vst [vmem:[#allocation17_spill] sm:$0xff] %v6998_v53  ;;  %v2274_v31 = vshrl.u32 %v2146_v47, 16  ;;  %v4229_v61 = vpop.f32.mrb[79].mxu0  ;;  %v7004_v7 = vpop.f32.mrb[80].mxu1 }
 0x34f   : > { %v2276_v2 = vshrl.u32 %v2148_v57, 16  ;;  %v1383_v9 = vxor.u32 %v7375_v48, %v1253_v36  ;;  %v1385_v33 = vxor.u32 %v7375_v48, %v1255_v13  ;;  %v2403_v12 = vxor.u32 %v2275_v18, %v2147_v52  ;;  %7560 = vst [vmem:[#allocation28_spill] sm:$0xff] %v7004_v7  ;;  %v7006_v38 = vpop.f32.mrb[80].mxu0  ;;  %v4009_v14 = vpop.f32.mrb[81].mxu1 }
 0x350   : > { %v2405_v40 = vxor.u32 %v2277_v50, %v2149_v27  ;;  %v1382_v29 = vxor.u32 %v7375_v48, %v1252_v32  ;;  %v1384_v20 = vxor.u32 %v7375_v48, %v1254_v5  ;;  %7561 = vst [vmem:[#allocation29_spill] sm:$0xff] %v7006_v38  ;;  %v2402_v0 = vxor.u32 %v2274_v31, %v2146_v47  ;;  %v4234_v36 = vpop.f32.mrb[81].mxu0  ;;  %v7008_v32 = vpop.f32.mrb[82].mxu1 }
 0x351   : > { %v2404_v53 = vxor.u32 %v2276_v2, %v2148_v57  ;;  %v1511_v23 = vshrl.u32 %v1383_v9, 16  ;;  %v1513_v22 = vshrl.u32 %v1385_v33, 16  ;;  %v2531_v4 = vxor.u32 2654435769, %v2403_v12  ;;  %7562 = vst [vmem:[#allocation30_spill] sm:$0xff] %v7008_v32  ;;  %v7010_v5 = vpop.f32.mrb[82].mxu0 }
 0x352   : > { %v2533_v13 = vxor.u32 2654435769, %v2405_v40  ;;  %v1510_v42 = vshrl.u32 %v1382_v29, 16  ;;  %v1512_v61 = vshrl.u32 %v1384_v20, 16  ;;  %v2530_v52 = vxor.u32 2654435769, %v2402_v0 }
 0x353   : > { %v2532_v27 = vxor.u32 2654435769, %v2404_v53  ;;  %v1639_v18 = vxor.u32 %v1511_v23, %v1383_v9  ;;  %v1641_v50 = vxor.u32 %v1513_v22, %v1385_v33  ;;  %7563 = vst [vmem:[#allocation31_spill] sm:$0xff] %v7010_v5  ;;  %v2659_v7 = vshrl.u32 %v2531_v4, 16  ;;  %v4014_v47 = vpop.f32.mrb[83].mxu1  ;;  %v4239_v57 = vpop.f32.mrb[83].mxu0 }
 0x354   : > { %v2661_v38 = vshrl.u32 %v2533_v13, 16  ;;  %v1638_v31 = vxor.u32 %v1510_v42, %v1382_v29  ;;  %v1640_v2 = vxor.u32 %v1512_v61, %v1384_v20  ;;  %v2658_v14 = vshrl.u32 %v2530_v52, 16  ;;  %v7012_v23 = vpop.f32.mrb[84].mxu1  ;;  %v7014_v22 = vpop.f32.mrb[84].mxu0 }
 0x355   : > { %v2660_v36 = vshrl.u32 %v2532_v27, 16  ;;  %v1767_v12 = vmul.u32 2146121005, %v1639_v18  ;;  %v1769_v40 = vmul.u32 2146121005, %v1641_v50  ;;  %v2787_v45 = vxor.u32 %v2659_v7, %v2531_v4  ;;  %7564 = vst [vmem:[#allocation32_spill] sm:$0xff] %v7012_v23 }
 0x356   : > { %v2789_v19 = vxor.u32 %v2661_v38, %v2533_v13  ;;  %v1766_v0 = vmul.u32 2146121005, %v1638_v31  ;;  %v1768_v53 = vmul.u32 2146121005, %v1640_v2  ;;  %7565 = vst [vmem:[#allocation33_spill] sm:$0xff] %v7014_v22  ;;  %v2786_v9 = vxor.u32 %v2658_v14, %v2530_v52  ;;  %v4019_v29 = vpop.f32.mrb[85].mxu1 }
 0x357   : > { %v2788_v33 = vxor.u32 %v2660_v36, %v2532_v27  ;;  %v1895_v5 = vshrl.u32 %v1767_v12, 15  ;;  %v1897_v32 = vshrl.u32 %v1769_v40, 15  ;;  %v4244_v20 = vpop.f32.mrb[85].mxu0  ;;  %v2915_v42 = vmul.u32 2146121005, %v2787_v45  ;;  %v7016_v38 = vpop.f32.mrb[86].mxu1 }
 0x358   : > { %v2917_v61 = vmul.u32 2146121005, %v2789_v19  ;;  %v1894_v47 = vshrl.u32 %v1766_v0, 15  ;;  %v1896_v57 = vshrl.u32 %v1768_v53, 15  ;;  %v2914_v18 = vmul.u32 2146121005, %v2786_v9 }
 0x359   : > { %v2916_v50 = vmul.u32 2146121005, %v2788_v33  ;;  %v2023_v4 = vxor.u32 %v1895_v5, %v1767_v12  ;;  %v2025_v7 = vxor.u32 %v1897_v32, %v1769_v40  ;;  %7566 = vst [vmem:[#allocation34_spill] sm:$0xff] %v7016_v38  ;;  %v7018_v13 = vpop.f32.mrb[86].mxu0  ;;  %v3043_v31 = vshrl.u32 %v2915_v42, 15  ;;  %v4024_v14 = vpop.f32.mrb[87].mxu1 }
 0x35a   : > { %7567 = vst [vmem:[#allocation35_spill] sm:$0xff] %v7018_v13  ;;  %v3045_v2 = vshrl.u32 %v2917_v61, 15  ;;  %v2022_v52 = vxor.u32 %v1894_v47, %v1766_v0  ;;  %v2024_v27 = vxor.u32 %v1896_v57, %v1768_v53  ;;  %v4249_v36 = vpop.f32.mrb[87].mxu0  ;;  %v3042_v29 = vshrl.u32 %v2914_v18, 15  ;;  %v7020_v5 = vpop.f32.mrb[88].mxu1 }
 0x35b   : > { %v3044_v20 = vshrl.u32 %v2916_v50, 15  ;;  %v2151_v45 = vmul.u32 2221713035, %v2023_v4  ;;  %v2153_v19 = vmul.u32 2221713035, %v2025_v7  ;;  %v3171_v22 = vxor.u32 %v3043_v31, %v2915_v42  ;;  %7568 = vst [vmem:[#allocation36_spill] sm:$0xff] %v7020_v5 }
 0x35c   : > { %v3173_v23 = vxor.u32 %v3045_v2, %v2917_v61  ;;  %v2150_v9 = vmul.u32 2221713035, %v2022_v52  ;;  %v2152_v33 = vmul.u32 2221713035, %v2024_v27  ;;  %v7022_v32 = vpop.f32.mrb[88].mxu0  ;;  %v3170_v12 = vxor.u32 %v3042_v29, %v2914_v18  ;;  %v4029_v0 = vpop.f32.mrb[89].mxu1 }
 0x35d   : > { %7569 = vst [vmem:[#allocation37_spill] sm:$0xff] %v7022_v32  ;;  %v3172_v40 = vxor.u32 %v3044_v20, %v2916_v50  ;;  %v2279_v13 = vshrl.u32 %v2151_v45, 16  ;;  %v2281_v38 = vshrl.u32 %v2153_v19, 16  ;;  %v4254_v53 = vpop.f32.mrb[89].mxu0  ;;  %v3299_v47 = vmul.u32 2221713035, %v3171_v22 }
 0x35e   : > { %v3301_v57 = vmul.u32 2221713035, %v3173_v23  ;;  %v2278_v14 = vshrl.u32 %v2150_v9, 16  ;;  %v2280_v36 = vshrl.u32 %v2152_v33, 16  ;;  %v3298_v4 = vmul.u32 2221713035, %v3170_v12 }
 0x35f   : > { %v3300_v7 = vmul.u32 2221713035, %v3172_v40  ;;  %v2407_v42 = vxor.u32 %v2279_v13, %v2151_v45  ;;  %v2409_v61 = vxor.u32 %v2281_v38, %v2153_v19  ;;  %v7024_v31 = vpop.f32.mrb[90].mxu1  ;;  %v7026_v2 = vpop.f32.mrb[90].mxu0  ;;  %v3427_v52 = vshrl.u32 %v3299_v47, 16 }
 0x360   : > { %7570 = vst [vmem:[#allocation38_spill] sm:$0xff] %v7024_v31  ;;  %7571 = vst [vmem:[#allocation39_spill] sm:$0xff] %v7026_v2  ;;  %v3429_v27 = vshrl.u32 %v3301_v57, 16  ;;  %v2406_v18 = vxor.u32 %v2278_v14, %v2150_v9  ;;  %v2408_v50 = vxor.u32 %v2280_v36, %v2152_v33  ;;  %v4034_v29 = vpop.f32.mrb[91].mxu1  ;;  %v4259_v20 = vpop.f32.mrb[91].mxu0  ;;  %v3426_v0 = vshrl.u32 %v3298_v4, 16 }
 0x361   : > { %v3428_v53 = vshrl.u32 %v3300_v7, 16  ;;  %v2535_v22 = vxor.u32 2654435769, %v2407_v42  ;;  %v2537_v23 = vxor.u32 2654435769, %v2409_v61  ;;  %v3555_v32 = vxor.u32 %v3427_v52, %v3299_v47  ;;  %v7028_v13 = vpop.f32.mrb[92].mxu1 }
 0x362   : > { %v3557_v5 = vxor.u32 %v3429_v27, %v3301_v57  ;;  %v2534_v12 = vxor.u32 2654435769, %v2406_v18  ;;  %v2536_v40 = vxor.u32 2654435769, %v2408_v50  ;;  %v7030_v38 = vpop.f32.mrb[92].mxu0  ;;  %v3554_v45 = vxor.u32 %v3426_v0, %v3298_v4  ;;  %v4039_v9 = vpop.f32.mrb[93].mxu1 }
 0x363   : > { %v3556_v19 = vxor.u32 %v3428_v53, %v3300_v7  ;;  %v2663_v2 = vshrl.u32 %v2535_v22, 16  ;;  %v2665_v31 = vshrl.u32 %v2537_v23, 16  ;;  %v4264_v33 = vpop.f32.mrb[93].mxu0  ;;  %vm3683_vm12 = vcmp.ge.u32.totalorder %v3555_v32, 429496730  ;;  %v7036_v4 = vpop.f32.mrb[94].mxu1 }
 0x364   : > { %vm3685_vm13 = vcmp.ge.u32.totalorder %v3557_v5, 429496730  ;;  %v2662_v14 = vshrl.u32 %v2534_v12, 16  ;;  %v2664_v36 = vshrl.u32 %v2536_v40, 16  ;;  %v7572_v42 = vmax.f32 %v6832_v54, 0.0  ;;  %v7038_v7 = vpop.f32.mrb[94].mxu0 }
 0x365   : > { %v7573_v47 = vmax.f32 %v6836_v8, 0.0  ;;  %vm3682_vm14 = vcmp.ge.u32.totalorder %v3554_v45, 429496730  ;;  %vm3684_vm15 = vcmp.ge.u32.totalorder %v3556_v19, 429496730  ;;  %v2791_v57 = vxor.u32 %v2663_v2, %v2535_v22  ;;  %v4044_v18 = vpop.f32.mrb[95].mxu1 }
 0x366   : > { %4558 = vmatprep.mubr.msk.f32.mxu1 %vm3683_vm12, %v7572_v42  ;;  %v2793_v61 = vxor.u32 %v2665_v31, %v2537_v23  ;;  %v7574_v52 = vmax.f32 %v6794_v25, 0.0  ;;  %v7575_v5 = vmax.f32 %v6828_v62, 0.0  ;;  %v2790_v32 = vxor.u32 %v2662_v14, %v2534_v12  ;;  %v4269_v2 = vpop.f32.mrb[95].mxu0  ;;  %v7047_v29 = vpop.f32.mrb[96].mxu1 }
 0x367   : > { %4622 = vmatprep.mubr.msk.f32.mxu0 %vm3685_vm13, %v7573_v47  ;;  %v2792_v54 = vxor.u32 %v2664_v36, %v2536_v40  ;;  %v1100_v8 = vadd.s32 %v5406_v3, %v6988_v44  ;;  %v2919_v31 = vmul.u32 2146121005, %v2791_v57  ;;  %v7049_v20 = vpop.f32.mrb[96].mxu0  ;;  %v7054_v53 = vadd.f32 %v6849_v39, %v5555_v26  ;;  %v4049_v22 = vpop.f32.mrb[97].mxu1 }
 0x368   : > { %4559 = vmatmul.mubr.msk.f32.gmra.mrb[118].mxu1 %vm3682_vm14, %v7574_v52  ;;  %4623 = vmatmul.mubr.msk.f32.gmra.mrb[118].mxu0 %vm3684_vm15, %v7575_v5  ;;  %v2921_v50 = vmul.u32 2146121005, %v2793_v61  ;;  %v2918_v25 = vmul.u32 2146121005, %v2790_v32  ;;  %v7058_v40 = vadd.f32 %v6851_v1, %v5532_v6  ;;  %v4274_v45 = vpop.f32.mrb[97].mxu0  ;;  %v7060_v19 = vpop.f32.mrb[98].mxu1  ;;  %v7064_v14 = vadd.f32 %v6853_v35, %v5545_v16 }
 0x369   : > { %v2920_v0 = vmul.u32 2146121005, %v2792_v54  ;;  %7576 = vst [vmem:[#allocation40_spill] sm:$0xff] %v7054_v53  ;;  %v3047_v23 = vshrl.u32 %v2919_v31, 15  ;;  %v1137_v44 = vmul.u32 512, %v1100_v8  ;;  %v1067_v26 = vadd.s32 240, %v5399_v60 }
 0x36a   : > { %v3049_v12 = vshrl.u32 %v2921_v50, 15  ;;  %v3046_v9 = vshrl.u32 %v2918_v25, 15  ;;  %v7067_v39 = vpop.f32.mrb[98].mxu0  ;;  %v4054_v36 = vpop.f32.mrb[99].mxu1  ;;  %v7577_v53 = vmax.f32 %v6886_v55, 0.0 }
 0x36b   : > { %v3048_v33 = vshrl.u32 %v2920_v0, 15  ;;  %v3175_v42 = vxor.u32 %v3047_v23, %v2919_v31  ;;  %v1257_v57 = vadd.s32 %v1137_v44, %v7372_v17  ;;  %v1259_v6 = vadd.s32 %v1137_v44, %v7373_v59  ;;  %v4279_v1 = vpop.f32.mrb[99].mxu0  ;;  %v7071_v61 = vpop.f32.mrb[100].mxu1 }
 0x36c   : > { %v3177_v47 = vxor.u32 %v3049_v12, %v2921_v50  ;;  %v3174_v52 = vxor.u32 %v3046_v9, %v2918_v25  ;;  %v1256_v32 = vadd.s32 %v1137_v44, %v7374_v34  ;;  %v1258_v16 = vadd.s32 %v1137_v44, %v7376_v43  ;;  %v7075_v35 = vpop.f32.mrb[100].mxu0  ;;  %v4059_v54 = vpop.f32.mrb[101].mxu1 }
 0x36d   : > { %v3176_v5 = vxor.u32 %v3048_v33, %v2920_v0  ;;  %v3303_v8 = vmul.u32 2221713035, %v3175_v42  ;;  %v1387_v2 = vxor.u32 %v7375_v48, %v1257_v57  ;;  %v1389_v31 = vxor.u32 %v7375_v48, %v1259_v6  ;;  %v4284_v50 = vpop.f32.mrb[101].mxu0  ;;  %v7084_v6 = vld [vmem:[%s7314_s5] ss:$0 sm:$0xff] }
 0x36e   : > { %v3305_v18 = vmul.u32 2221713035, %v3177_v47  ;;  %v3302_v22 = vmul.u32 2221713035, %v3174_v52  ;;  %v1386_v12 = vxor.u32 %v7375_v48, %v1256_v32  ;;  %v1388_v25 = vxor.u32 %v7375_v48, %v1258_v16 }
 0x36f   : > { %v3304_v23 = vmul.u32 2221713035, %v3176_v5  ;;  %v3431_v0 = vshrl.u32 %v3303_v8, 16  ;;  %v1515_v9 = vshrl.u32 %v1387_v2, 16  ;;  %v1517_v44 = vshrl.u32 %v1389_v31, 16 }
 0x370   : > { %v3433_v45 = vshrl.u32 %v3305_v18, 16  ;;  %v3430_v33 = vshrl.u32 %v3302_v22, 16  ;;  %v1514_v1 = vshrl.u32 %v1386_v12, 16  ;;  %v1516_v42 = vshrl.u32 %v1388_v25, 16 }
 0x371   : > { %v3432_v36 = vshrl.u32 %v3304_v23, 16  ;;  %v3559_v47 = vxor.u32 %v3431_v0, %v3303_v8  ;;  %v1643_v57 = vxor.u32 %v1515_v9, %v1387_v2  ;;  %v1645_v62 = vxor.u32 %v1517_v44, %v1389_v31 }
 0x372   : > { %v3561_v54 = vxor.u32 %v3433_v45, %v3305_v18  ;;  %v3558_v52 = vxor.u32 %v3430_v33, %v3302_v22  ;;  %v1642_v32 = vxor.u32 %v1514_v1, %v1386_v12  ;;  %v1644_v16 = vxor.u32 %v1516_v42, %v1388_v25 }
 0x373   : > { %v3560_v5 = vxor.u32 %v3432_v36, %v3304_v23  ;;  %vm3687_vm0 = vcmp.ge.u32.totalorder %v3559_v47, 429496730  ;;  %v1771_v50 = vmul.u32 2146121005, %v1643_v57  ;;  %v1101_v27 = vadd.s32 %v5406_v3, %v1067_v26 }
 0x374   : > { %vm3689_vm1 = vcmp.ge.u32.totalorder %v3561_v54, 429496730  ;;  %4560 = vmatprep.mubr.msk.f32.mxu1 %vm3687_vm0, %v7577_v53  ;;  %v7578_v8 = vmax.f32 %v6890_v49, 0.0  ;;  %vm3686_vm2 = vcmp.ge.u32.totalorder %v3558_v52, 429496730  ;;  %v3968_v2 = vadd.f32 %v7084_v6, %v6918_v58 }
 0x375   : > { %vm3688_vm3 = vcmp.ge.u32.totalorder %v3560_v5, 429496730  ;;  %v1773_v18 = vmul.u32 2146121005, %v1645_v62  ;;  %v7579_v31 = vmax.f32 %v6862_v21, 0.0  ;;  %v7580_v22 = vmax.f32 %v6882_v46, 0.0 }
 0x376   : > { %4624 = vmatprep.mubr.msk.f32.mxu0 %vm3689_vm1, %v7578_v8  ;;  %v1899_v23 = vshrl.u32 %v1771_v50, 15  ;;  %v1770_v26 = vmul.u32 2146121005, %v1642_v32  ;;  %v1772_v55 = vmul.u32 2146121005, %v1644_v16  ;;  %v1068_v53 = vadd.s32 248, %v5399_v60 }
 0x377   : > { %4561 = vmatmul.mubr.msk.f32.gmra.mrb[120].mxu1 %vm3686_vm2, %v7579_v31  ;;  %4625 = vmatmul.mubr.msk.f32.gmra.mrb[120].mxu0 %vm3688_vm3, %v7580_v22  ;;  %v1901_v49 = vshrl.u32 %v1773_v18, 15  ;;  %v1138_v12 = vmul.u32 512, %v1101_v27  ;;  %v4193_v25 = vadd.f32 %v6920_v51, %v3968_v2  ;;  %v3973_v62 = vadd.f32 %v7084_v6, %v6926_v28 }
 0x378   : > { %v2027_v58 = vxor.u32 %v1899_v23, %v1771_v50  ;;  %v1898_v0 = vshrl.u32 %v1770_v26, 15  ;;  %v1900_v21 = vshrl.u32 %v1772_v55, 15  ;;  %v1102_v45 = vadd.s32 %v5406_v3, %v1068_v53 }
 0x379   : > { %v2029_v46 = vxor.u32 %v1901_v49, %v1773_v18  ;;  %v1261_v9 = vadd.s32 %v1138_v12, %v7372_v17  ;;  %v1263_v44 = vadd.s32 %v1138_v12, %v7373_v59  ;;  %v1260_v33 = vadd.s32 %v1138_v12, %v7374_v34  ;;  %4351 = vst [vmem:[%s7107_s20] sm:$0xff] %v4193_v25 }
 0x37a   : > { %v2155_v60 = vmul.u32 2221713035, %v2027_v58  ;;  %v2026_v51 = vxor.u32 %v1898_v0, %v1770_v26  ;;  %v2028_v28 = vxor.u32 %v1900_v21, %v1772_v55  ;;  %v1262_v27 = vadd.s32 %v1138_v12, %v7376_v43 }
 0x37b   : > { %v2157_v36 = vmul.u32 2221713035, %v2029_v46  ;;  %v1391_v3 = vxor.u32 %v7375_v48, %v1261_v9  ;;  %v1393_v1 = vxor.u32 %v7375_v48, %v1263_v44  ;;  %v1390_v42 = vxor.u32 %v7375_v48, %v1260_v33 }
 0x37c   : > { %v2283_v47 = vshrl.u32 %v2155_v60, 16  ;;  %v2154_v54 = vmul.u32 2221713035, %v2026_v51  ;;  %v2156_v57 = vmul.u32 2221713035, %v2028_v28  ;;  %v1392_v52 = vxor.u32 %v7375_v48, %v1262_v27 }
 0x37d   : > { %v2285_v5 = vshrl.u32 %v2157_v36, 16  ;;  %v1519_v32 = vshrl.u32 %v1391_v3, 16  ;;  %v1521_v16 = vshrl.u32 %v1393_v1, 16  ;;  %v1518_v50 = vshrl.u32 %v1390_v42, 16 }
 0x37e   : > { %v2411_v8 = vxor.u32 %v2283_v47, %v2155_v60  ;;  %v2282_v18 = vshrl.u32 %v2154_v54, 16  ;;  %v2284_v2 = vshrl.u32 %v2156_v57, 16  ;;  %v1520_v31 = vshrl.u32 %v1392_v52, 16 }
 0x37f   : > { %v2413_v22 = vxor.u32 %v2285_v5, %v2157_v36  ;;  %v1647_v23 = vxor.u32 %v1519_v32, %v1391_v3  ;;  %v1649_v26 = vxor.u32 %v1521_v16, %v1393_v1  ;;  %v1646_v55 = vxor.u32 %v1518_v50, %v1390_v42 }
 0x380   : > { %v2539_v53 = vxor.u32 2654435769, %v2411_v8  ;;  %v2410_v49 = vxor.u32 %v2282_v18, %v2154_v54  ;;  %v2412_v12 = vxor.u32 %v2284_v2, %v2156_v57  ;;  %v1648_v25 = vxor.u32 %v1520_v31, %v1392_v52  ;;  %v7119_v54 = vpop.f32.mrb[102].mxu1  ;;  %v7121_v57 = vpop.f32.mrb[102].mxu0 }
 0x381   : > { %v2541_v58 = vxor.u32 2654435769, %v2413_v22  ;;  %v1775_v0 = vmul.u32 2146121005, %v1647_v23  ;;  %v1777_v21 = vmul.u32 2146121005, %v1649_v26  ;;  %v4198_v46 = vadd.f32 %v6931_v10, %v3973_v62 }
 0x382   : > { %v2667_v9 = vshrl.u32 %v2539_v53, 16  ;;  %v2538_v44 = vxor.u32 2654435769, %v2410_v49  ;;  %v2540_v33 = vxor.u32 2654435769, %v2412_v12  ;;  %v7116_v60 = vmul.u32 512, %v1102_v45 }
 0x383   : > { %v2669_v51 = vshrl.u32 %v2541_v58, 16  ;;  %v1903_v28 = vshrl.u32 %v1775_v0, 15  ;;  %v1905_v27 = vshrl.u32 %v1777_v21, 15  ;;  %v1774_v36 = vmul.u32 2146121005, %v1646_v55  ;;  %4352 = vst [vmem:[%s7107_s20 + $0x8] sm:$0xff] %v4198_v46 }
 0x384   : > { %v2795_v3 = vxor.u32 %v2667_v9, %v2539_v53  ;;  %v2666_v1 = vshrl.u32 %v2538_v44, 16  ;;  %v2668_v42 = vshrl.u32 %v2540_v33, 16  ;;  %v1776_v47 = vmul.u32 2146121005, %v1648_v25  ;;  %v4064_v32 = vpop.f32.mrb[103].mxu1  ;;  %v4289_v45 = vpop.f32.mrb[103].mxu0 }
 0x385   : > { %v2797_v52 = vxor.u32 %v2669_v51, %v2541_v58  ;;  %v2031_v10 = vxor.u32 %v1903_v28, %v1775_v0  ;;  %v2033_v62 = vxor.u32 %v1905_v27, %v1777_v21  ;;  %v1902_v5 = vshrl.u32 %v1774_v36, 15 }
 0x386   : > { %v2923_v16 = vmul.u32 2146121005, %v2795_v3  ;;  %v2794_v50 = vxor.u32 %v2666_v1, %v2538_v44  ;;  %v2796_v8 = vxor.u32 %v2668_v42, %v2540_v33  ;;  %v1904_v18 = vshrl.u32 %v1776_v47, 15 }
 0x387   : > { %v2925_v2 = vmul.u32 2146121005, %v2797_v52  ;;  %v2159_v31 = vmul.u32 2221713035, %v2031_v10  ;;  %v2030_v22 = vxor.u32 %v1902_v5, %v1774_v36  ;;  %v1265_v23 = vadd.s32 %v7116_v60, %v7372_v17 }
 0x388   : > { %v3051_v26 = vshrl.u32 %v2923_v16, 15  ;;  %v2922_v55 = vmul.u32 2146121005, %v2794_v50  ;;  %v2924_v53 = vmul.u32 2146121005, %v2796_v8  ;;  %v2032_v49 = vxor.u32 %v1904_v18, %v1776_v47 }
 0x389   : > { %v3053_v12 = vshrl.u32 %v2925_v2, 15  ;;  %v2287_v25 = vshrl.u32 %v2159_v31, 16  ;;  %v2161_v58 = vmul.u32 2221713035, %v2033_v62  ;;  %v2158_v0 = vmul.u32 2221713035, %v2030_v22 }
 0x38a   : > { %v3179_v21 = vxor.u32 %v3051_v26, %v2923_v16  ;;  %v3050_v46 = vshrl.u32 %v2922_v55, 15  ;;  %v3052_v9 = vshrl.u32 %v2924_v53, 15  ;;  %v2160_v44 = vmul.u32 2221713035, %v2032_v49 }
 0x38b   : > { %v3181_v33 = vxor.u32 %v3053_v12, %v2925_v2  ;;  %v2415_v51 = vxor.u32 %v2287_v25, %v2159_v31  ;;  %v2289_v28 = vshrl.u32 %v2161_v58, 16  ;;  %v2286_v27 = vshrl.u32 %v2158_v0, 16 }
 0x38c   : > { %v3307_v36 = vmul.u32 2221713035, %v3179_v21  ;;  %v3178_v3 = vxor.u32 %v3050_v46, %v2922_v55  ;;  %v3180_v1 = vxor.u32 %v3052_v9, %v2924_v53  ;;  %v2288_v17 = vshrl.u32 %v2160_v44, 16 }
 0x38d   : > { %v3309_v42 = vmul.u32 2221713035, %v3181_v33  ;;  %v2543_v52 = vxor.u32 2654435769, %v2415_v51  ;;  %v2417_v10 = vxor.u32 %v2289_v28, %v2161_v58  ;;  %v2414_v47 = vxor.u32 %v2286_v27, %v2158_v0 }
 0x38e   : > { %v3435_v5 = vshrl.u32 %v3307_v36, 16  ;;  %v3306_v32 = vmul.u32 2221713035, %v3178_v3  ;;  %v3308_v62 = vmul.u32 2221713035, %v3180_v1  ;;  %v2416_v45 = vxor.u32 %v2288_v17, %v2160_v44 }
 0x38f   : > { %v3437_v16 = vshrl.u32 %v3309_v42, 16  ;;  %v2671_v50 = vshrl.u32 %v2543_v52, 16  ;;  %v2545_v8 = vxor.u32 2654435769, %v2417_v10  ;;  %v2542_v18 = vxor.u32 2654435769, %v2414_v47 }
 0x390   : > { %v3563_v2 = vxor.u32 %v3435_v5, %v3307_v36  ;;  %v3434_v31 = vshrl.u32 %v3306_v32, 16  ;;  %v3436_v22 = vshrl.u32 %v3308_v62, 16  ;;  %v2544_v26 = vxor.u32 2654435769, %v2416_v45  ;;  %v7127_v33 = vpop.f32.mrb[104].mxu1  ;;  %v7129_v51 = vpop.f32.mrb[104].mxu0 }
 0x391   : > { %v3565_v49 = vxor.u32 %v3437_v16, %v3309_v42  ;;  %v2799_v55 = vxor.u32 %v2671_v50, %v2543_v52  ;;  %v2673_v53 = vshrl.u32 %v2545_v8, 16  ;;  %v2670_v12 = vshrl.u32 %v2542_v18, 16  ;;  %v4069_v3 = vpop.f32.mrb[105].mxu1  ;;  %v4294_v1 = vpop.f32.mrb[105].mxu0 }
 0x392   : > { %vm3691_vm4 = vcmp.ge.u32.totalorder %v3563_v2, 429496730  ;;  %v3562_v25 = vxor.u32 %v3434_v31, %v3306_v32  ;;  %v3564_v58 = vxor.u32 %v3436_v22, %v3308_v62  ;;  %v2672_v0 = vshrl.u32 %v2544_v26, 16 }
 0x393   : > { %v7581_v21 = vmax.f32 %v6915_v41, 0.0  ;;  %vm3693_vm5 = vcmp.ge.u32.totalorder %v3565_v49, 429496730  ;;  %v2927_v46 = vmul.u32 2146121005, %v2799_v55  ;;  %v2801_v9 = vxor.u32 %v2673_v53, %v2545_v8 }
 0x394   : > { %v2798_v44 = vxor.u32 %v2670_v12, %v2542_v18  ;;  %v7582_v28 = vmax.f32 %v6946_v37, 0.0  ;;  %vm3690_vm6 = vcmp.ge.u32.totalorder %v3562_v25, 429496730  ;;  %vm3692_vm7 = vcmp.ge.u32.totalorder %v3564_v58, 429496730 }
 0x395   : > { %4562 = vmatprep.mubr.msk.f32.mxu1 %vm3691_vm4, %v7581_v21  ;;  %v2800_v27 = vxor.u32 %v2672_v0, %v2544_v26  ;;  %v1395_v36 = vxor.u32 %v7375_v48, %v1265_v23  ;;  %v7583_v41 = vmax.f32 %v6903_v56, 0.0  ;;  %v7584_v17 = vmax.f32 %v6911_v63, 0.0 }
 0x396   : > { %4626 = vmatprep.mubr.msk.f32.mxu0 %vm3693_vm5, %v7582_v28  ;;  %v3055_v42 = vshrl.u32 %v2927_v46, 15  ;;  %v2929_v52 = vmul.u32 2146121005, %v2801_v9  ;;  %v2926_v10 = vmul.u32 2146121005, %v2798_v44  ;;  %v1267_v37 = vadd.s32 %v7116_v60, %v7373_v59 }
 0x397   : > { %4563 = vmatmul.mubr.msk.f32.gmra.mrb[122].mxu1 %vm3690_vm6, %v7583_v41  ;;  %4627 = vmatmul.mubr.msk.f32.gmra.mrb[122].mxu0 %vm3692_vm7, %v7584_v17  ;;  %v2928_v47 = vmul.u32 2146121005, %v2800_v27  ;;  %v1523_v5 = vshrl.u32 %v1395_v36, 16  ;;  %v1264_v32 = vadd.s32 %v7116_v60, %v7374_v34  ;;  %v1266_v23 = vadd.s32 %v7116_v60, %v7376_v43 }
 0x398   : > { %v3183_v62 = vxor.u32 %v3055_v42, %v2927_v46  ;;  %v3057_v56 = vshrl.u32 %v2929_v52, 15  ;;  %v3054_v45 = vshrl.u32 %v2926_v10, 15  ;;  %v1397_v63 = vxor.u32 %v7375_v48, %v1267_v37 }
 0x399   : > { %v3056_v16 = vshrl.u32 %v2928_v47, 15  ;;  %v1651_v50 = vxor.u32 %v1523_v5, %v1395_v36  ;;  %v1394_v8 = vxor.u32 %v7375_v48, %v1264_v32  ;;  %v1396_v18 = vxor.u32 %v7375_v48, %v1266_v23 }
 0x39a   : > { %v3311_v59 = vmul.u32 2221713035, %v3183_v62  ;;  %v3185_v2 = vxor.u32 %v3057_v56, %v2929_v52  ;;  %v3182_v31 = vxor.u32 %v3054_v45, %v2926_v10  ;;  %v1525_v22 = vshrl.u32 %v1397_v63, 16 }
 0x39b   : > { %v3184_v26 = vxor.u32 %v3056_v16, %v2928_v47  ;;  %v1779_v34 = vmul.u32 2146121005, %v1651_v50  ;;  %v1522_v49 = vshrl.u32 %v1394_v8, 16  ;;  %v1524_v55 = vshrl.u32 %v1396_v18, 16 }
 0x39c   : > { %v3439_v43 = vshrl.u32 %v3311_v59, 16  ;;  %v3313_v60 = vmul.u32 2221713035, %v3185_v2  ;;  %v3310_v53 = vmul.u32 2221713035, %v3182_v31  ;;  %v1653_v12 = vxor.u32 %v1525_v22, %v1397_v63  ;;  %v7588_v63 = vld [vmem:[#allocation25_spill] sm:$0xff] }
 0x39d   : > { %v3312_v25 = vmul.u32 2221713035, %v3184_v26  ;;  %v1907_v58 = vshrl.u32 %v1779_v34, 15  ;;  %v1650_v0 = vxor.u32 %v1522_v49, %v1394_v8  ;;  %v1652_v21 = vxor.u32 %v1524_v55, %v1396_v18  ;;  %v7590_v8 = vld [vmem:[#allocation23_spill] sm:$0xff]  ;;  %v7593_v26 = vld [vmem:[#allocation20_spill] sm:$0xff]  ;;  %v7594_v55 = vld [vmem:[#allocation26_spill] sm:$0xff] }
 0x39e   : > { %v3567_v46 = vxor.u32 %v3439_v43, %v3311_v59  ;;  %v3441_v9 = vshrl.u32 %v3313_v60, 16  ;;  %v3438_v44 = vshrl.u32 %v3310_v53, 16  ;;  %v1781_v48 = vmul.u32 2146121005, %v1653_v12  ;;  %v7591_v59 = vld [vmem:[#allocation24_spill] sm:$0xff]  ;;  %v7592_v2 = vld [vmem:[#allocation27_spill] sm:$0xff] }
 0x39f   : > { %v3440_v28 = vshrl.u32 %v3312_v25, 16  ;;  %v2035_v27 = vxor.u32 %v1907_v58, %v1779_v34  ;;  %v1778_v36 = vmul.u32 2146121005, %v1650_v0  ;;  %v1780_v3 = vmul.u32 2146121005, %v1652_v21  ;;  %v7596_v12 = vld [vmem:[#allocation14_spill] sm:$0xff] }
 0x3a0   : > { %vm3695_vm8 = vcmp.ge.u32.totalorder %v3567_v46, 429496730  ;;  %v3569_v1 = vxor.u32 %v3441_v9, %v3313_v60  ;;  %v3566_v41 = vxor.u32 %v3438_v44, %v3310_v53  ;;  %v1909_v17 = vshrl.u32 %v1781_v48, 15  ;;  %v7595_v60 = vld [vmem:[#allocation15_spill] sm:$0xff]  ;;  %v7597_v46 = vld [vmem:[#allocation16_spill] sm:$0xff] }
 0x3a1   : > { %v7585_v42 = vmax.f32 %v6976_v15, 0.0  ;;  %v3568_v52 = vxor.u32 %v3440_v28, %v3312_v25  ;;  %v2163_v10 = vmul.u32 2221713035, %v2035_v27  ;;  %v1906_v37 = vshrl.u32 %v1778_v36, 15  ;;  %v7599_v27 = vld [vmem:[#allocation21_spill] sm:$0xff] }
 0x3a2   : > { %v1908_v47 = vshrl.u32 %v1780_v3, 15  ;;  %vm3697_vm9 = vcmp.ge.u32.totalorder %v3569_v1, 429496730  ;;  %vm3694_vm10 = vcmp.ge.u32.totalorder %v3566_v41, 429496730  ;;  %v2037_v5 = vxor.u32 %v1909_v17, %v1781_v48  ;;  %v7598_v48 = vld [vmem:[#allocation18_spill] sm:$0xff] }
 0x3a3   : > { %4564 = vmatprep.mubr.msk.f32.mxu1 %vm3695_vm8, %v7585_v42  ;;  %v3978_v32 = vadd.f32 %v7084_v6, %v6934_v30  ;;  %v7586_v23 = vmax.f32 %v6985_v11, 0.0  ;;  %v7587_v62 = vmax.f32 %v6954_v24, 0.0  ;;  %vm3696_vm11 = vcmp.ge.u32.totalorder %v3568_v52, 429496730  ;;  %v7601_v52 = vld [vmem:[#allocation30_spill] sm:$0xff] }
 0x3a4   : > { %v2291_v15 = vshrl.u32 %v2163_v10, 16  ;;  %v2034_v56 = vxor.u32 %v1906_v37, %v1778_v36  ;;  %v2036_v45 = vxor.u32 %v1908_v47, %v1780_v3  ;;  %v7589_v16 = vmax.f32 %v7588_v63, 0.0  ;;  %v7600_v3 = vld [vmem:[#allocation28_spill] sm:$0xff]  ;;  %v7602_v47 = vld [vmem:[#allocation17_spill] sm:$0xff] }
 0x3a5   : > { %4628 = vmatprep.mubr.msk.f32.mxu0 %vm3697_vm9, %v7586_v23  ;;  %4565 = vmatmul.mubr.msk.f32.gmra.mrb[124].mxu1 %vm3694_vm10, %v7587_v62  ;;  %v2165_v50 = vmul.u32 2221713035, %v2037_v5  ;;  %v4203_v18 = vadd.f32 %v7590_v8, %v3978_v32  ;;  %v3983_v30 = vadd.f32 %v7084_v6, %v7591_v59  ;;  %v3988_v11 = vadd.f32 %v7084_v6, %v7592_v2  ;;  %v7603_v32 = vld [vmem:[#allocation29_spill] sm:$0xff]  ;;  %v7604_v62 = vld [vmem:[#allocation32_spill] sm:$0xff] }
 0x3a6   : > { %4629 = vmatmul.mubr.msk.f32.gmra.mrb[124].mxu0 %vm3696_vm11, %v7589_v16  ;;  %v2419_v24 = vxor.u32 %v2291_v15, %v2163_v10  ;;  %v2162_v31 = vmul.u32 2221713035, %v2034_v56  ;;  %v2164_v22 = vmul.u32 2221713035, %v2036_v45  ;;  %v3993_v34 = vadd.f32 %v7084_v6, %v7593_v26  ;;  %v7605_v16 = vld [vmem:[#allocation31_spill] sm:$0xff] }
 0x3a7   : > { %v2293_v49 = vshrl.u32 %v2165_v50, 16  ;;  %4353 = vst [vmem:[%s7107_s20 + $0x10] sm:$0xff] %v4203_v18  ;;  %v4208_v43 = vadd.f32 %v7594_v55, %v3983_v30  ;;  %v4213_v53 = vadd.f32 %v7595_v60, %v3988_v11  ;;  %v3998_v25 = vadd.f32 %v7084_v6, %v7596_v12  ;;  %v7606_v18 = vld [vmem:[#allocation33_spill] sm:$0xff]  ;;  %v7607_v30 = vld [vmem:[#allocation34_spill] sm:$0xff]  ;;  %v7608_v11 = vld [vmem:[#allocation36_spill] sm:$0xff] }
 0x3a8   : > { %v2547_v58 = vxor.u32 2654435769, %v2419_v24  ;;  %v2290_v0 = vshrl.u32 %v2162_v31, 16  ;;  %v2292_v21 = vshrl.u32 %v2164_v22, 16  ;;  %v4218_v9 = vadd.f32 %v7597_v46, %v3993_v34  ;;  %v7609_v34 = vld [vmem:[#allocation38_spill] sm:$0xff]  ;;  %v7612_v46 = vld [vmem:[#allocation39_spill] sm:$0xff] }
 0x3a9   : > { %v2421_v44 = vxor.u32 %v2293_v49, %v2165_v50  ;;  %4354 = vst [vmem:[%s7107_s20 + $0x18] sm:$0xff] %v4208_v43  ;;  %4355 = vst [vmem:[%s7107_s20 + $0x20] sm:$0xff] %v4213_v53  ;;  %v4223_v28 = vadd.f32 %v7598_v48, %v3998_v25  ;;  %v4003_v36 = vadd.f32 %v7084_v6, %v7599_v27  ;;  %v7610_v43 = vld [vmem:[#allocation35_spill] sm:$0xff]  ;;  %v7611_v53 = vld [vmem:[#allocation37_spill] sm:$0xff] }
 0x3aa   : > { %v4008_v1 = vadd.f32 %v7084_v6, %v7600_v3  ;;  %v2675_v41 = vshrl.u32 %v2547_v58, 16  ;;  %v2418_v17 = vxor.u32 %v2290_v0, %v2162_v31  ;;  %v2420_v42 = vxor.u32 %v2292_v21, %v2164_v22  ;;  %4356 = vst [vmem:[%s7107_s20 + $0x28] sm:$0xff] %v4218_v9 }
 0x3ab   : > { %v4013_v10 = vadd.f32 %v7084_v6, %v7601_v52  ;;  %v2549_v37 = vxor.u32 2654435769, %v2421_v44  ;;  %4357 = vst [vmem:[%s7107_s20 + $0x30] sm:$0xff] %v4223_v28  ;;  %v4228_v5 = vadd.f32 %v7602_v47, %v4003_v36  ;;  %v4018_v15 = vadd.f32 %v7084_v6, %v7604_v62 }
 0x3ac   : > { %v4233_v23 = vadd.f32 %v7603_v32, %v4008_v1  ;;  %v2803_v56 = vxor.u32 %v2675_v41, %v2547_v58  ;;  %v2546_v45 = vxor.u32 2654435769, %v2418_v17  ;;  %v2548_v63 = vxor.u32 2654435769, %v2420_v42 }
 0x3ad   : > { %v4238_v50 = vadd.f32 %v7605_v16, %v4013_v10  ;;  %v2677_v8 = vshrl.u32 %v2549_v37, 16  ;;  %4358 = vst [vmem:[%s7107_s20 + $0x38] sm:$0xff] %v4228_v5  ;;  %v4243_v59 = vadd.f32 %v7606_v18, %v4018_v15  ;;  %v4023_v2 = vadd.f32 %v7084_v6, %v7607_v30  ;;  %v7614_v18 = vld [vmem:[#allocation22_spill] sm:$0xff] }
 0x3ae   : > { %4359 = vst [vmem:[%s7107_s20 + $0x40] sm:$0xff] %v4233_v23  ;;  %v4028_v24 = vadd.f32 %v7084_v6, %v7608_v11  ;;  %v2931_v31 = vmul.u32 2146121005, %v2803_v56  ;;  %v2674_v22 = vshrl.u32 %v2546_v45, 16  ;;  %v2676_v26 = vshrl.u32 %v2548_v63, 16  ;;  %v4297_v47 = vpop.f32.mrb[106].mxu0 }
 0x3af   : > { %4360 = vst [vmem:[%s7107_s20 + $0x48] sm:$0xff] %v4238_v50  ;;  %v4033_v49 = vadd.f32 %v7084_v6, %v7609_v34  ;;  %v2805_v55 = vxor.u32 %v2677_v8, %v2549_v37  ;;  %4361 = vst [vmem:[%s7107_s20 + $0x50] sm:$0xff] %v4243_v59  ;;  %v4248_v60 = vadd.f32 %v7610_v43, %v4023_v2  ;;  %v4072_v37 = vpop.f32.mrb[106].mxu1  ;;  %v4299_v32 = vpop.f32.mrb[107].mxu0  ;;  %v1033_v56 = vmax.f32 %v7058_v40, 0.0  ;;  %v7613_v8 = vld [vmem:[#allocation19_spill] sm:$0xff] }
 0x3b0   : > { %v4253_v12 = vadd.f32 %v7611_v53, %v4028_v24  ;;  %v4038_v25 = vadd.f32 %v7084_v6, %v7028_v13  ;;  %v3059_v58 = vshrl.u32 %v2931_v31, 15  ;;  %v2802_v0 = vxor.u32 %v2674_v22, %v2546_v45  ;;  %v7615_v24 = vld [vmem:[#allocation40_spill] sm:$0xff] }
 0x3b1   : > { %v2804_v21 = vxor.u32 %v2676_v26, %v2548_v63  ;;  %v4258_v9 = vadd.f32 %v7612_v46, %v4033_v49  ;;  %v2933_v44 = vmul.u32 2146121005, %v2805_v55  ;;  %4362 = vst [vmem:[%s7107_s20 + $0x58] sm:$0xff] %v4248_v60  ;;  %v4043_v28 = vadd.f32 %v7084_v6, %v7036_v4 }
 0x3b2   : > { %4363 = vst [vmem:[%s7107_s20 + $0x60] sm:$0xff] %v4253_v12  ;;  %v4263_v48 = vadd.f32 %v7030_v38, %v4038_v25  ;;  %v4048_v27 = vadd.f32 %v7084_v6, %v7047_v29  ;;  %v3187_v36 = vxor.u32 %v3059_v58, %v2931_v31  ;;  %v2930_v3 = vmul.u32 2146121005, %v2802_v0 }
 0x3b3   : > { %v2932_v13 = vmul.u32 2146121005, %v2804_v21  ;;  %4364 = vst [vmem:[%s7107_s20 + $0x68] sm:$0xff] %v4258_v9  ;;  %v4053_v1 = vadd.f32 %v7084_v6, %v7060_v19  ;;  %v3061_v41 = vshrl.u32 %v2933_v44, 15  ;;  %v4268_v17 = vadd.f32 %v7038_v7, %v4043_v28 }
 0x3b4   : > { %4365 = vst [vmem:[%s7107_s20 + $0x70] sm:$0xff] %v4263_v48  ;;  %v4273_v38 = vadd.f32 %v7049_v20, %v4048_v27  ;;  %v4058_v4 = vadd.f32 %v7084_v6, %v7071_v61  ;;  %v3315_v42 = vmul.u32 2221713035, %v3187_v36  ;;  %v3058_v29 = vshrl.u32 %v2930_v3, 15  ;;  %v4074_v61 = vpop.f32.mrb[107].mxu1 }
 0x3b5   : > { %v3060_v52 = vshrl.u32 %v2932_v13, 15  ;;  %v4278_v10 = vadd.f32 %v7067_v39, %v4053_v1  ;;  %v3189_v5 = vxor.u32 %v3061_v41, %v2933_v44  ;;  %4366 = vst [vmem:[%s7107_s20 + $0x78] sm:$0xff] %v4268_v17  ;;  %v4063_v7 = vadd.f32 %v7084_v6, %v7119_v54 }
 0x3b6   : > { %4367 = vst [vmem:[%s7107_s20 + $0x80] sm:$0xff] %v4273_v38  ;;  %v4283_v19 = vadd.f32 %v7075_v35, %v4058_v4  ;;  %v4068_v20 = vadd.f32 %v7084_v6, %v7127_v33  ;;  %v3443_v23 = vshrl.u32 %v3315_v42, 16  ;;  %v3186_v62 = vxor.u32 %v3058_v29, %v2930_v3 }
 0x3b7   : > { %v3188_v39 = vxor.u32 %v3060_v52, %v2932_v13  ;;  %4368 = vst [vmem:[%s7107_s20 + $0x88] sm:$0xff] %v4278_v10  ;;  %v4073_v15 = vadd.f32 %v7084_v6, %v4072_v37  ;;  %v3317_v45 = vmul.u32 2221713035, %v3189_v5  ;;  %v4288_v35 = vadd.f32 %v7121_v57, %v4063_v7 }
 0x3b8   : > { %4369 = vst [vmem:[%s7107_s20 + $0x90] sm:$0xff] %v4283_v19  ;;  %v4293_v54 = vadd.f32 %v7129_v51, %v4068_v20  ;;  %v3571_v33 = vxor.u32 %v3443_v23, %v3315_v42  ;;  %v3314_v63 = vmul.u32 2221713035, %v3186_v62  ;;  %v647_v59 = vadd.f32 %v7614_v18, %v7613_v8 }
 0x3b9   : > { %v3316_v16 = vmul.u32 2221713035, %v3188_v39  ;;  %v4298_v50 = vadd.f32 %v4297_v47, %v4073_v15  ;;  %v3445_v30 = vshrl.u32 %v3317_v45, 16  ;;  %4370 = vst [vmem:[%s7107_s20 + $0x98] sm:$0xff] %v4288_v35  ;;  %v1035_v2 = vmax.f32 %v7064_v14, 0.0 }
 0x3ba   : > { %4371 = vst [vmem:[%s7107_s20 + $0xa0] sm:$0xff] %v4293_v54  ;;  %vm3699_vm12 = vcmp.ge.u32.totalorder %v3571_v33, 429496730  ;;  %v3442_v40 = vshrl.u32 %v3314_v63, 16  ;;  %v1034_v57 = vmax.f32 %v7615_v24, 0.0  ;;  %v1032_v26 = vmax.f32 %v647_v59, 0.0 }
 0x3bb   : > { %v3444_v11 = vshrl.u32 %v3316_v16, 16  ;;  %4372 = vst [vmem:[%s7107_s20 + $0xa8] sm:$0xff] %v4298_v50  ;;  %4566 = vmatprep.mubr.msk.f32.mxu1 %vm3699_vm12, %v1033_v56  ;;  %v3573_v51 = vxor.u32 %v3445_v30, %v3317_v45 }
 0x3bc   : > { %v3570_v31 = vxor.u32 %v3442_v40, %v3314_v63  ;;  %v4077_v14 = vpop.f32.mrb[108].mxu1 }
 0x3bd   : > { %v3572_v22 = vxor.u32 %v3444_v11, %v3316_v16  ;;  %vm3701_vm13 = vcmp.ge.u32.totalorder %v3573_v51, 429496730  ;;  %v4078_v34 = vadd.f32 %v7084_v6, %v4077_v14  ;;  %v4302_v49 = vpop.f32.mrb[108].mxu0  ;;  %v4079_v55 = vpop.f32.mrb[109].mxu1 }
 0x3be   : > { %4630 = vmatprep.mubr.msk.f32.mxu0 %vm3701_vm13, %v1035_v2  ;;  %vm3698_vm14 = vcmp.ge.u32.totalorder %v3570_v31, 429496730  ;;  %v4304_v43 = vpop.f32.mrb[109].mxu0 }
 0x3bf   : > { %vm3700_vm15 = vcmp.ge.u32.totalorder %v3572_v22, 429496730  ;;  %4567 = vmatmul.mubr.msk.f32.gmra.mrb[126].mxu1 %vm3698_vm14, %v1032_v26  ;;  %v4303_v60 = vadd.f32 %v4302_v49, %v4078_v34 }
 0x3c0   : > { %4631 = vmatmul.mubr.msk.f32.gmra.mrb[126].mxu0 %vm3700_vm15, %v1034_v57 }
 0x3c1   : > { %4373 = vst [vmem:[%s7107_s20 + $0xb0] sm:$0xff] %v4303_v60 }
 0x3dc   : > { %v4082_v53 = vpop.f32.mrb[110].mxu1 }
 0x3dd   : > { %v4307_v12 = vpop.f32.mrb[110].mxu0  ;;  %v4083_v25 = vadd.f32 %v7084_v6, %v4082_v53  ;;  %v4084_v58 = vpop.f32.mrb[111].mxu1 }
 0x3de   : > { %v4309_v0 = vpop.f32.mrb[111].mxu0 }
 0x3df   : > { %v4308_v21 = vadd.f32 %v4307_v12, %v4083_v25 }
 0x3e1   : > { %4374 = vst [vmem:[%s7107_s20 + $0xb8] sm:$0xff] %v4308_v21 }
 0x3ec   : > { %v4087_v46 = vpop.f32.mrb[112].mxu1  ;;  %v4312_v9 = vpop.f32.mrb[112].mxu0 }
 0x3ed   : > { %v4088_v44 = vadd.f32 %v7084_v6, %v4087_v46  ;;  %v4089_v48 = vpop.f32.mrb[113].mxu1  ;;  %v4314_v28 = vpop.f32.mrb[113].mxu0 }
 0x3ef   : > { %v4313_v27 = vadd.f32 %v4312_v9, %v4088_v44 }
 0x3f1   : > { %4375 = vst [vmem:[%s7107_s20 + $0xc0] sm:$0xff] %v4313_v27 }
 0x40c   : > { %v4092_v36 = vpop.f32.mrb[114].mxu1  ;;  %v4317_v3 = vpop.f32.mrb[114].mxu0 }
 0x40d   : > { %v4093_v13 = vadd.f32 %v7084_v6, %v4092_v36  ;;  %v4094_v1 = vpop.f32.mrb[115].mxu1  ;;  %v4319_v41 = vpop.f32.mrb[115].mxu0 }
 0x40f   : > { %v4318_v17 = vadd.f32 %v4317_v3, %v4093_v13 }
 0x411   : > { %4376 = vst [vmem:[%s7107_s20 + $0xc8] sm:$0xff] %v4318_v17 }
 0x41a   : > { %v4097_v38 = vpop.f32.mrb[116].mxu1 }
 0x41b   : > { %v4098_v4 = vadd.f32 %v7084_v6, %v4097_v38  ;;  %v4322_v42 = vpop.f32.mrb[116].mxu0  ;;  %v4099_v29 = vpop.f32.mrb[117].mxu1 }
 0x41c   : > { %v4324_v52 = vpop.f32.mrb[117].mxu0 }
 0x41d   : > { %v4323_v10 = vadd.f32 %v4322_v42, %v4098_v4 }
 0x41f   : > { %4377 = vst [vmem:[%s7107_s20 + $0xd0] sm:$0xff] %v4323_v10 }
 0x43b   : > { %v4102_v37 = vpop.f32.mrb[118].mxu1  ;;  %v4327_v47 = vpop.f32.mrb[118].mxu0 }
 0x43c   : > { %v4103_v5 = vadd.f32 %v7084_v6, %v4102_v37  ;;  %v4104_v19 = vpop.f32.mrb[119].mxu1  ;;  %v4329_v7 = vpop.f32.mrb[119].mxu0 }
 0x43e   : > { %v4328_v20 = vadd.f32 %v4327_v47, %v4103_v5 }
 0x440   : > { %4378 = vst [vmem:[%s7107_s20 + $0xd8] sm:$0xff] %v4328_v20 }
 0x44a   : > { %v4107_v61 = vpop.f32.mrb[120].mxu1  ;;  %v4332_v32 = vpop.f32.mrb[120].mxu0 }
 0x44b   : > { %v4108_v23 = vadd.f32 %v7084_v6, %v4107_v61  ;;  %v4109_v62 = vpop.f32.mrb[121].mxu1  ;;  %v4334_v39 = vpop.f32.mrb[121].mxu0 }
 0x44d   : > { %v4333_v15 = vadd.f32 %v4332_v32, %v4108_v23 }
 0x44f   : > { %4379 = vst [vmem:[%s7107_s20 + $0xe0] sm:$0xff] %v4333_v15 }
 0x46a   : > { %v4112_v56 = vpop.f32.mrb[122].mxu1  ;;  %v4337_v45 = vpop.f32.mrb[122].mxu0 }
 0x46b   : > { %v4113_v35 = vadd.f32 %v7084_v6, %v4112_v56  ;;  %v4114_v54 = vpop.f32.mrb[123].mxu1  ;;  %v4339_v33 = vpop.f32.mrb[123].mxu0 }
 0x46d   : > { %v4338_v63 = vadd.f32 %v4337_v45, %v4113_v35 }
 0x46f   : > { %4380 = vst [vmem:[%s7107_s20 + $0xe8] sm:$0xff] %v4338_v63 }
 0x478   : > { %v4117_v16 = vpop.f32.mrb[124].mxu1 }
 0x479   : > { %v4118_v50 = vadd.f32 %v7084_v6, %v4117_v16  ;;  %v4342_v8 = vpop.f32.mrb[124].mxu0  ;;  %v4119_v18 = vpop.f32.mrb[125].mxu1 }
 0x47a   : > { %v4344_v59 = vpop.f32.mrb[125].mxu0 }
 0x47b   : > { %v4343_v30 = vadd.f32 %v4342_v8, %v4118_v50 }
 0x47d   : > { %4381 = vst [vmem:[%s7107_s20 + $0xf0] sm:$0xff] %v4343_v30 }
 0x492   : > { %v4122_v2 = vpop.f32.mrb[126].mxu1 }
 0x493   : > { %v4347_v40 = vpop.f32.mrb[126].mxu0  ;;  %v4123_v11 = vadd.f32 %v7084_v6, %v4122_v2  ;;  %v4124_v24 = vpop.f32.mrb[127].mxu1 }
 0x494   : > { %v4349_v57 = vpop.f32.mrb[127].mxu0 }
 0x495   : > { %v4348_v51 = vadd.f32 %v4347_v40, %v4123_v11 }
 0x497   : > { %4382 = vst [vmem:[%s7107_s20 + $0xf8] sm:$0xff] %v4348_v51 }
 0x498   : > { %5037 = shalt.err (!%p5034_p2)
}
 0x499   : > { %s5038_s30 = scalar_lea.hbm %s7262_s12, 4096  ;;  %s5042_s15 = scalar_lea.hbm %s7315_s6, 8192 }
 0x49a   : > { %p5039_p13 = scmp.ne.s32.totalorder %s7262_s12, %s5038_s30  ;;  %p5043_p4 = scmp.lt.u32.totalorder %s7262_s12, %s7315_s6 }
 0x49b   : > { %p5044_p7 = scmp.lt.u32.totalorder %s5042_s15, %s5038_s30  ;;  %p5046_p11 = scmp.lt.u32.totalorder %s5038_s30, %s7262_s12 }
 0x49c   : > { %p5040_p6 = pnand %p5039_p13, %p7616_p0 }
 0x49d   : > { %p5045_p8 = por %p5044_p7, %p5043_p4 }
 0x49e   : > { %p5041_p10 = pneg %p5040_p6 }
 0x49f   : > { %p5047_p1 = por %p5046_p11, %p5045_p8 }
 0x4a1   : > { %p5048_p3 = pnand %p5047_p1, %p5041_p10 }
 0x4a3   : > { %5051 = shalt.err (!%p5048_p3)
}
 0x4a4   : > { %s5106_s14 = smov 128   ;;  %s5107_s16 = smov 8  }
 0x4a5   : > { %4873 = dma.vmem_to_hbm [thread:$0]  (%p7616_p0), %s7264_s10, 4096, %s7262_s12, %s4384_s0, %s5106_s14, %s5106_s14, %s5107_s16  }
 0x4a6 PF: > { %s4412_s27 = sand.u32 1, %s5082_s23   ;;  %p7617_p5 = scmp.ne.s32.totalorder %s7344_s29, 0 }
 0x4a7   : > { %p7618_p9 = scmp.ge.s32.totalorder %s5094_s26, 2  ;;  %s4413_s11 = scalar_lea.sflag [#allocation6], %s4412_s27 }
 0x4a9   : > { %p4887_p12 = pnand %p7618_p9, %p7617_p5 }
 0x4ab   : > { %5077 = dma.done.wait (!%p4887_p12), %s4413_s11, 4096  }
 0x4ac   : > { %5079 = vsyncadd (!%p4887_p12), %s4413_s11, 4294963200  ;;  %p21_p2 = scmp.ge.s32.totalorder %s5259_s21, 4   ;;  %s7619_s23 = smov %s5086_s24 }
 0x4ad   : > { %s7620_s24 = smov %s5090_s25  ;;  %s7621_s25 = smov %s5268_s7 }
 0x4ae   : > { %s7622_s26 = smov %s5259_s21  ;;  %23 = sbr.rel (!%p21_p2) target bundleno = 8 (0x8), region = 93 }
 0x4b5   :  { %4418 = vsyncpa [#allocation5], 1 }
 0x4b6   :  { %4420 = vsyncpa [#allocation5 + $0x1], 1 }
 0x4b7   :  { %4421 = vsyncpa [#allocation8], 1 }
 0x4b8   :  { %4422 = vsyncpa [#allocation6], 1 }
 0x4b9   :  { %4424 = vsyncpa [#allocation6 + $0x1], 1 }

</bundles_post_ra>
